<compile_context>
chip_gen: v7x
topology: tpu7x:2x2x1
jax: 0.10.0
libtpu: 0.0.40
codegen_flags: <defaults>
</compile_context>

<pallas_src>
import functools

import jax
import jax.numpy as jnp
from jax.experimental import pallas as pl
from jax.experimental.pallas import tpu as pltpu


LN_EPS = 1e-12
NEG_INF_PENALTY = 1e30


def _round_up(x, m):
    return ((x + m - 1) // m) * m


def _select_tile_m(M, D, H2):
    """Rows per grid step: as big as a generation-safe VMEM budget allows."""
    h2cat = 2 * H2
    # Per-row working set (bytes): streamed f32 x tile (double-buffered) +
    # its bf16 cast + the fused hidden slab / LN temps (~4x [2*H2] f32).
    per_row = 2 * 4 * D + 2 * D + 4 * 4 * h2cat
    # Grid-invariant residents (single-buffered): bf16 W1cat + packed vectors.
    resident = 2 * D * h2cat + 4 * 8 * h2cat + 4096
    budget = 16 * 1024 * 1024          # safe on v5e/v6e (128 MiB) and v7x (64 MiB)
    cap = max(128, ((budget - resident) // per_row) // 128 * 128)
    tile_m = min(1024, cap)
    # Keep at least two grid steps so v7x's second TensorCore is not idle.
    if M > 128:
        tile_m = min(tile_m, _round_up(-(-M // 2), 128))
    return max(128, tile_m)


def _vmem_limit_bytes(tile_m, D, h2cat):
    """Derive the scoped-VMEM limit from the actual buffers (with headroom)."""
    x_tile = 2 * tile_m * D * 4              # f32 stream, double-buffered
    mask_tile = 2 * tile_m * 4
    outs = 2 * 2 * tile_m * 4                # two (1, tile_m) f32 rows, dbl-buf
    weights = D * h2cat * 2 + 8 * h2cat * 4  # bf16 W1cat + packed f32 vectors
    inter = 4 * tile_m * h2cat * 4           # hidden slab + LN temps
    need = x_tile + mask_tile + outs + weights + inter
    return int(min(max(2 * need, 16 * 1024 * 1024), 48 * 1024 * 1024))


# --------------------------- fused start/end kernel -------------------------
def _fused_start_end_kernel(x_ref, mask_ref, w1_ref, vec_ref, b2_ref,
                            o_start_ref, o_end_ref, *, h2, eps):
    """Both OutputLayer heads on one row tile, sharing a single MXU matmul.

    x_ref    : [tm, D]      f32  (cast to bf16 here -> no wrapper HBM pass)
    w1_ref   : [D, 2*h2]    bf16 (w1_start | w1_end, grid-invariant resident)
    vec_ref  : [8, 2*h2]    f32  rows: b1 | gamma | beta | w2-row (both heads)
    b2_ref   : [2]          f32  SMEM scalars (b2_start, b2_end)
    mask_ref : [1, tm]      f32  context mask (1 = valid)
    """
    x = x_ref[...].astype(jnp.bfloat16)                     # [tm, D]
    tm = x.shape[0]
    penalty = NEG_INF_PENALTY * (1.0 - mask_ref[...])       # [1, tm]

    # One fused Linear for both heads: bf16 MXU matmul, f32 accumulation.
    h = jnp.dot(x, w1_ref[...], preferred_element_type=jnp.float32)  # [tm, 2*h2]
    vec = vec_ref[...]
    b1, gamma, beta, w2row = vec[0:1], vec[1:2], vec[2:3], vec[3:4]
    h = jnp.maximum(h + b1, 0.0)                             # lane-full bias+ReLU

    def head(lo, b2):
        hh = h[:, lo:lo + h2]                                # per-head half
        # BertLayerNorm (biased variance, eps inside sqrt), all f32.
        u = jnp.mean(hh, axis=-1, keepdims=True)
        c = hh - u
        s = jnp.mean(c * c, axis=-1, keepdims=True)
        ln = gamma[:, lo:lo + h2] * (c * jax.lax.rsqrt(s + eps)) \
            + beta[:, lo:lo + h2]
        # Linear(2D -> 1) as a VPU broadcast-multiply + lane reduction
        # (num_answer == 1: a 1-lane-wide MXU matmul would be wasted cadence).
        logit = jnp.sum(ln * w2row[:, lo:lo + h2], axis=-1) + b2   # [tm]
        return logit.reshape(1, tm)                          # lane-dense row

    o_start_ref[...] = head(0, b2_ref[0]) - penalty
    o_end_ref[...] = head(h2, b2_ref[1]) - penalty


def fused_start_end(flat_x, flat_mask, p_start, p_end, *, tile_m=None):
    """Fused start & end heads.

    flat_x:    [M, D] f32 activations (M = B*L), streamed straight from HBM.
    flat_mask: [M] context mask (1 = valid, 0 = padding).
    Returns (masked_start_logits [M], masked_end_logits [M]) in f32.
    """
    M, D = flat_x.shape
    H2 = p_start["w1"].shape[1]
    # The fused kernel hard-codes num_answer == 1; fail loudly otherwise.
    assert p_start["w2"].shape == (H2, 1) and p_end["w2"].shape == (H2, 1), (
        "fused start/end kernel requires num_answer == 1")
    h2cat = 2 * H2

    if tile_m is None:
        tile_m = _select_tile_m(M, D, H2)
    num_tiles = pl.cdiv(M, tile_m)

    # Pack parameters once (tiny; in real use this would be pre-packed).
    w1_cat = jnp.concatenate(
        [p_start["w1"], p_end["w1"]], axis=1).astype(jnp.bfloat16)     # [D, 2*H2]
    vec = jnp.zeros((8, h2cat), jnp.float32)
    vec = vec.at[0].set(jnp.concatenate([p_start["b1"], p_end["b1"]]).astype(jnp.float32))
    vec = vec.at[1].set(jnp.concatenate([p_start["gamma"], p_end["gamma"]]).astype(jnp.float32))
    vec = vec.at[2].set(jnp.concatenate([p_start["beta"], p_end["beta"]]).astype(jnp.float32))
    vec = vec.at[3].set(jnp.concatenate(
        [p_start["w2"][:, 0], p_end["w2"][:, 0]]).astype(jnp.float32))
    b2 = jnp.stack([p_start["b2"][0], p_end["b2"][0]]).astype(jnp.float32)

    mask_row = flat_mask.reshape(1, M).astype(jnp.float32)

    kernel = functools.partial(_fused_start_end_kernel, h2=H2, eps=LN_EPS)

    # Grid-invariant residents: whole-array VMEM placement (single-buffered).
    resident_spec = pl.BlockSpec(memory_space=pltpu.MemorySpace.VMEM)
    smem_spec = pl.BlockSpec(memory_space=pltpu.MemorySpace.SMEM)
    row_spec = pl.BlockSpec((1, tile_m), lambda i: (0, i))   # lane-dense rows

    out_start, out_end = pl.pallas_call(
        kernel,
        out_shape=(jax.ShapeDtypeStruct((1, M), jnp.float32),
                   jax.ShapeDtypeStruct((1, M), jnp.float32)),
        grid_spec=pltpu.PrefetchScalarGridSpec(
            num_scalar_prefetch=0,
            grid=(num_tiles,),
            in_specs=[
                pl.BlockSpec((tile_m, D), lambda i: (i, 0)),  # streamed f32 x
                row_spec,                                     # mask row
                resident_spec,                                # fused W1 (bf16)
                resident_spec,                                # packed f32 vectors
                smem_spec,                                    # (b2_s, b2_e)
            ],
            out_specs=[row_spec, row_spec],
        ),
        compiler_params=pltpu.CompilerParams(
            dimension_semantics=("parallel",),
            vmem_limit_bytes=_vmem_limit_bytes(tile_m, D, h2cat)),
    )(flat_x.astype(jnp.float32), mask_row, w1_cat, vec, b2)

    return out_start[0], out_end[0]


# ------------------------------ plain-JAX pieces ----------------------------
def _output_layer_jax(x, p, *, eps=LN_EPS):
    """Plain-JAX OutputLayer (Linear -> ReLU -> BertLayerNorm -> Linear)."""
    h = jnp.maximum(x @ p["w1"] + p["b1"], 0.0)
    u = jnp.mean(h, axis=-1, keepdims=True)
    c = h - u
    s = jnp.mean(c * c, axis=-1, keepdims=True)
    ln = p["gamma"] * (c / jnp.sqrt(s + eps)) + p["beta"]
    return ln @ p["w2"] + p["b2"]


def _output_layer_ref_quant(x, p, *, eps=LN_EPS):
    """Reference mirroring the kernel numerics (bf16 matmul inputs)."""
    xq = x.astype(jnp.bfloat16).astype(jnp.float32)
    w1q = p["w1"].astype(jnp.bfloat16).astype(jnp.float32)
    h = jnp.maximum(xq @ w1q + p["b1"], 0.0)
    u = jnp.mean(h, axis=-1, keepdims=True)
    c = h - u
    s = jnp.mean(c * c, axis=-1, keepdims=True)
    ln = p["gamma"] * (c / jnp.sqrt(s + eps)) + p["beta"]
    return ln @ p["w2"] + p["b2"]


def cf_prediction_layer(context_input, context_mask, params, *, tile_m=None,
                        min_pallas_rows=256):
    """Forward pass of CFPredictionLayer (cls_states=None branch).

    context_input: [B, L, D] float32
    context_mask:  [B, L] float32 (1 = valid token, 0 = padding)
    params: dict with 'start', 'end', 'type' OutputLayer parameter dicts.
    Returns (start_prediction [B, L], end_prediction [B, L],
             type_prediction [B, 4]).
    """
    B, L, D = context_input.shape
    M = B * L
    flat = context_input.reshape(M, D)

    if tile_m is None and M < min_pallas_rows:
        # TODO(synk): benchmark the exact crossover; at a couple of tiles the
        # pallas_call is pure launch/pipeline-prime overhead, hand it to XLA.
        penalty = NEG_INF_PENALTY * (1.0 - context_mask)
        start_prediction = (_output_layer_jax(flat, params["start"])
                            .reshape(B, L) - penalty)
        end_prediction = (_output_layer_jax(flat, params["end"])
                          .reshape(B, L) - penalty)
    else:
        flat_mask = context_mask.reshape(M)
        s_flat, e_flat = fused_start_end(
            flat, flat_mask, params["start"], params["end"], tile_m=tile_m)
        start_prediction = s_flat.reshape(B, L)
        end_prediction = e_flat.reshape(B, L)

    # Type head: only B (CLS) rows -> a dedicated pallas_call is pure launch
    # overhead; hand it to XLA.
    type_prediction = _output_layer_jax(context_input[:, 0, :], params["type"])
    return start_prediction, end_prediction, type_prediction


# ------------------------------ test harness --------------------------------
def _make_output_layer_params(key, input_dim, num_answer):
    k1, k2, k3, k4 = jax.random.split(key, 4)
    hidden2 = input_dim * 2
    scale1 = 1.0 / jnp.sqrt(jnp.float32(input_dim))
    scale2 = 1.0 / jnp.sqrt(jnp.float32(hidden2))
    return {
        "w1": jax.random.normal(k1, (input_dim, hidden2), jnp.float32) * scale1,
        "b1": jax.random.normal(k2, (hidden2,), jnp.float32) * 0.01,
        "gamma": jnp.ones((hidden2,), jnp.float32),
        "beta": jnp.zeros((hidden2,), jnp.float32),
        "w2": jax.random.normal(k3, (hidden2, num_answer), jnp.float32) * scale2,
        "b2": jax.random.normal(k4, (num_answer,), jnp.float32) * 0.01,
    }


if __name__ == "__main__":
    key = jax.random.PRNGKey(0)
    B, L, D = 2, 256, 32   # config.input_dim = 32

    k_x, k_s, k_e, k_t = jax.random.split(key, 4)
    context_input = jax.random.normal(k_x, (B, L, D), jnp.float32)

    # context_mask: first example fully valid, second has 37 padded positions.
    lengths = jnp.array([L, L - 37], dtype=jnp.int32)
    context_mask = (jnp.arange(L)[None, :] < lengths[:, None]).astype(jnp.float32)

    params = {
        "start": _make_output_layer_params(k_s, D, 1),
        "end": _make_output_layer_params(k_e, D, 1),
        "type": _make_output_layer_params(k_t, D, 4),
    }

    fwd = jax.jit(cf_prediction_layer)
    start_pred, end_pred, type_pred = fwd(context_input, context_mask, params)
    jax.block_until_ready((start_pred, end_pred, type_pred))

    assert start_pred.shape == (B, L)
    assert end_pred.shape == (B, L)
    assert type_pred.shape == (B, 4)

    flat = context_input.reshape(B * L, D)
    penalty = NEG_INF_PENALTY * (1.0 - context_mask)

    # Tight check vs. a reference that mirrors the kernel numerics
    # (bf16 matmul inputs, f32 everything else).
    ref_start_q = (_output_layer_ref_quant(flat, params["start"]).reshape(B, L)
                   - penalty)
    ref_end_q = (_output_layer_ref_quant(flat, params["end"]).reshape(B, L)
                 - penalty)
    assert jnp.allclose(start_pred, ref_start_q, rtol=1e-3, atol=2e-3)
    assert jnp.allclose(end_pred, ref_end_q, rtol=1e-3, atol=2e-3)

    # Loose check vs. the full-f32 module reference (bf16 matmul inputs add
    # ~1e-2 absolute error at these magnitudes).
    ref_start = _output_layer_jax(flat, params["start"]).reshape(B, L) - penalty
    ref_end = _output_layer_jax(flat, params["end"]).reshape(B, L) - penalty
    ref_type = _output_layer_jax(context_input[:, 0, :], params["type"])
    assert jnp.allclose(start_pred, ref_start, rtol=1e-1, atol=1e-1)
    assert jnp.allclose(end_pred, ref_end, rtol=1e-1, atol=1e-1)
    assert jnp.allclose(type_pred, ref_type, rtol=1e-4, atol=1e-4)

    # Tiny-M configuration exercises the plain-JAX short-circuit path.
    Bs, Ls = 2, 16
    small_x = jax.random.normal(jax.random.PRNGKey(1), (Bs, Ls, D), jnp.float32)
    small_mask = jnp.ones((Bs, Ls), jnp.float32).at[1, Ls - 3:].set(0.0)
    s2, e2, t2 = jax.jit(cf_prediction_layer)(small_x, small_mask, params)
    jax.block_until_ready((s2, e2, t2))
    flat2 = small_x.reshape(Bs * Ls, D)
    pen2 = NEG_INF_PENALTY * (1.0 - small_mask)
    assert jnp.allclose(
        s2, _output_layer_jax(flat2, params["start"]).reshape(Bs, Ls) - pen2,
        rtol=1e-4, atol=1e-4)
    assert jnp.allclose(
        e2, _output_layer_jax(flat2, params["end"]).reshape(Bs, Ls) - pen2,
        rtol=1e-4, atol=1e-4)

    print("KERNEL_OK")
</pallas_src>

<mosaic_0001>
module attributes {stable_mosaic.version = 11 : i64} {
  func.func @_fused_start_end_kernel(%arg0: i32, %arg1: memref<256x32xf32, #tpu.memory_space<vmem>>, %arg2: memref<1x256xf32, #tpu.memory_space<vmem>>, %arg3: memref<32x128xbf16, #tpu.memory_space<vmem>>, %arg4: memref<8x128xf32, #tpu.memory_space<vmem>>, %arg5: memref<2xf32, #tpu.memory_space<smem>>, %arg6: memref<1x256xf32, #tpu.memory_space<vmem>>, %arg7: memref<1x256xf32, #tpu.memory_space<vmem>>) attributes {dimension_semantics = [#tpu.dimension_semantics<parallel>], iteration_bounds = array<i64: 2>, scalar_prefetch = 0 : i64, scratch_operands = 0 : i64, tpu.core_type = #tpu.core_type<tc>, window_params = [{transform_indices = @transform_0, window_bounds = array<i64: 256, 32>}, {transform_indices = @transform_1, window_bounds = array<i64: 1, 256>}, {pipeline_mode = #tpu.pipeline_mode<synchronous>, transform_indices = @transform_2, window_bounds = array<i64: 32, 128>}, {pipeline_mode = #tpu.pipeline_mode<synchronous>, transform_indices = @transform_3, window_bounds = array<i64: 8, 128>}, {transform_indices = @transform_4, window_bounds = array<i64: 2>}, {transform_indices = @transform_5, window_bounds = array<i64: 1, 256>}, {transform_indices = @transform_6, window_bounds = array<i64: 1, 256>}]} {
    %c0 = arith.constant 0 : index
    %c0_0 = arith.constant 0 : index
    %0 = vector.load %arg1[%c0, %c0_0] : memref<256x32xf32, #tpu.memory_space<vmem>>, vector<256x32xf32>
    %1 = arith.truncf %0 : vector<256x32xf32> to vector<256x32xbf16>
    %c0_1 = arith.constant 0 : index
    %c0_2 = arith.constant 0 : index
    %2 = vector.load %arg2[%c0_1, %c0_2] : memref<1x256xf32, #tpu.memory_space<vmem>>, vector<1x256xf32>
    %cst = arith.constant 1.000000e+00 : f32
    %3 = vector.broadcast %cst : f32 to vector<1x256xf32>
    %4 = arith.subf %3, %2 : vector<1x256xf32>
    %cst_3 = arith.constant 1.000000e+30 : f32
    %5 = vector.broadcast %cst_3 : f32 to vector<1x256xf32>
    %6 = arith.mulf %5, %4 : vector<1x256xf32>
    %c0_4 = arith.constant 0 : index
    %c0_5 = arith.constant 0 : index
    %7 = vector.load %arg3[%c0_4, %c0_5] : memref<32x128xbf16, #tpu.memory_space<vmem>>, vector<32x128xbf16>
    %cst_6 = arith.constant dense<0.000000e+00> : vector<256x128xf32>
    %8 = tpu.matmul %1, %7, %cst_6 {dimension_numbers = #tpu.dot_dimension_numbers<[1], [0], [0], [1], [0, 0, 1, 1], [], []>} : vector<256x32xbf16>, vector<32x128xbf16>, vector<256x128xf32> -> vector<256x128xf32>
    %c0_7 = arith.constant 0 : index
    %c0_8 = arith.constant 0 : index
    %9 = vector.load %arg4[%c0_7, %c0_8] : memref<8x128xf32, #tpu.memory_space<vmem>>, vector<8x128xf32>
    %10 = vector.extract_strided_slice %9 {offsets = [0, 0], sizes = [1, 128], strides = [1, 1]} : vector<8x128xf32> to vector<1x128xf32>
    %11 = vector.extract_strided_slice %9 {offsets = [1, 0], sizes = [1, 128], strides = [1, 1]} : vector<8x128xf32> to vector<1x128xf32>
    %12 = vector.extract_strided_slice %9 {offsets = [2, 0], sizes = [1, 128], strides = [1, 1]} : vector<8x128xf32> to vector<1x128xf32>
    %13 = vector.extract_strided_slice %9 {offsets = [3, 0], sizes = [1, 128], strides = [1, 1]} : vector<8x128xf32> to vector<1x128xf32>
    %14 = vector.broadcast %10 : vector<1x128xf32> to vector<256x128xf32>
    %15 = arith.addf %8, %14 : vector<256x128xf32>
    %cst_9 = arith.constant 0.000000e+00 : f32
    %16 = vector.broadcast %cst_9 : f32 to vector<256x128xf32>
    %17 = arith.maximumf %15, %16 : vector<256x128xf32>
    %c0_10 = arith.constant 0 : index
    %18 = memref.load %arg5[%c0_10] : memref<2xf32, #tpu.memory_space<smem>>
    %19 = vector.extract_strided_slice %17 {offsets = [0, 0], sizes = [256, 64], strides = [1, 1]} : vector<256x128xf32> to vector<256x64xf32>
    %cst_11 = arith.constant dense<0.000000e+00> : vector<256xf32>
    %20 = vector.multi_reduction <add>, %19, %cst_11 [1] : vector<256x64xf32> to vector<256xf32>
    %21 = vector.shape_cast %20 : vector<256xf32> to vector<256x1xf32>
    %cst_12 = arith.constant 6.400000e+01 : f32
    %22 = vector.broadcast %cst_12 : f32 to vector<256x1xf32>
    %23 = arith.divf %21, %22 : vector<256x1xf32>
    %24 = vector.broadcast %23 : vector<256x1xf32> to vector<256x64xf32>
    %25 = arith.subf %19, %24 : vector<256x64xf32>
    %26 = arith.mulf %25, %25 : vector<256x64xf32>
    %cst_13 = arith.constant dense<0.000000e+00> : vector<256xf32>
    %27 = vector.multi_reduction <add>, %26, %cst_13 [1] : vector<256x64xf32> to vector<256xf32>
    %28 = vector.shape_cast %27 : vector<256xf32> to vector<256x1xf32>
    %cst_14 = arith.constant 6.400000e+01 : f32
    %29 = vector.broadcast %cst_14 : f32 to vector<256x1xf32>
    %30 = arith.divf %28, %29 : vector<256x1xf32>
    %31 = vector.extract_strided_slice %11 {offsets = [0, 0], sizes = [1, 64], strides = [1, 1]} : vector<1x128xf32> to vector<1x64xf32>
    %cst_15 = arith.constant 9.99999996E-13 : f32
    %32 = vector.broadcast %cst_15 : f32 to vector<256x1xf32>
    %33 = arith.addf %30, %32 : vector<256x1xf32>
    %34 = math.rsqrt %33 : vector<256x1xf32>
    %35 = vector.broadcast %34 : vector<256x1xf32> to vector<256x64xf32>
    %36 = arith.mulf %25, %35 : vector<256x64xf32>
    %37 = vector.broadcast %31 : vector<1x64xf32> to vector<256x64xf32>
    %38 = arith.mulf %37, %36 : vector<256x64xf32>
    %39 = vector.extract_strided_slice %12 {offsets = [0, 0], sizes = [1, 64], strides = [1, 1]} : vector<1x128xf32> to vector<1x64xf32>
    %40 = vector.broadcast %39 : vector<1x64xf32> to vector<256x64xf32>
    %41 = arith.addf %38, %40 : vector<256x64xf32>
    %42 = vector.extract_strided_slice %13 {offsets = [0, 0], sizes = [1, 64], strides = [1, 1]} : vector<1x128xf32> to vector<1x64xf32>
    %43 = vector.broadcast %42 : vector<1x64xf32> to vector<256x64xf32>
    %44 = arith.mulf %41, %43 : vector<256x64xf32>
    %cst_16 = arith.constant dense<0.000000e+00> : vector<256xf32>
    %45 = vector.multi_reduction <add>, %44, %cst_16 [1] : vector<256x64xf32> to vector<256xf32>
    %46 = vector.broadcast %18 : f32 to vector<256xf32>
    %47 = arith.addf %45, %46 : vector<256xf32>
    %48 = vector.shape_cast %47 : vector<256xf32> to vector<1x256xf32>
    %49 = arith.subf %48, %6 : vector<1x256xf32>
    %c0_17 = arith.constant 0 : index
    %c0_18 = arith.constant 0 : index
    %50 = vector.load %arg6[%c0_17, %c0_18] : memref<1x256xf32, #tpu.memory_space<vmem>>, vector<1x256xf32>
    tpu.vector_store %arg6[%c0_17, %c0_18], %49 {strides = array<i32>} : memref<1x256xf32, #tpu.memory_space<vmem>>, vector<1x256xf32>,
    %c1 = arith.constant 1 : index
    %51 = memref.load %arg5[%c1] : memref<2xf32, #tpu.memory_space<smem>>
    %52 = vector.extract_strided_slice %17 {offsets = [0, 64], sizes = [256, 64], strides = [1, 1]} : vector<256x128xf32> to vector<256x64xf32>
    %cst_19 = arith.constant dense<0.000000e+00> : vector<256xf32>
    %53 = vector.multi_reduction <add>, %52, %cst_19 [1] : vector<256x64xf32> to vector<256xf32>
    %54 = vector.shape_cast %53 : vector<256xf32> to vector<256x1xf32>
    %cst_20 = arith.constant 6.400000e+01 : f32
    %55 = vector.broadcast %cst_20 : f32 to vector<256x1xf32>
    %56 = arith.divf %54, %55 : vector<256x1xf32>
    %57 = vector.broadcast %56 : vector<256x1xf32> to vector<256x64xf32>
    %58 = arith.subf %52, %57 : vector<256x64xf32>
    %59 = arith.mulf %58, %58 : vector<256x64xf32>
    %cst_21 = arith.constant dense<0.000000e+00> : vector<256xf32>
    %60 = vector.multi_reduction <add>, %59, %cst_21 [1] : vector<256x64xf32> to vector<256xf32>
    %61 = vector.shape_cast %60 : vector<256xf32> to vector<256x1xf32>
    %cst_22 = arith.constant 6.400000e+01 : f32
    %62 = vector.broadcast %cst_22 : f32 to vector<256x1xf32>
    %63 = arith.divf %61, %62 : vector<256x1xf32>
    %64 = vector.extract_strided_slice %11 {offsets = [0, 64], sizes = [1, 64], strides = [1, 1]} : vector<1x128xf32> to vector<1x64xf32>
    %cst_23 = arith.constant 9.99999996E-13 : f32
    %65 = vector.broadcast %cst_23 : f32 to vector<256x1xf32>
    %66 = arith.addf %63, %65 : vector<256x1xf32>
    %67 = math.rsqrt %66 : vector<256x1xf32>
    %68 = vector.broadcast %67 : vector<256x1xf32> to vector<256x64xf32>
    %69 = arith.mulf %58, %68 : vector<256x64xf32>
    %70 = vector.broadcast %64 : vector<1x64xf32> to vector<256x64xf32>
    %71 = arith.mulf %70, %69 : vector<256x64xf32>
    %72 = vector.extract_strided_slice %12 {offsets = [0, 64], sizes = [1, 64], strides = [1, 1]} : vector<1x128xf32> to vector<1x64xf32>
    %73 = vector.broadcast %72 : vector<1x64xf32> to vector<256x64xf32>
    %74 = arith.addf %71, %73 : vector<256x64xf32>
    %75 = vector.extract_strided_slice %13 {offsets = [0, 64], sizes = [1, 64], strides = [1, 1]} : vector<1x128xf32> to vector<1x64xf32>
    %76 = vector.broadcast %75 : vector<1x64xf32> to vector<256x64xf32>
    %77 = arith.mulf %74, %76 : vector<256x64xf32>
    %cst_24 = arith.constant dense<0.000000e+00> : vector<256xf32>
    %78 = vector.multi_reduction <add>, %77, %cst_24 [1] : vector<256x64xf32> to vector<256xf32>
    %79 = vector.broadcast %51 : f32 to vector<256xf32>
    %80 = arith.addf %78, %79 : vector<256xf32>
    %81 = vector.shape_cast %80 : vector<256xf32> to vector<1x256xf32>
    %82 = arith.subf %81, %6 : vector<1x256xf32>
    %c0_25 = arith.constant 0 : index
    %c0_26 = arith.constant 0 : index
    %83 = vector.load %arg7[%c0_25, %c0_26] : memref<1x256xf32, #tpu.memory_space<vmem>>, vector<1x256xf32>
    tpu.vector_store %arg7[%c0_25, %c0_26], %82 {strides = array<i32>} : memref<1x256xf32, #tpu.memory_space<vmem>>, vector<1x256xf32>,
    return
  }
  func.func @transform_0(%arg0: i32) -> (i32, i32) {
    %c0_i32 = arith.constant 0 : i32
    %c0_i32_0 = arith.constant 0 : i32
    return %arg0, %c0_i32 : i32, i32
  }
  func.func @transform_1(%arg0: i32) -> (i32, i32) {
    %c0_i32 = arith.constant 0 : i32
    %c0_i32_0 = arith.constant 0 : i32
    return %c0_i32, %arg0 : i32, i32
  }
  func.func @transform_2(%arg0: i32) -> (i32, i32) {
    %c0_i32 = arith.constant 0 : i32
    %c0_i32_0 = arith.constant 0 : i32
    %c0_i32_1 = arith.constant 0 : i32
    return %c0_i32, %c0_i32_0 : i32, i32
  }
  func.func @transform_3(%arg0: i32) -> (i32, i32) {
    %c0_i32 = arith.constant 0 : i32
    %c0_i32_0 = arith.constant 0 : i32
    %c0_i32_1 = arith.constant 0 : i32
    return %c0_i32, %c0_i32_0 : i32, i32
  }
  func.func @transform_4(%arg0: i32) -> i32 {
    %c0_i32 = arith.constant 0 : i32
    %c0_i32_0 = arith.constant 0 : i32
    return %c0_i32 : i32
  }
  func.func @transform_5(%arg0: i32) -> (i32, i32) {
    %c0_i32 = arith.constant 0 : i32
    %c0_i32_0 = arith.constant 0 : i32
    return %c0_i32, %arg0 : i32, i32
  }
  func.func @transform_6(%arg0: i32) -> (i32, i32) {
    %c0_i32 = arith.constant 0 : i32
    %c0_i32_0 = arith.constant 0 : i32
    return %c0_i32, %arg0 : i32, i32
  }
}

</mosaic_0001>

<bundles_post_ra>
// kernel: squeeze.8
= control target key start
LH: loop header
LB: loop body
LE: loop exit
PB: predicated region body
PF: predicated region fallthrough
CT: control target
= control target key end

     0   :  { %2 = vsyncpa [#allocation1], 0  ;;  %s83_s0 = inlined_call_operand.vmem [shape: f32[512], index: 0, kind: input, shape index: {}]   ;;  %s84_s1 = inlined_call_operand.hbm [shape: f32[2,256], index: 1, kind: output, shape index: {}]  }
   0x1   :  { %v5_v0 = vld [vmem:[%s83_s0] sm:$0xf]  ;;  %s57_s0 = smov [#allocation0]  }
   0x2   :  { %6 = vst [vmem:[#allocation3] sm:$0xf] %v5_v0  ;;  %s26_s8 = sshll.u32 %s57_s0, 4  ;;  %s27_s8 = int_to_ptr.vmem [resolvable:$true] %s26_s8 }
   0x3   :  { %s33_s9 = scalar_lea.vmem %s27_s8, 64  ;;  %p38_p1 = scmp.lt.s32.totalorder %s27_s8, %s27_s8 }
   0x4   :  { %p34_p0 = scmp.ne.s32.totalorder %s27_s8, %s33_s9  ;;  %p39_p2 = scmp.lt.s32.totalorder %s33_s9, %s33_s9 }
   0x6   :  { %p40_p3 = por %p39_p2, %p38_p1 }
   0x8   :  { %p41_p4 = pnand %p40_p3, %p34_p0 }
   0x9   :  { %v7_v1 = vld [vmem:[#allocation3] sm:$0xf]  }
   0xa   :  { %8 = vst [vmem:[#allocation2] ss:$8 sm:$0x3] %v7_v1   ;;  %10 = vst [vmem:[#allocation2 - $0xf] ss:$8 sm:$0xc] %v7_v1  }
  0x11   :  { %v14_v2 = vld [vmem:[#allocation2] sm:$0x3]  ;;  %v18_v3 = vld [vmem:[#allocation2 + $0x8] sm:$0x3] }
  0x12   :  { %16 = vst [vmem:[#allocation0] sm:$0x3] %v14_v2  ;;  %21 = vst [vmem:[#allocation0 + $0x2] sm:$0x3] %v18_v3 }
  0x13   :  { %44 = shalt.err (!%p41_p4)
}
  0x14   :  { %s45_s12 = scalar_lea.hbm %s84_s1, 64 }
  0x15   :  { %p46_p5 = scmp.ne.s32.totalorder %s84_s1, %s45_s12  ;;  %p49_p6 = scmp.lt.u32.totalorder %s45_s12, %s84_s1 }
  0x17   :  { %p51_p7 = pnand %p49_p6, %p46_p5 }
  0x19   :  { %54 = shalt.err (!%p51_p7)
}
  0x1a   :  { %29 = dma.vmem_to_hbm [thread:$0]  %s27_s8, 64, %s84_s1, [#allocation1]  }
  0x1b   :  { %55 = dma.done.wait [#allocation1], 64  }
  0x1c   :  { %56 = vsyncadd [#allocation1], 4294967232 }
  0x1d   :  { %31 = vsyncpa [#allocation1], 1 }

// kernel: cf_prediction_layer.1
= control target key start
LH: loop header
LB: loop body
LE: loop exit
PB: predicated region body
PF: predicated region fallthrough
CT: control target
= control target key end

     0   :  { %12 = vsyncpa [#allocation3], 0  ;;  %s9979_s21 = smov 0   ;;  %s13575_s0 = inlined_call_operand.vmem [shape: f32[512,32], index: 0, kind: input, shape index: {}]   ;;  %s13576_s1 = inlined_call_operand.vmem [shape: f32[1,512], index: 1, kind: input, shape index: {}]   ;;  %s13577_s2 = inlined_call_operand.vmem [shape: bf16[32,128], index: 2, kind: input, shape index: {}]   ;;  %s13578_s3 = inlined_call_operand.vmem [shape: f32[8,128], index: 3, kind: input, shape index: {}]   ;;  %s13579_s4 = inlined_call_operand.vmem [shape: f32[2], index: 4, kind: input, shape index: {}]   ;;  %s13580_s5 = inlined_call_operand.vmem [shape: f32[1,512], index: 5, kind: output, shape index: {0}]   ;;  %s13581_s6 = inlined_call_operand.vmem [shape: f32[1,512], index: 6, kind: output, shape index: {1}]  }
   0x1 LB: > { %s9985_s22 = sadd.s32 4294967295, %s9938_s21   ;;  %p9541_p0 = scmp.ge.s32.totalorder %s9938_s21, 1  ;;  %s9938_s21 = sphi %s9979_s21, %s18_s21  }
   0x2   : > { %p190_p1 = scmp.lt.s32.totalorder %s9938_s21, 3  ;;  %s209_s25 = sshll.u32 %s13579_s4, 4  ;;  %s210_s25 = int_to_ptr.vmem [resolvable:$true] %s209_s25 }
   0x3   : > { %p9766_p3 = scmp.eq.s32.totalorder %s9985_s22, 0  ;;  %s9913_s27 = scalar_lea.vmem %s210_s25, 16 }
   0x4   : > { %p9992_p2 = pnand %p9541_p0, %p190_p1  ;;  %p9914_p6 = scmp.ne.s32.totalorder %s210_s25, %s9913_s27 }
   0x5   : > { %p9921_p10 = scmp.lt.s32.totalorder %s210_s25, %s210_s25  ;;  %p9922_p11 = scmp.lt.s32.totalorder %s9913_s27, %s9913_s27 }
   0x6   : > { %p9762_p4 = pneg %p9992_p2 }
   0x7   : > { %p9923_p12 = por %p9922_p11, %p9921_p10 }
   0x8   : > { %p9763_p5 = pnand %p9766_p3, %p9762_p4 }
   0xa   : > { %p9915_p7 = pneg %p9763_p5 }
   0xc   : > { %p9916_p8 = pnand %p9915_p7, %p9914_p6 }
   0xe   : > { %p9917_p9 = pneg %p9916_p8 }
  0x10   : > { %p9924_p13 = pnand %p9923_p12, %p9917_p9 }
  0x12   : > { %9927 = shalt.err (!%p9924_p13)
}
  0x13   : > { %s9940_s28 = smov [#allocation2]   ;;  %239 = sbr.rel (%p9992_p2) target bundleno = 1796 (0x704), region = 40 }
  0x14   : > { %9765 = dma.vmem_to_smem (!%p9763_p5), %s210_s25, 16, %s9940_s28, [#allocation3]  }
  0x1a   : > { %9933 = dma.done.wait (%p9766_p3), [#allocation3], 16  }
  0x1b   : > { %9935 = vsyncadd (%p9766_p3), [#allocation3], 4294967280 }
  0x1c   : > { %245 = sfence }
  0x1d   : > { %v9782_v0 = vld [vmem:[%s13577_s2] sm:$0xff]   ;;  %s9546_s7 = sshll.u32 %s9985_s22, 5  ;;  %v9783_v1 = vld [vmem:[%s13577_s2 + $0x8] sm:$0xff]   ;;  %s9548_s10 = sshll.u32 %s9985_s22, 1  ;;  %v13582_v2 = vlaneseq  ;;  %vm371_vm0 = vcmask 261120   ;;  %vm614_vm1 = vcmask 523264  }
  0x1e   : > { %p278_p0 = scmp.lt.s32.totalorder %s9546_s7, 63  ;;  %9718 = vmatprep.subr.bf16.mxu0 %v9782_v0  ;;  %9754 = vmatprep.subr.bf16.mxu1 %v9782_v0  ;;  %p284_p1 = scmp.lt.s32.totalorder %s9548_s10, 3  ;;  %v354_v59 = vld [vmem:[%s13578_s3] sm:$0xff]  ;;  %vm4743_vm2 = vcmask 130112   ;;  %vm4750_vm3 = vcmask 195712   ;;  %vm4757_vm4 = vcmask 261312  }
  0x1f   : > { %9719 = vmatpush3.bf16.msra.mxu0 %v9782_v0  ;;  %9756 = vmatpush3.bf16.msra.mxu1 %v9782_v0  ;;  %v10036_v15 = vshrl.u32 %v13582_v2, 7  ;;  %s9941_s20 = smov 64   ;;  %s613_s24 = sld [smem:[#allocation2]]  ;;  %vm4764_vm5 = vcmask 326912   ;;  %vm4771_vm6 = vcmask 392512   ;;  %vm4778_vm7 = vcmask 458112  }
  0x20   : > { %s14039_s7 = smov (!%p278_p0, %s9546_s7), 63  ;;  %9720 = vmatprep.subr.bf16.mxu0 %v9783_v1  ;;  %9755 = vmatprep.subr.bf16.mxu1 %v9783_v1  ;;  %s14041_s10 = smov (!%p284_p1, %s9548_s10), 3  ;;  %vm4785_vm8 = vcmask 523712   ;;  %vm4792_vm9 = vcmask 589312   ;;  %vm4799_vm10 = vcmask 654912   ;;  %vm4806_vm11 = vcmask 720512  }
  0x21   : > { %s9547_s11 = sshll.u32 %s14039_s7, 3  ;;  %s286_s17 = scalar_lea.vmem %s13576_s1, %s14041_s10  ;;  %13724 = vst [vmem:[#allocation5_spill] sm:$0xff] %v10036_v15  ;;  %v357_v28 = vsub.s32 0, %v10036_v15  ;;  %v13584_v45 = vsub.s32 1, %v10036_v15  ;;  %vm4813_vm12 = vcmask 786112   ;;  %vm4820_vm13 = vcmask 851712  }
  0x22   : > { %s10018_s14 = scalar_lea.vmem %s13575_s0, %s9547_s11  ;;  %v347_v24 = vld [vmem:[%s286_s17] sm:$0x3]  ;;  %s9633_s25 = sld [smem:[#allocation2 + $0x1]]  ;;  %vm4827_vm14 = vcmask 917312   ;;  %vm4834_vm15 = vcmask 982912  }
  0x23   : > { %9721 = vmatpush3.bf16.msra.mxu0 %v9783_v1  ;;  %9757 = vmatpush3.bf16.msra.mxu1 %v9783_v1  ;;  %v299_v3 = vld [vmem:[%s10018_s14] sm:$0xff]  ;;  %v300_v4 = vld [vmem:[%s10018_s14 + $0x8] sm:$0xff]  ;;  %v301_v8 = vld [vmem:[%s10018_s14 + $0x10] sm:$0xff]  ;;  %v348_v27 = vsub.f32 1.0, %v347_v24  ;;  %v10088_v60 = vrot.slane %v354_v59, %v357_v28  ;;  %s291_s28 = scalar_lea.vmem %s13580_s5, %s14041_s10  ;;  %s296_s7 = scalar_lea.vmem %s13581_s6, %s14041_s10 }
  0x24   : > { %v315_v5 = vld [vmem:[%s10018_s14 + $0x80] sm:$0xff]  ;;  %v331_v6 = vpack.c.bf16 %v300_v4, %v299_v3  ;;  %v316_v7 = vld [vmem:[%s10018_s14 + $0x88] sm:$0xff]  ;;  %v302_v9 = vld [vmem:[%s10018_s14 + $0x18] sm:$0xff] }
  0x25   : > { %v339_v10 = vpack.c.bf16 %v316_v7, %v315_v5  ;;  %v332_v11 = vpack.c.bf16 %v302_v9, %v301_v8  ;;  %v317_v12 = vld [vmem:[%s10018_s14 + $0x90] sm:$0xff]  ;;  %v318_v13 = vld [vmem:[%s10018_s14 + $0x98] sm:$0xff]  ;;  %v303_v14 = vld [vmem:[%s10018_s14 + $0x20] sm:$0xff]  ;;  %v349_v34 = vmul.f32 1e+30, %v348_v27 }
  0x26   : > { %9722 = vmatprep.mubr.msk.bf16.mxu0 %vm371_vm0, %v331_v6  ;;  %v340_v16 = vpack.c.bf16 %v318_v13, %v317_v12  ;;  %v304_v17 = vld [vmem:[%s10018_s14 + $0x28] sm:$0xff]  ;;  %v319_v19 = vld [vmem:[%s10018_s14 + $0xa0] sm:$0xff]  ;;  %v305_v21 = vld [vmem:[%s10018_s14 + $0x30] sm:$0xff] }
  0x27   : > { %9738 = vmatprep.mubr.msk.bf16.mxu1 %vm371_vm0, %v339_v10  ;;  %9723 = vmatmul.mubr.msk.bf16.vlgmr.msra.gmra.mrb[0].mxu0 %vm371_vm0, %v332_v11  ;;  %v333_v18 = vpack.c.bf16 %v304_v17, %v303_v14  ;;  %v320_v20 = vld [vmem:[%s10018_s14 + $0xa8] sm:$0xff]  ;;  %v306_v22 = vld [vmem:[%s10018_s14 + $0x38] sm:$0xff]  ;;  %v321_v25 = vld [vmem:[%s10018_s14 + $0xb0] sm:$0xff]  ;;  %v1273_v36 = vrot.slane %v349_v34, %v357_v28  ;;  %v1277_v46 = vrot.slane %v349_v34, %v13584_v45 }
  0x28   : > { %9739 = vmatmul.mubr.msk.bf16.vlgmr.msra.gmra.mrb[0].mxu1 %vm371_vm0, %v340_v16  ;;  %v341_v23 = vpack.c.bf16 %v320_v20, %v319_v19  ;;  %v322_v26 = vld [vmem:[%s10018_s14 + $0xb8] sm:$0xff]  ;;  %v307_v29 = vld [vmem:[%s10018_s14 + $0x40] sm:$0xff]  ;;  %v308_v30 = vld [vmem:[%s10018_s14 + $0x48] sm:$0xff]  ;;  %v334_v33 = vpack.c.bf16 %v306_v22, %v305_v21 }
  0x29   : > { %9726 = vmatprep.mubr.msk.bf16.mxu0 %vm371_vm0, %v333_v18  ;;  %v323_v31 = vld [vmem:[%s10018_s14 + $0xc0] sm:$0xff]  ;;  %v324_v32 = vld [vmem:[%s10018_s14 + $0xc8] sm:$0xff]  ;;  %v342_v35 = vpack.c.bf16 %v322_v26, %v321_v25  ;;  %v335_v37 = vpack.c.bf16 %v308_v30, %v307_v29  ;;  %1279 = vbcast.lane.b32.xlu0 %v1273_v36, 256  ;;  %v309_v39 = vld [vmem:[%s10018_s14 + $0x50] sm:$0xff] }
  0x2a   : > { %9742 = vmatprep.mubr.msk.bf16.mxu1 %vm371_vm0, %v341_v23  ;;  %v343_v38 = vpack.c.bf16 %v324_v32, %v323_v31  ;;  %1283 = vbcast.lane.b32.xlu1 %v1273_v36, 264  ;;  %v310_v40 = vld [vmem:[%s10018_s14 + $0x58] sm:$0xff]  ;;  %v325_v41 = vld [vmem:[%s10018_s14 + $0xd0] sm:$0xff]  ;;  %v311_v47 = vld [vmem:[%s10018_s14 + $0x60] sm:$0xff] }
  0x2b   : > { %v326_v42 = vld [vmem:[%s10018_s14 + $0xd8] sm:$0xff]  ;;  %v336_v43 = vpack.c.bf16 %v310_v40, %v309_v39  ;;  %v312_v48 = vld [vmem:[%s10018_s14 + $0x68] sm:$0xff]  ;;  %v313_v49 = vld [vmem:[%s10018_s14 + $0x70] sm:$0xff] }
  0x2c   : > { %v344_v44 = vpack.c.bf16 %v326_v42, %v325_v41  ;;  %v337_v50 = vpack.c.bf16 %v312_v48, %v311_v47  ;;  %v314_v51 = vld [vmem:[%s10018_s14 + $0x78] sm:$0xff]  ;;  %v327_v52 = vld [vmem:[%s10018_s14 + $0xe0] sm:$0xff]  ;;  %v328_v53 = vld [vmem:[%s10018_s14 + $0xe8] sm:$0xff] }
  0x2d   : > { %1295 = vbcast.lane.b32.xlu0 %v1273_v36, 288  ;;  %v338_v54 = vpack.c.bf16 %v314_v51, %v313_v49  ;;  %v345_v55 = vpack.c.bf16 %v328_v53, %v327_v52  ;;  %v329_v56 = vld [vmem:[%s10018_s14 + $0xf0] sm:$0xff]  ;;  %v330_v57 = vld [vmem:[%s10018_s14 + $0xf8] sm:$0xff] }
  0x2e   : > { %1287 = vbcast.lane.b32.xlu1 %v1273_v36, 272  ;;  %v346_v58 = vpack.c.bf16 %v330_v57, %v329_v56 }
  0x2f   : > { %9727 = vmatmul.mubr.msk.bf16.gmra.mrb[4].mxu0 %vm371_vm0, %v334_v33 }
  0x30   : > { %9743 = vmatmul.mubr.msk.bf16.gmra.mrb[4].mxu1 %vm371_vm0, %v342_v35  ;;  %9730 = vmatprep.mubr.msk.bf16.mxu0 %vm371_vm0, %v335_v37 }
  0x31   : > { %9746 = vmatprep.mubr.msk.bf16.mxu1 %vm371_vm0, %v343_v38  ;;  %1303 = vbcast.lane.b32.xlu0 %v1273_v36, 304 }
  0x32   : > { %1291 = vbcast.lane.b32.xlu1 %v1273_v36, 280 }
  0x35   : > { %1311 = vbcast.lane.b32.xlu0 %v1273_v36, 320 }
  0x36   : > { %1299 = vbcast.lane.b32.xlu1 %v1273_v36, 296 }
  0x37   : > { %9731 = vmatmul.mubr.msk.bf16.gmra.mrb[8].mxu0 %vm371_vm0, %v336_v43 }
  0x38   : > { %9747 = vmatmul.mubr.msk.bf16.gmra.mrb[8].mxu1 %vm371_vm0, %v344_v44  ;;  %9734 = vmatprep.mubr.msk.bf16.mxu0 %vm371_vm0, %v337_v50 }
  0x39   : > { %1319 = vbcast.lane.b32.xlu0 %v1273_v36, 336  ;;  %9750 = vmatprep.mubr.msk.bf16.mxu1 %vm371_vm0, %v345_v55 }
  0x3a   : > { %1307 = vbcast.lane.b32.xlu1 %v1273_v36, 312 }
  0x3d   : > { %1327 = vbcast.lane.b32.xlu0 %v1273_v36, 352 }
  0x3e   : > { %1315 = vbcast.lane.b32.xlu1 %v1273_v36, 328 }
  0x3f   : > { %9735 = vmatmul.mubr.msk.bf16.gmra.mrb[12].mxu0 %vm371_vm0, %v338_v54 }
  0x40   : > { %9751 = vmatmul.mubr.msk.bf16.gmra.mrb[12].mxu1 %vm371_vm0, %v346_v58  ;;  %vm4841_vm0 = vcmask 1048512  }
  0x41   : > { %1335 = vbcast.lane.b32.xlu0 %v1273_v36, 368 }
  0x42   : > { %1323 = vbcast.lane.b32.xlu1 %v1273_v36, 344 }
  0x45   : > { %1342 = vbcast.lane.b32.xlu0 %v1277_v46, 256 }
  0x46   : > { %1331 = vbcast.lane.b32.xlu1 %v1273_v36, 360 }
  0x49   : > { %1350 = vbcast.lane.b32.xlu0 %v1277_v46, 272 }
  0x4a   : > { %1339 = vbcast.lane.b32.xlu1 %v1273_v36, 376 }
  0x4d   : > { %1358 = vbcast.lane.b32.xlu0 %v1277_v46, 288 }
  0x4e   : > { %1346 = vbcast.lane.b32.xlu1 %v1277_v46, 264 }
  0x51   : > { %1366 = vbcast.lane.b32.xlu0 %v1277_v46, 304 }
  0x52   : > { %1354 = vbcast.lane.b32.xlu1 %v1277_v46, 280 }
  0x55   : > { %1374 = vbcast.lane.b32.xlu0 %v1277_v46, 320 }
  0x56   : > { %1362 = vbcast.lane.b32.xlu1 %v1277_v46, 296 }
  0x59   : > { %1382 = vbcast.lane.b32.xlu0 %v1277_v46, 336 }
  0x5a   : > { %1370 = vbcast.lane.b32.xlu1 %v1277_v46, 312 }
  0x5d   : > { %1390 = vbcast.lane.b32.xlu0 %v1277_v46, 352 }
  0x5e   : > { %1378 = vbcast.lane.b32.xlu1 %v1277_v46, 328 }
  0x61   : > { %1398 = vbcast.lane.b32.xlu0 %v1277_v46, 368 }
  0x62   : > { %1386 = vbcast.lane.b32.xlu1 %v1277_v46, 344 }
  0x66   : > { %1394 = vbcast.lane.b32.xlu1 %v1277_v46, 360 }
  0x6a   : > { %1402 = vbcast.lane.b32.xlu1 %v1277_v46, 376 }
  0xfa   : > { %v9724_v61 = vpop.f32.mrb[0].mxu0 }
  0xfb   : > { %v463_v62 = vadd.f32 %v9724_v61, %v10088_v60  ;;  %v9740_v63 = vpop.f32.mrb[0].mxu1  ;;  %v454_v0 = vpop.f32.mrb[1].mxu0 }
  0xfc   : > { %v527_v1 = vadd.f32 %v9740_v63, %v10088_v60  ;;  %v455_v3 = vadd.f32 %v454_v0, %v10088_v60  ;;  %v9725_v4 = vpop.f32.mrb[2].mxu0  ;;  %v518_v5 = vpop.f32.mrb[1].mxu1 }
  0xfd   : > { %v10093_v6 = vmax.f32 %v463_v62, 0.0  ;;  %v457_v7 = vpop.f32.mrb[3].mxu0  ;;  %v9741_v8 = vpop.f32.mrb[2].mxu1  ;;  %v519_v12 = vadd.f32 %v518_v5, %v10088_v60  ;;  %v466_v27 = vadd.f32 %v9725_v4, %v10088_v60 }
  0xfe   : > { %v10095_v9 = vmax.f32 %v527_v1, 0.0  ;;  %v521_v10 = vpop.f32.mrb[3].mxu1  ;;  %v10099_v11 = vmax.f32 %v455_v3, 0.0  ;;  %v530_v31 = vadd.f32 %v9741_v8, %v10088_v60  ;;  %v458_v35 = vadd.f32 %v457_v7, %v10088_v60 }
  0xff   : > { %4980 = vrot.lane.b32.xlu1 %v10093_v6, %s9941_s20  ;;  %v10106_v18 = vmax.f32 %v519_v12, 0.0  ;;  %v10123_v30 = vmax.f32 %v466_v27, 0.0  ;;  %v522_v40 = vadd.f32 %v521_v10, %v10088_v60  ;;  %v621_v41 = vsel %vm614_vm1, %v10093_v6, 0.0 }
 0x100   : > { %13725 = vst [vmem:[#allocation6_spill] sm:$0xff] %v10095_v9  ;;  %v669_v13 = vsel %vm614_vm1, %v10095_v9, 0.0  ;;  %v615_v19 = vsel %vm614_vm1, %v10099_v11, 0.0  ;;  %v10135_v36 = vmax.f32 %v530_v31, 0.0  ;;  %v10143_v39 = vmax.f32 %v458_v35, 0.0 }
 0x101   : > { %670 = vadd.xlane.f32.xlu0 %v669_v13  ;;  %v663_v25 = vsel %vm614_vm1, %v10106_v18, 0.0  ;;  %v10150_v42 = vmax.f32 %v522_v40, 0.0  ;;  %v624_v57 = vsel %vm614_vm1, %v10123_v30, 0.0 }
 0x102   : > { %v9728_v14 = vpop.f32.mrb[4].mxu0  ;;  %v618_v47 = vsel %vm614_vm1, %v10143_v39, 0.0  ;;  %v672_v59 = vsel %vm614_vm1, %v10135_v36, 0.0 }
 0x103   : > { %5012 = vrot.lane.b32.xlu1 %v10095_v9, %s9941_s20  ;;  %v9744_v16 = vpop.f32.mrb[4].mxu1  ;;  %v470_v17 = vpop.f32.mrb[5].mxu0  ;;  %v479_v43 = vadd.f32 %v9728_v14, %v10088_v60  ;;  %v666_v62 = vsel %vm614_vm1, %v10150_v42, 0.0 }
 0x104   : > { %v9729_v20 = vpop.f32.mrb[6].mxu0  ;;  %v534_v21 = vpop.f32.mrb[5].mxu1  ;;  %v543_v46 = vadd.f32 %v9744_v16, %v10088_v60  ;;  %v471_v50 = vadd.f32 %v470_v17, %v10088_v60 }
 0x105   : > { %616 = vadd.xlane.f32.xlu0 %v615_v19  ;;  %v10110_v22 = vpop.f32.mrb[7].mxu0  ;;  %v9745_v23 = vpop.f32.mrb[6].mxu1  ;;  %v10159_v44 = vmax.f32 %v479_v43, 0.0  ;;  %v535_v53 = vadd.f32 %v534_v21, %v10088_v60  ;;  %v482_v63 = vadd.f32 %v9729_v20, %v10088_v60 }
 0x106   : > { %v10112_v24 = vpop.f32.mrb[7].mxu1  ;;  %v10164_v48 = vmax.f32 %v543_v46, 0.0  ;;  %v10169_v51 = vmax.f32 %v471_v50, 0.0  ;;  %v546_v7 = vadd.f32 %v9745_v23, %v10088_v60  ;;  %v474_v12 = vadd.f32 %v10110_v22, %v10088_v60  ;;  %v10230_v19 = vpop.permute.xlu0 %1279 }
 0x107   : > { %v633_v49 = vsel %vm614_vm1, %v10159_v44, 0.0  ;;  %v10174_v54 = vmax.f32 %v535_v53, 0.0  ;;  %v10199_v5 = vmax.f32 %v482_v63, 0.0  ;;  %v538_v16 = vadd.f32 %v10112_v24, %v10088_v60  ;;  %13726 = vst [vmem:[#allocation7_spill] sm:$0xff] %v10230_v19 }
 0x108   : > { %v681_v52 = vsel %vm614_vm1, %v10164_v48, 0.0  ;;  %v627_v55 = vsel %vm614_vm1, %v10169_v51, 0.0  ;;  %v10210_v13 = vmax.f32 %v546_v7, 0.0  ;;  %v10214_v14 = vmax.f32 %v474_v12, 0.0 }
 0x109   : > { %664 = vadd.xlane.f32.xlu0 %v663_v25  ;;  %v675_v56 = vsel %vm614_vm1, %v10174_v54, 0.0  ;;  %v10222_v17 = vmax.f32 %v538_v16, 0.0 }
 0x10a   : > { %v10116_v26 = vpop.f32.mrb[8].mxu0  ;;  %v10234_v20 = vpop.permute.xlu0 %1295  ;;  %v684_v53 = vsel %vm614_vm1, %v10210_v13, 0.0 }
 0x10b   : > { %v10119_v28 = vpop.f32.mrb[8].mxu1  ;;  %v10121_v29 = vpop.f32.mrb[9].mxu0  ;;  %13727 = vst [vmem:[#allocation8_spill] sm:$0xff] %v10234_v20  ;;  %v495_v22 = vadd.f32 %v10116_v26, %v10088_v60 }
 0x10c   : > { %v10128_v32 = vpop.f32.mrb[10].mxu0  ;;  %v10130_v33 = vpop.f32.mrb[9].mxu1  ;;  %v559_v24 = vadd.f32 %v10119_v28, %v10088_v60  ;;  %v487_v35 = vadd.f32 %v10121_v29, %v10088_v60 }
 0x10d   : > { %v10132_v34 = vpop.f32.mrb[11].mxu0  ;;  %v10139_v37 = vpop.f32.mrb[10].mxu1  ;;  %v10240_v23 = vmax.f32 %v495_v22, 0.0  ;;  %v551_v28 = vadd.f32 %v10130_v33, %v10088_v60  ;;  %v636_v33 = vsel %vm614_vm1, %v10199_v5, 0.0  ;;  %v498_v7 = vadd.f32 %v10128_v32, %v10088_v60 }
 0x10e   : > { %v10141_v38 = vpop.f32.mrb[11].mxu1  ;;  %v10236_v21 = vpop.permute.xlu0 %1303  ;;  %v10246_v27 = vmax.f32 %v559_v24, 0.0  ;;  %v562_v22 = vadd.f32 %v10139_v37, %v10088_v60 }
 0x10f   : > { %13728 = vst [vmem:[#allocation9_spill] sm:$0xff] %v10236_v21  ;;  %v645_v31 = vsel %vm614_vm1, %v10240_v23, 0.0  ;;  %v10260_v43 = vmax.f32 %v551_v28, 0.0  ;;  %v10294_v16 = vmax.f32 %v498_v7, 0.0  ;;  %v554_v37 = vadd.f32 %v10141_v38, %v10088_v60 }
 0x110   : > { %v693_v26 = vsel %vm614_vm1, %v10246_v27, 0.0 }
 0x111   : > { %v687_v29 = vsel %vm614_vm1, %v10260_v43, 0.0 }
 0x112   : > { %v10182_v58 = vpop.f32.mrb[12].mxu0  ;;  %v10244_v25 = vpop.permute.xlu0 %1311 }
 0x113   : > { %v10186_v61 = vpop.f32.mrb[12].mxu1  ;;  %v10191_v0 = vpop.f32.mrb[13].mxu0  ;;  %13729 = vst [vmem:[#allocation10_spill] sm:$0xff] %v10244_v25 }
 0x114   : > { %v10193_v1 = vpop.f32.mrb[14].mxu0  ;;  %v10195_v3 = vpop.f32.mrb[13].mxu1 }
 0x115   : > { %v10197_v4 = vpop.f32.mrb[15].mxu0  ;;  %v10204_v8 = vpop.f32.mrb[14].mxu1 }
 0x116   : > { %v10206_v10 = vpop.f32.mrb[15].mxu1  ;;  %v10252_v40 = vpop.permute.xlu0 %1319 }
 0x117   : > { %13730 = vst [vmem:[#allocation11_spill] sm:$0xff] %v10252_v40 }
 0x11f   : > { %4982 = vrot.lane.b32.xlu0 %v10123_v30, %s9941_s20 }
 0x123   : > { %5014 = vrot.lane.b32.xlu0 %v10135_v36, %s9941_s20 }
 0x127   : > { %4978 = vrot.lane.b32.xlu0 %v10143_v39, %s9941_s20  ;;  %622 = vadd.xlane.f32.xlu1 %v621_v41  ;;  %v10254_v41 = vmax.f32 %v487_v35, 0.0  ;;  %v490_v35 = vadd.f32 %v10132_v34, %v10088_v60  ;;  %v10322_v34 = vmax.f32 %v554_v37, 0.0 }
 0x129   : > { %v639_v46 = vsel %vm614_vm1, %v10254_v41, 0.0  ;;  %v10312_v28 = vmax.f32 %v490_v35, 0.0  ;;  %13744 = vst [vmem:[#allocation25_spill] sm:$0xff] %v10322_v34  ;;  %v511_v35 = vadd.f32 %v10182_v58, %v10088_v60 }
 0x12b   : > { %5010 = vrot.lane.b32.xlu0 %v10150_v42, %s9941_s20  ;;  %v10354_v45 = vmax.f32 %v511_v35, 0.0 }
 0x138   : > { %4976 = vrot.lane.b32.xlu1 %v10099_v11, %s9941_s20 }
 0x13c   : > { %5008 = vrot.lane.b32.xlu1 %v10106_v18, %s9941_s20 }
 0x14a   : > { %619 = vadd.xlane.f32.xlu0 %v618_v47  ;;  %v10264_v47 = vpop.permute.xlu0 %1327 }
 0x14b   : > { %13731 = vst [vmem:[#allocation12_spill] sm:$0xff] %v10264_v47 }
 0x14e   : > { %634 = vadd.xlane.f32.xlu0 %v633_v49  ;;  %v10268_v49 = vpop.permute.xlu1 %1283  ;;  %v10270_v50 = vpop.permute.xlu0 %1335 }
 0x14f   : > { %13732 = vst [vmem:[#allocation13_spill] sm:$0xff] %v10268_v49  ;;  %13733 = vst [vmem:[#allocation14_spill] sm:$0xff] %v10270_v50 }
 0x152   : > { %682 = vadd.xlane.f32.xlu0 %v681_v52  ;;  %v10274_v52 = vpop.permute.xlu1 %1287 }
 0x153   : > { %13734 = vst [vmem:[#allocation15_spill] sm:$0xff] %v10274_v52 }
 0x156   : > { %628 = vadd.xlane.f32.xlu0 %v627_v55  ;;  %v10278_v55 = vpop.permute.xlu0 %1342 }
 0x157   : > { %13735 = vst [vmem:[#allocation16_spill] sm:$0xff] %v10278_v55 }
 0x15a   : > { %676 = vadd.xlane.f32.xlu0 %v675_v56  ;;  %v630_v56 = vsel %vm614_vm1, %v10214_v14, 0.0 }
 0x160   : > { %625 = vadd.xlane.f32.xlu1 %v624_v57  ;;  %v10282_v57 = vpop.permute.xlu1 %1291 }
 0x161   : > { %13736 = vst [vmem:[#allocation17_spill] sm:$0xff] %v10282_v57 }
 0x164   : > { %673 = vadd.xlane.f32.xlu1 %v672_v59  ;;  %v10284_v59 = vpop.permute.xlu0 %1350  ;;  %v10288_v63 = vpop.permute.xlu1 %1299 }
 0x165   : > { %13737 = vst [vmem:[#allocation18_spill] sm:$0xff] %v10284_v59  ;;  %13738 = vst [vmem:[#allocation19_spill] sm:$0xff] %v10288_v63 }
 0x168   : > { %667 = vadd.xlane.f32.xlu1 %v666_v62  ;;  %v678_v62 = vsel %vm614_vm1, %v10222_v17, 0.0  ;;  %v10292_v12 = vpop.permute.xlu0 %1358  ;;  %v10298_v24 = vpop.permute.xlu1 %1307 }
 0x169   : > { %13739 = vst [vmem:[#allocation20_spill] sm:$0xff] %v10292_v12  ;;  %13740 = vst [vmem:[#allocation21_spill] sm:$0xff] %v10298_v24 }
 0x16c   : > { %v10310_v32 = vpop.permute.xlu1 %1315 }
 0x16d   : > { %13742 = vst [vmem:[#allocation23_spill] sm:$0xff] %v10310_v32  ;;  %v503_v32 = vadd.f32 %v10191_v0, %v10088_v60 }
 0x170   : > { %4990 = vrot.lane.b32.xlu0 %v10199_v5, %s9941_s20 }
 0x174   : > { %5022 = vrot.lane.b32.xlu0 %v10210_v13, %s9941_s20 }
 0x178   : > { %4986 = vrot.lane.b32.xlu0 %v10214_v14, %s9941_s20 }
 0x179   : > { %4988 = vrot.lane.b32.xlu1 %v10159_v44, %s9941_s20 }
 0x17c   : > { %5018 = vrot.lane.b32.xlu0 %v10222_v17, %s9941_s20 }
 0x17d   : > { %5020 = vrot.lane.b32.xlu1 %v10164_v48, %s9941_s20 }
 0x181   : > { %4984 = vrot.lane.b32.xlu1 %v10169_v51, %s9941_s20 }
 0x185   : > { %5016 = vrot.lane.b32.xlu1 %v10174_v54, %s9941_s20 }
 0x19b   : > { %646 = vadd.xlane.f32.xlu0 %v645_v31  ;;  %v10302_v31 = vpop.permute.xlu0 %1366 }
 0x19c   : > { %13741 = vst [vmem:[#allocation22_spill] sm:$0xff] %v10302_v31 }
 0x19f   : > { %694 = vadd.xlane.f32.xlu0 %v693_v26  ;;  %v10306_v26 = vmax.f32 %v562_v22, 0.0 }
 0x1a3   : > { %640 = vadd.xlane.f32.xlu0 %v639_v46  ;;  %v10316_v46 = vpop.permute.xlu0 %1374 }
 0x1a4   : > { %13743 = vst [vmem:[#allocation24_spill] sm:$0xff] %v10316_v46 }
 0x1a7   : > { %688 = vadd.xlane.f32.xlu0 %v687_v29  ;;  %v10324_v29 = vpop.permute.xlu1 %1323 }
 0x1a8   : > { %13745 = vst [vmem:[#allocation26_spill] sm:$0xff] %v10324_v29 }
 0x1a9   : > { %637 = vadd.xlane.f32.xlu1 %v636_v33  ;;  %v10330_v33 = vpop.permute.xlu0 %1382 }
 0x1aa   : > { %13746 = vst [vmem:[#allocation27_spill] sm:$0xff] %v10330_v33 }
 0x1ab   : > { %v10334_v38 = vpop.permute.xlu1 %1331 }
 0x1ac   : > { %13747 = vst [vmem:[#allocation28_spill] sm:$0xff] %v10334_v38  ;;  %v575_v38 = vadd.f32 %v10186_v61, %v10088_v60  ;;  %v567_v61 = vadd.f32 %v10195_v3, %v10088_v60  ;;  %v648_v3 = vsel %vm614_vm1, %v10294_v16, 0.0 }
 0x1ad   : > { %685 = vadd.xlane.f32.xlu1 %v684_v53  ;;  %v10336_v53 = vpop.permute.xlu0 %1390 }
 0x1ae   : > { %13748 = vst [vmem:[#allocation29_spill] sm:$0xff] %v10336_v53  ;;  %v10358_v53 = vmax.f32 %v575_v38, 0.0  ;;  %v10376_v50 = vmax.f32 %v567_v61, 0.0  ;;  %v696_v61 = vsel %vm614_vm1, %v10306_v26, 0.0 }
 0x1b0   : > { %v705_v35 = vsel %vm614_vm1, %v10358_v53, 0.0  ;;  %13755 = vst [vmem:[#allocation36_spill] sm:$0xff] %v10376_v50 }
 0x1b1   : > { %631 = vadd.xlane.f32.xlu1 %v630_v56  ;;  %v10340_v56 = vpop.permute.xlu1 %1339 }
 0x1b2   : > { %13749 = vst [vmem:[#allocation30_spill] sm:$0xff] %v10340_v56  ;;  %v657_v56 = vsel %vm614_vm1, %v10354_v45, 0.0 }
 0x1b5   : > { %679 = vadd.xlane.f32.xlu1 %v678_v62  ;;  %v10342_v62 = vpop.permute.xlu0 %1398  ;;  %v10344_v7 = vpop.permute.xlu1 %1346 }
 0x1b6   : > { %13750 = vst [vmem:[#allocation31_spill] sm:$0xff] %v10342_v62  ;;  %13751 = vst [vmem:[#allocation32_spill] sm:$0xff] %v10344_v7  ;;  %v10368_v62 = vmax.f32 %v503_v32, 0.0  ;;  %v699_v32 = vsel %vm614_vm1, %v10376_v50, 0.0 }
 0x1b8   : > { %v651_v0 = vsel %vm614_vm1, %v10368_v62, 0.0 }
 0x1b9   : > { %v10346_v22 = vpop.xlane.xlu0 %670  ;;  %v10350_v37 = vpop.permute.xlu1 %1354 }
 0x1ba   : > { %13752 = vst [vmem:[#allocation33_spill] sm:$0xff] %v10350_v37 }
 0x1bd   : > { %4998 = vrot.lane.b32.xlu0 %v10294_v16, %s9941_s20  ;;  %v10352_v2 = vpop.xlane.xlu0 %616  ;;  %v10364_v47 = vpop.permute.xlu1 %1362 }
 0x1be   : > { %13753 = vst [vmem:[#allocation34_spill] sm:$0xff] %v10364_v47 }
 0x1c1   : > { %5030 = vrot.lane.b32.xlu0 %v10306_v26, %s9941_s20  ;;  %v10366_v58 = vpop.xlane.xlu0 %664  ;;  %v10374_v38 = vpop.permute.xlu1 %1370 }
 0x1c2   : > { %13754 = vst [vmem:[#allocation35_spill] sm:$0xff] %v10374_v38 }
 0x1c5   : > { %4994 = vrot.lane.b32.xlu0 %v10312_v28, %s9941_s20  ;;  %v4983_v29 = vpop.permute.xlu0 %4982 }
 0x1c6   : > { %4996 = vrot.lane.b32.xlu1 %v10240_v23, %s9941_s20  ;;  %v5081_v55 = vsel %vm614_vm1, %v4983_v29, 0.0 }
 0x1c9   : > { %5026 = vrot.lane.b32.xlu0 %v10322_v34, %s9941_s20  ;;  %v5015_v47 = vpop.permute.xlu0 %5014 }
 0x1ca   : > { %5028 = vrot.lane.b32.xlu1 %v10246_v27, %s9941_s20  ;;  %v5129_v19 = vsel %vm614_vm1, %v5015_v47, 0.0 }
 0x1cd   : > { %v4979_v46 = vpop.permute.xlu0 %4978 }
 0x1ce   : > { %4992 = vrot.lane.b32.xlu1 %v10254_v41, %s9941_s20  ;;  %v5075_v15 = vsel %vm614_vm1, %v4979_v46, 0.0 }
 0x1d2   : > { %5024 = vrot.lane.b32.xlu1 %v10260_v43, %s9941_s20 }
 0x1e8   : > { %658 = vadd.xlane.f32.xlu0 %v657_v56  ;;  %v10382_v56 = vpop.permute.xlu1 %1378 }
 0x1e9   : > { %13756 = vst [vmem:[#allocation37_spill] sm:$0xff] %v10382_v56  ;;  %v5011_v56 = vpop.permute.xlu0 %5010 }
 0x1ec   : > { %706 = vadd.xlane.f32.xlu0 %v705_v35  ;;  %v10386_v35 = vpop.permute.xlu1 %1386 }
 0x1ed   : > { %13757 = vst [vmem:[#allocation38_spill] sm:$0xff] %v10386_v35  ;;  %v10396_v25 = vpop.xlane.xlu0 %619 }
 0x1f0   : > { %652 = vadd.xlane.f32.xlu0 %v651_v0  ;;  %v642_v0 = vsel %vm614_vm1, %v10312_v28, 0.0  ;;  %v10392_v63 = vpop.permute.xlu1 %1394 }
 0x1f1   : > { %13758 = vst [vmem:[#allocation39_spill] sm:$0xff] %v10392_v63 }
 0x1f4   : > { %700 = vadd.xlane.f32.xlu0 %v699_v32  ;;  %v690_v32 = vsel %vm614_vm1, %v10322_v34, 0.0  ;;  %v10400_v35 = vpop.permute.xlu1 %1402  ;;  %v5123_v34 = vsel %vm614_vm1, %v5011_v56, 0.0 }
 0x1f5   : > { %13759 = vst [vmem:[#allocation40_spill] sm:$0xff] %v10400_v35 }
 0x1f6   : > { %649 = vadd.xlane.f32.xlu1 %v648_v3  ;;  %v514_v3 = vadd.f32 %v10193_v1, %v10088_v60 }
 0x1f8   : > { %v10402_v38 = vmax.f32 %v514_v3, 0.0  ;;  %v4981_v63 = vpop.permute.xlu1 %4980 }
 0x1f9   : > { %v5078_v31 = vsel %vm614_vm1, %v4981_v63, 0.0 }
 0x1fa   : > { %697 = vadd.xlane.f32.xlu1 %v696_v61  ;;  %v578_v61 = vadd.f32 %v10204_v8, %v10088_v60  ;;  %v570_v8 = vadd.f32 %v10206_v10, %v10088_v60 }
 0x1fc   : > { %v10412_v33 = vmax.f32 %v578_v61, 0.0  ;;  %v5013_v35 = vpop.permute.xlu1 %5012 }
 0x1fe   : > { %643 = vadd.xlane.f32.xlu1 %v642_v0  ;;  %v10406_v0 = vpop.xlane.xlu0 %634  ;;  %13760 = vst [vmem:[#allocation41_spill] sm:$0xff] %v10412_v33  ;;  %v708_v47 = vsel %vm614_vm1, %v10412_v33, 0.0 }
 0x200   : > { %v10428_v61 = vpop.xlane.xlu1 %622 }
 0x202   : > { %691 = vadd.xlane.f32.xlu1 %v690_v32  ;;  %v506_v32 = vadd.f32 %v10197_v4, %v10088_v60  ;;  %v10416_v1 = vpop.xlane.xlu0 %682  ;;  %v10426_v4 = vmax.f32 %v570_v8, 0.0 }
 0x204   : > { %v10418_v3 = vmax.f32 %v506_v32, 0.0  ;;  %13762 = vst [vmem:[#allocation43_spill] sm:$0xff] %v10426_v4  ;;  %v4977_v60 = vpop.permute.xlu1 %4976 }
 0x206   : > { %13761 = vst [vmem:[#allocation42_spill] sm:$0xff] %v10418_v3  ;;  %v10430_v24 = vpop.xlane.xlu0 %628 }
 0x208   : > { %v5009_v32 = vpop.permute.xlu1 %5008 }
 0x20a   : > { %5006 = vrot.lane.b32.xlu0 %v10402_v38, %s9941_s20  ;;  %v10436_v10 = vpop.xlane.xlu0 %676 }
 0x20c   : > { %v10442_v40 = vpop.xlane.xlu1 %625 }
 0x20e   : > { %5038 = vrot.lane.b32.xlu0 %v10412_v33, %s9941_s20  ;;  %v4991_v8 = vpop.permute.xlu0 %4990 }
 0x210   : > { %v10444_v12 = vpop.xlane.xlu1 %673 }
 0x212   : > { %5002 = vrot.lane.b32.xlu0 %v10418_v3, %s9941_s20  ;;  %v5023_v7 = vpop.permute.xlu0 %5022 }
 0x213   : > { %5004 = vrot.lane.b32.xlu1 %v10354_v45, %s9941_s20  ;;  %v5141_v46 = vsel %vm614_vm1, %v5023_v7, 0.0  ;;  %v5072_v7 = vsel %vm614_vm1, %v4977_v60, 0.0 }
 0x214   : > { %v10446_v20 = vpop.xlane.xlu1 %667 }
 0x216   : > { %5034 = vrot.lane.b32.xlu0 %v10426_v4, %s9941_s20  ;;  %v4987_v49 = vpop.permute.xlu0 %4986 }
 0x217   : > { %5036 = vrot.lane.b32.xlu1 %v10358_v53, %s9941_s20 }
 0x218   : > { %v4989_v57 = vpop.permute.xlu1 %4988 }
 0x21a   : > { %v5019_v37 = vpop.permute.xlu0 %5018 }
 0x21b   : > { %5000 = vrot.lane.b32.xlu1 %v10368_v62, %s9941_s20 }
 0x21c   : > { %v5021_v59 = vpop.permute.xlu1 %5020 }
 0x21f   : > { %5032 = vrot.lane.b32.xlu1 %v10376_v50, %s9941_s20  ;;  %v660_v50 = vsel %vm614_vm1, %v10402_v38, 0.0 }
 0x220   : > { %v4985_v63 = vpop.permute.xlu1 %4984 }
 0x228   : > { %v10449_v21 = vpop.xlane.xlu0 %646 }
 0x22c   : > { %v10453_v52 = vpop.xlane.xlu0 %694 }
 0x235   : > { %5079 = vadd.xlane.f32.xlu0 %v5078_v31  ;;  %v10458_v31 = vpop.xlane.xlu0 %640 }
 0x239   : > { %5082 = vadd.xlane.f32.xlu0 %v5081_v55  ;;  %v5093_v55 = vsel %vm614_vm1, %v4991_v8, 0.0  ;;  %v10464_v29 = vpop.xlane.xlu0 %688  ;;  %v5087_v8 = vsel %vm614_vm1, %v4987_v49, 0.0  ;;  %v5120_v49 = vsel %vm614_vm1, %v5009_v32, 0.0 }
 0x23d   : > { %5130 = vadd.xlane.f32.xlu0 %v5129_v19  ;;  %v5017_v19 = vpop.permute.xlu1 %5016  ;;  %v4999_v56 = vpop.permute.xlu0 %4998 }
 0x241   : > { %5076 = vadd.xlane.f32.xlu0 %v5075_v15  ;;  %v654_v15 = vsel %vm614_vm1, %v10418_v3, 0.0  ;;  %v5031_v3 = vpop.permute.xlu0 %5030 }
 0x243   : > { %661 = vadd.xlane.f32.xlu1 %v660_v50  ;;  %v10469_v50 = vpop.xlane.xlu1 %637 }
 0x245   : > { %5124 = vadd.xlane.f32.xlu0 %v5123_v34  ;;  %v702_v34 = vsel %vm614_vm1, %v10426_v4, 0.0 }
 0x247   : > { %709 = vadd.xlane.f32.xlu1 %v708_v47  ;;  %v5126_v47 = vsel %vm614_vm1, %v5013_v35, 0.0  ;;  %v5153_v35 = vsel %vm614_vm1, %v5031_v3, 0.0  ;;  %v5132_v3 = vsel %vm614_vm1, %v5017_v19, 0.0 }
 0x249   : > { %5094 = vadd.xlane.f32.xlu0 %v5093_v55  ;;  %v10475_v55 = vpop.xlane.xlu1 %685 }
 0x24b   : > { %655 = vadd.xlane.f32.xlu1 %v654_v15  ;;  %v5135_v15 = vsel %vm614_vm1, %v5019_v37, 0.0 }
 0x24d   : > { %5142 = vadd.xlane.f32.xlu0 %v5141_v46  ;;  %v5105_v46 = vsel %vm614_vm1, %v4999_v56, 0.0  ;;  %v10480_v4 = vpop.xlane.xlu1 %631  ;;  %v5138_v56 = vsel %vm614_vm1, %v5021_v59, 0.0 }
 0x24f   : > { %703 = vadd.xlane.f32.xlu1 %v702_v34  ;;  %v4995_v34 = vpop.permute.xlu0 %4994 }
 0x250   : > { %v5099_v60 = vsel %vm614_vm1, %v4995_v34, 0.0 }
 0x251   : > { %5088 = vadd.xlane.f32.xlu0 %v5087_v8  ;;  %v5090_v8 = vsel %vm614_vm1, %v4989_v57, 0.0  ;;  %v10485_v37 = vpop.xlane.xlu1 %679 }
 0x253   : > { %5127 = vadd.xlane.f32.xlu1 %v5126_v47  ;;  %v5027_v47 = vpop.permute.xlu0 %5026 }
 0x255   : > { %5136 = vadd.xlane.f32.xlu0 %v5135_v15  ;;  %v5147_v15 = vsel %vm614_vm1, %v5027_v47, 0.0  ;;  %v4997_v32 = vpop.permute.xlu1 %4996 }
 0x257   : > { %5073 = vadd.xlane.f32.xlu1 %v5072_v7  ;;  %v5084_v7 = vsel %vm614_vm1, %v4985_v63, 0.0 }
 0x259   : > { %5106 = vadd.xlane.f32.xlu0 %v5105_v46  ;;  %v5029_v57 = vpop.permute.xlu1 %5028  ;;  %v5102_v46 = vsel %vm614_vm1, %v4997_v32, 0.0 }
 0x25a   : > { %v5150_v34 = vsel %vm614_vm1, %v5029_v57, 0.0  ;;  %v714_v57 = vmul.f32 0.015625, %v10428_v61  ;;  %v712_v61 = vmul.f32 0.015625, %v10352_v2 }
 0x25b   : > { %5121 = vadd.xlane.f32.xlu1 %v5120_v49 }
 0x25d   : > { %5154 = vadd.xlane.f32.xlu0 %v5153_v35  ;;  %v4993_v49 = vpop.permute.xlu1 %4992 }
 0x25e   : > { %v5096_v35 = vsel %vm614_vm1, %v4993_v49, 0.0 }
 0x25f   : > { %5091 = vadd.xlane.f32.xlu1 %v5090_v8 }
 0x261   : > { %5100 = vadd.xlane.f32.xlu0 %v5099_v60  ;;  %v5025_v8 = vpop.permute.xlu1 %5024 }
 0x262   : > { %v5144_v63 = vsel %vm614_vm1, %v5025_v8, 0.0  ;;  %v10515_v8 = vsub.f32 %v10093_v6, %v714_v57 }
 0x263   : > { %5139 = vadd.xlane.f32.xlu1 %v5138_v56 }
 0x265   : > { %5148 = vadd.xlane.f32.xlu0 %v5147_v15 }
 0x267   : > { %5085 = vadd.xlane.f32.xlu1 %v5084_v7 }
 0x26b   : > { %5133 = vadd.xlane.f32.xlu1 %v5132_v3 }
 0x26f   : > { %5103 = vadd.xlane.f32.xlu1 %v5102_v46 }
 0x273   : > { %5151 = vadd.xlane.f32.xlu1 %v5150_v34 }
 0x275   : > { %v10494_v59 = vpop.xlane.xlu0 %658 }
 0x277   : > { %5097 = vadd.xlane.f32.xlu1 %v5096_v35  ;;  %v730_v35 = vmul.f32 0.015625, %v10346_v22 }
 0x279   : > { %v10497_v60 = vpop.xlane.xlu0 %706  ;;  %v10521_v33 = vsub.f32 %v10095_v9, %v730_v35  ;;  %v715_v9 = vmul.f32 0.015625, %v10442_v40  ;;  %v731_v40 = vmul.f32 0.015625, %v10444_v12 }
 0x27b   : > { %5145 = vadd.xlane.f32.xlu1 %v5144_v63  ;;  %v794_v2 = vmul.f32 %v10521_v33, %v10521_v33 }
 0x27d   : > { %v10500_v19 = vpop.xlane.xlu0 %652 }
 0x281   : > { %v10502_v47 = vpop.xlane.xlu0 %700 }
 0x283   : > { %v10504_v56 = vpop.xlane.xlu1 %649 }
 0x285   : > { %v5007_v15 = vpop.permute.xlu0 %5006 }
 0x286   : > { %v5117_v32 = vsel %vm614_vm1, %v5007_v15, 0.0 }
 0x287   : > { %5118 = vadd.xlane.f32.xlu0 %v5117_v32  ;;  %v10507_v7 = vpop.xlane.xlu1 %697 }
 0x289   : > { %v5039_v3 = vpop.permute.xlu0 %5038 }
 0x28a   : > { %v5165_v46 = vsel %vm614_vm1, %v5039_v3, 0.0 }
 0x28b   : > { %5166 = vadd.xlane.f32.xlu0 %v5165_v46  ;;  %v10511_v49 = vpop.xlane.xlu1 %643  ;;  %v778_v46 = vmul.f32 %v10515_v8, %v10515_v8 }
 0x28d   : > { %v5003_v34 = vpop.permute.xlu0 %5002  ;;  %v814_v35 = vsel %vm614_vm1, %v778_v46, 0.0 }
 0x28e   : > { %v5111_v63 = vsel %vm614_vm1, %v5003_v34, 0.0  ;;  %v10529_v34 = vsub.f32 %v10099_v11, %v712_v61  ;;  %v718_v61 = vmul.f32 0.015625, %v10406_v0  ;;  %v734_v0 = vmul.f32 0.015625, %v10416_v1 }
 0x28f   : > { %5112 = vadd.xlane.f32.xlu0 %v5111_v63  ;;  %v10518_v15 = vpop.xlane.xlu1 %691  ;;  %v728_v63 = vmul.f32 0.015625, %v10366_v58 }
 0x290   : > { %13763 = vst [vmem:[#allocation44_spill] sm:$0xff] %v10529_v34  ;;  %v776_v58 = vmul.f32 %v10529_v34, %v10529_v34  ;;  %v10558_v34 = vsub.f32 %v10135_v36, %v731_v40  ;;  %v10564_v1 = vsub.f32 %v10164_v48, %v734_v0  ;;  %v729_v40 = vmul.f32 0.015625, %v10446_v20 }
 0x291   : > { %v5035_v32 = vpop.permute.xlu0 %5034  ;;  %v719_v20 = vmul.f32 0.015625, %v10469_v50  ;;  %v735_v50 = vmul.f32 0.015625, %v10475_v55  ;;  %v717_v55 = vmul.f32 0.015625, %v10480_v4  ;;  %v733_v4 = vmul.f32 0.015625, %v10485_v37 }
 0x292   : > { %v5159_v3 = vsel %vm614_vm1, %v5035_v32, 0.0  ;;  %v723_v37 = vmul.f32 0.015625, %v10504_v56  ;;  %v739_v56 = vmul.f32 0.015625, %v10507_v7  ;;  %v721_v7 = vmul.f32 0.015625, %v10511_v49 }
 0x293   : > { %5160 = vadd.xlane.f32.xlu0 %v5159_v3  ;;  %v5005_v22 = vpop.permute.xlu1 %5004 }
 0x294   : > { %v5114_v57 = vsel %vm614_vm1, %v5005_v22, 0.0  ;;  %v10538_v22 = vsub.f32 %v10106_v18, %v728_v63  ;;  %v10550_v63 = vsub.f32 %v10159_v44, %v718_v61  ;;  %v10685_v49 = vsub.f32 %v10312_v28, %v721_v7 }
 0x295   : > { %5115 = vadd.xlane.f32.xlu1 %v5114_v57  ;;  %v862_v57 = vsel %vm614_vm1, %v794_v2, 0.0  ;;  %v808_v2 = vsel %vm614_vm1, %v776_v58, 0.0  ;;  %v716_v58 = vmul.f32 0.015625, %v10430_v24  ;;  %v732_v24 = vmul.f32 0.015625, %v10436_v10 }
 0x296   : > { %v722_v10 = vmul.f32 0.015625, %v10449_v21  ;;  %v738_v21 = vmul.f32 0.015625, %v10453_v52  ;;  %v720_v52 = vmul.f32 0.015625, %v10458_v31  ;;  %v736_v31 = vmul.f32 0.015625, %v10464_v29  ;;  %13773 = vst [vmem:[#allocation54_spill] sm:$0xff] %v10685_v49 }
 0x297   : > { %815 = vadd.xlane.f32.xlu0 %v814_v35  ;;  %v5037_v32 = vpop.permute.xlu1 %5036  ;;  %v10545_v35 = vsub.f32 %v10123_v30, %v715_v9  ;;  %v713_v9 = vmul.f32 0.015625, %v10396_v25  ;;  %v10578_v0 = vsub.f32 %v10169_v51, %v716_v58  ;;  %v10592_v58 = vsub.f32 %v10174_v54, %v732_v24 }
 0x298   : > { %v5162_v3 = vsel %vm614_vm1, %v5037_v32, 0.0  ;;  %v10606_v24 = vsub.f32 %v10240_v23, %v722_v10  ;;  %v10620_v10 = vsub.f32 %v10246_v27, %v738_v21  ;;  %v10634_v21 = vsub.f32 %v10254_v41, %v720_v52 }
 0x299   : > { %5163 = vadd.xlane.f32.xlu1 %v5162_v3  ;;  %v792_v3 = vmul.f32 %v10538_v22, %v10538_v22  ;;  %v779_v61 = vmul.f32 %v10545_v35, %v10545_v35  ;;  %v10571_v25 = vsub.f32 %v10143_v39, %v713_v9  ;;  %v10585_v9 = vsub.f32 %v10150_v42, %v729_v40 }
 0x29a   : > { %v10599_v40 = vsub.f32 %v10199_v5, %v719_v20  ;;  %v10613_v20 = vsub.f32 %v10210_v13, %v735_v50  ;;  %v10627_v50 = vsub.f32 %v10214_v14, %v717_v55  ;;  %13766 = vst [vmem:[#allocation47_spill] sm:$0xff] %v10634_v21  ;;  %v10641_v55 = vsub.f32 %v10222_v17, %v733_v4 }
 0x29b   : > { %863 = vadd.xlane.f32.xlu0 %v862_v57  ;;  %v5001_v46 = vpop.permute.xlu1 %5000  ;;  %v10648_v52 = vsub.f32 %v10260_v43, %v736_v31  ;;  %v726_v29 = vmul.f32 0.015625, %v10494_v59  ;;  %v10655_v4 = vsub.f32 %v10294_v16, %v723_v37  ;;  %v742_v59 = vmul.f32 0.015625, %v10497_v60 }
 0x29c   : > { %v5108_v32 = vsel %vm614_vm1, %v5001_v46, 0.0  ;;  %v856_v46 = vsel %vm614_vm1, %v792_v3, 0.0  ;;  %13764 = vst [vmem:[#allocation45_spill] sm:$0xff] %v10613_v20  ;;  %13765 = vst [vmem:[#allocation46_spill] sm:$0xff] %v10627_v50  ;;  %v10669_v37 = vsub.f32 %v10306_v26, %v739_v56  ;;  %v724_v60 = vmul.f32 0.015625, %v10500_v19 }
 0x29d   : > { %5109 = vadd.xlane.f32.xlu1 %v5108_v32  ;;  %v782_v32 = vmul.f32 %v10550_v63, %v10550_v63  ;;  %13767 = vst [vmem:[#allocation48_spill] sm:$0xff] %v10641_v55  ;;  %13768 = vst [vmem:[#allocation49_spill] sm:$0xff] %v10648_v52  ;;  %v10662_v31 = vsub.f32 %v10354_v45, %v726_v29  ;;  %v10676_v29 = vsub.f32 %v10358_v53, %v742_v59 }
 0x29e   : > { %13769 = vst [vmem:[#allocation50_spill] sm:$0xff] %v10655_v4  ;;  %13771 = vst [vmem:[#allocation52_spill] sm:$0xff] %v10669_v37  ;;  %v803_v59 = vmul.f32 %v10669_v37, %v10669_v37  ;;  %v10692_v19 = vsub.f32 %v10368_v62, %v724_v60  ;;  %v13777_v60 = vld [vmem:[#allocation36_spill] sm:$0xff] }
 0x29f   : > { %809 = vadd.xlane.f32.xlu0 %v808_v2  ;;  %v5033_v57 = vpop.permute.xlu1 %5032  ;;  %v817_v2 = vsel %vm614_vm1, %v779_v61, 0.0  ;;  %v826_v3 = vsel %vm614_vm1, %v782_v32, 0.0  ;;  %13770 = vst [vmem:[#allocation51_spill] sm:$0xff] %v10662_v31  ;;  %13772 = vst [vmem:[#allocation53_spill] sm:$0xff] %v10676_v29  ;;  %v790_v56 = vmul.f32 %v10662_v31, %v10662_v31  ;;  %v806_v7 = vmul.f32 %v10676_v29, %v10676_v29 }
 0x2a0   : > { %v5156_v12 = vsel %vm614_vm1, %v5033_v57, 0.0  ;;  %v795_v57 = vmul.f32 %v10558_v34, %v10558_v34  ;;  %13774 = vst [vmem:[#allocation55_spill] sm:$0xff] %v10692_v19 }
 0x2a1   : > { %5157 = vadd.xlane.f32.xlu1 %v5156_v12  ;;  %v798_v12 = vmul.f32 %v10564_v1, %v10564_v1  ;;  %v898_v31 = vsel %vm614_vm1, %v806_v7, 0.0 }
 0x2a2   : > { %v865_v61 = vsel %vm614_vm1, %v795_v57, 0.0 }
 0x2a3   : > { %857 = vadd.xlane.f32.xlu0 %v856_v46  ;;  %v777_v46 = vmul.f32 %v10571_v25, %v10571_v25  ;;  %v874_v32 = vsel %vm614_vm1, %v798_v12, 0.0 }
 0x2a5   : > { %818 = vadd.xlane.f32.xlu1 %v817_v2  ;;  %v780_v2 = vmul.f32 %v10578_v0, %v10578_v0  ;;  %v811_v57 = vsel %vm614_vm1, %v777_v46, 0.0 }
 0x2a7   : > { %827 = vadd.xlane.f32.xlu0 %v826_v3  ;;  %v793_v3 = vmul.f32 %v10585_v9, %v10585_v9  ;;  %v820_v12 = vsel %vm614_vm1, %v780_v2, 0.0 }
 0x2a9   : > { %866 = vadd.xlane.f32.xlu1 %v865_v61  ;;  %v796_v61 = vmul.f32 %v10592_v58, %v10592_v58  ;;  %v859_v46 = vsel %vm614_vm1, %v793_v3, 0.0 }
 0x2ab   : > { %875 = vadd.xlane.f32.xlu0 %v874_v32  ;;  %v783_v32 = vmul.f32 %v10599_v40, %v10599_v40  ;;  %v868_v2 = vsel %vm614_vm1, %v796_v61, 0.0 }
 0x2ad   : > { %812 = vadd.xlane.f32.xlu1 %v811_v57  ;;  %v786_v57 = vmul.f32 %v10606_v24, %v10606_v24  ;;  %v829_v3 = vsel %vm614_vm1, %v783_v32, 0.0 }
 0x2af   : > { %821 = vadd.xlane.f32.xlu0 %v820_v12  ;;  %v799_v12 = vmul.f32 %v10613_v20, %v10613_v20  ;;  %v838_v61 = vsel %vm614_vm1, %v786_v57, 0.0 }
 0x2b1   : > { %860 = vadd.xlane.f32.xlu1 %v859_v46  ;;  %v802_v46 = vmul.f32 %v10620_v10, %v10620_v10  ;;  %v877_v32 = vsel %vm614_vm1, %v799_v12, 0.0 }
 0x2b3   : > { %869 = vadd.xlane.f32.xlu0 %v868_v2  ;;  %v781_v2 = vmul.f32 %v10627_v50, %v10627_v50  ;;  %v886_v57 = vsel %vm614_vm1, %v802_v46, 0.0 }
 0x2b5   : > { %830 = vadd.xlane.f32.xlu1 %v829_v3  ;;  %v784_v3 = vmul.f32 %v10634_v21, %v10634_v21  ;;  %v823_v12 = vsel %vm614_vm1, %v781_v2, 0.0 }
 0x2b7   : > { %839 = vadd.xlane.f32.xlu0 %v838_v61  ;;  %v797_v61 = vmul.f32 %v10641_v55, %v10641_v55  ;;  %v832_v46 = vsel %vm614_vm1, %v784_v3, 0.0  ;;  %v13780_v55 = vld [vmem:[#allocation41_spill] sm:$0xff] }
 0x2b9   : > { %878 = vadd.xlane.f32.xlu1 %v877_v32  ;;  %v800_v32 = vmul.f32 %v10648_v52, %v10648_v52  ;;  %v871_v2 = vsel %vm614_vm1, %v797_v61, 0.0  ;;  %v737_v61 = vmul.f32 0.015625, %v10518_v15  ;;  %v13775_v15 = vld [vmem:[#allocation25_spill] sm:$0xff] }
 0x2bb   : > { %887 = vadd.xlane.f32.xlu0 %v886_v57  ;;  %v787_v57 = vmul.f32 %v10655_v4, %v10655_v4  ;;  %v10701_v4 = vsub.f32 %v13775_v15, %v737_v61 }
 0x2bd   : > { %824 = vadd.xlane.f32.xlu1 %v823_v12  ;;  %v880_v12 = vsel %vm614_vm1, %v800_v32, 0.0  ;;  %v740_v32 = vmul.f32 0.015625, %v10502_v47  ;;  %13776 = vst [vmem:[#allocation25_spill] sm:$0xff] %v10701_v4  ;;  %v801_v61 = vmul.f32 %v10701_v4, %v10701_v4 }
 0x2bf   : > { %833 = vadd.xlane.f32.xlu0 %v832_v46  ;;  %v841_v46 = vsel %vm614_vm1, %v787_v57, 0.0  ;;  %v889_v57 = vsel %vm614_vm1, %v803_v59, 0.0  ;;  %v10707_v37 = vsub.f32 %v13777_v60, %v740_v32  ;;  %v883_v7 = vsel %vm614_vm1, %v801_v61, 0.0 }
 0x2c1   : > { %872 = vadd.xlane.f32.xlu1 %v871_v2  ;;  %13778 = vst [vmem:[#allocation36_spill] sm:$0xff] %v10707_v37  ;;  %v804_v32 = vmul.f32 %v10707_v37, %v10707_v37 }
 0x2c2   : > { %v10679_v3 = vpop.xlane.xlu0 %5079 }
 0x2c3   : > { %881 = vadd.xlane.f32.xlu0 %v880_v12  ;;  %v850_v12 = vsel %vm614_vm1, %v790_v56, 0.0  ;;  %v788_v56 = vmul.f32 %v10692_v19, %v10692_v19 }
 0x2c5   : > { %842 = vadd.xlane.f32.xlu1 %v841_v46  ;;  %v785_v46 = vmul.f32 %v10685_v49, %v10685_v49  ;;  %v844_v49 = vsel %vm614_vm1, %v788_v56, 0.0 }
 0x2c6   : > { %v10695_v2 = vpop.xlane.xlu0 %5082 }
 0x2c7   : > { %851 = vadd.xlane.f32.xlu0 %v850_v12  ;;  %v835_v12 = vsel %vm614_vm1, %v785_v46, 0.0 }
 0x2c9   : > { %890 = vadd.xlane.f32.xlu1 %v889_v57 }
 0x2ca   : > { %v5131_v47 = vpop.xlane.xlu0 %5130 }
 0x2cb   : > { %899 = vadd.xlane.f32.xlu0 %v898_v31  ;;  %v892_v31 = vsel %vm614_vm1, %v804_v32, 0.0  ;;  %v5187_v50 = vmul.f32 0.015625, %v5131_v47 }
 0x2cd   : > { %836 = vadd.xlane.f32.xlu1 %v835_v12 }
 0x2ce   : > { %v5077_v59 = vpop.xlane.xlu0 %5076 }
 0x2cf   : > { %845 = vadd.xlane.f32.xlu0 %v844_v49 }
 0x2d0   : > { %v662_v57 = vpop.xlane.xlu1 %661 }
 0x2d1   : > { %v727_v29 = vmul.f32 0.015625, %v662_v57  ;;  %884 = vadd.xlane.f32.xlu1 %v883_v7  ;;  %v13782_v7 = vld [vmem:[#allocation42_spill] sm:$0xff] }
 0x2d2   : > { %v5125_v4 = vpop.xlane.xlu0 %5124 }
 0x2d3   : > { %v10721_v46 = vsub.f32 %v10402_v38, %v727_v29  ;;  %893 = vadd.xlane.f32.xlu0 %v892_v31 }
 0x2d4   : > { %v710_v12 = vpop.xlane.xlu1 %709 }
 0x2d5   : > { %13779 = vst [vmem:[#allocation56_spill] sm:$0xff] %v10721_v46  ;;  %v743_v19 = vmul.f32 0.015625, %v710_v12  ;;  %v791_v56 = vmul.f32 %v10721_v46, %v10721_v46 }
 0x2d6   : > { %v5095_v29 = vpop.xlane.xlu0 %5094 }
 0x2d7   : > { %v10726_v37 = vsub.f32 %v13780_v55, %v743_v19  ;;  %v853_v49 = vsel %vm614_vm1, %v791_v56, 0.0  ;;  %v13784_v56 = vld [vmem:[#allocation43_spill] sm:$0xff] }
 0x2d8   : > { %v656_v61 = vpop.xlane.xlu1 %655  ;;  %854 = vadd.xlane.f32.xlu1 %v853_v49 }
 0x2d9   : > { %13781 = vst [vmem:[#allocation41_spill] sm:$0xff] %v10726_v37  ;;  %v725_v57 = vmul.f32 0.015625, %v656_v61  ;;  %v807_v32 = vmul.f32 %v10726_v37, %v10726_v37 }
 0x2da   : > { %v5143_v61 = vpop.xlane.xlu0 %5142 }
 0x2db   : > { %v10732_v31 = vsub.f32 %v13782_v7, %v725_v57  ;;  %v901_v12 = vsel %vm614_vm1, %v807_v32, 0.0  ;;  %v10744_v32 = vsub.f32 %v10135_v36, %v5187_v50 }
 0x2dc   : > { %v704_v52 = vpop.xlane.xlu1 %703  ;;  %902 = vadd.xlane.f32.xlu1 %v901_v12  ;;  %v5169_v12 = vmul.f32 0.015625, %v5077_v59  ;;  %v5175_v59 = vmul.f32 0.015625, %v5095_v29 }
 0x2dd   : > { %13783 = vst [vmem:[#allocation42_spill] sm:$0xff] %v10732_v31  ;;  %v741_v46 = vmul.f32 0.015625, %v704_v52  ;;  %v789_v19 = vmul.f32 %v10732_v31, %v10732_v31  ;;  %13786 = vst [vmem:[#allocation57_spill] sm:$0xff] %v10744_v32  ;;  %v5185_v31 = vmul.f32 0.015625, %v5125_v4 }
 0x2de   : > { %v5089_v47 = vpop.xlane.xlu0 %5088 }
 0x2df   : > { %v10738_v21 = vsub.f32 %v13784_v56, %v741_v46  ;;  %v847_v49 = vsel %vm614_vm1, %v789_v19, 0.0  ;;  %v5251_v46 = vmul.f32 %v10744_v32, %v10744_v32  ;;  %v10750_v19 = vsub.f32 %v10143_v39, %v5169_v12 }
 0x2e0   : > { %v5128_v37 = vpop.xlane.xlu1 %5127  ;;  %848 = vadd.xlane.f32.xlu1 %v847_v49  ;;  %v10757_v50 = vsub.f32 %v10150_v42, %v5185_v31  ;;  %v5173_v29 = vmul.f32 0.015625, %v5089_v47 }
 0x2e1   : > { %13785 = vst [vmem:[#allocation43_spill] sm:$0xff] %v10738_v21  ;;  %v805_v57 = vmul.f32 %v10738_v21, %v10738_v21  ;;  %13787 = vst [vmem:[#allocation58_spill] sm:$0xff] %v10750_v19  ;;  %v5170_v21 = vmul.f32 0.015625, %v10679_v3  ;;  %v5233_v36 = vmul.f32 %v10750_v19, %v10750_v19  ;;  %v10766_v3 = vsub.f32 %v10199_v5, %v5175_v59 }
 0x2e2   : > { %13788 = vst [vmem:[#allocation59_spill] sm:$0xff] %v10757_v50  ;;  %v5249_v4 = vmul.f32 %v10757_v50, %v10757_v50  ;;  %v5186_v12 = vmul.f32 0.015625, %v5128_v37  ;;  %v10784_v37 = vsub.f32 %v10214_v14, %v5173_v29 }
 0x2e3   : > { %v895_v52 = vsel %vm614_vm1, %v805_v57, 0.0  ;;  %v5137_v57 = vpop.xlane.xlu0 %5136  ;;  %v10761_v39 = vsub.f32 %v10093_v6, %v5170_v21  ;;  %13790 = vst [vmem:[#allocation61_spill] sm:$0xff] %v10766_v3  ;;  %v5239_v6 = vmul.f32 %v10766_v3, %v10766_v3  ;;  %v13792_v21 = vld [vmem:[#allocation6_spill] sm:$0xff]  ;;  %v13858_v3 = vld [vmem:[#allocation27_spill] sm:$0xff] }
 0x2e4   : > { %v5074_v20 = vpop.xlane.xlu1 %5073  ;;  %896 = vadd.xlane.f32.xlu1 %v895_v52  ;;  %v5191_v52 = vmul.f32 0.015625, %v5143_v61  ;;  %13794 = vst [vmem:[#allocation63_spill] sm:$0xff] %v10784_v37  ;;  %v5189_v59 = vmul.f32 0.015625, %v5137_v57 }
 0x2e5   : > { %13789 = vst [vmem:[#allocation60_spill] sm:$0xff] %v10761_v39  ;;  %v5234_v61 = vmul.f32 %v10761_v39, %v10761_v39 }
 0x2e6   : > { %v10770_v42 = vsub.f32 %v10210_v13, %v5191_v52  ;;  %v10797_v29 = vsub.f32 %v10222_v17, %v5189_v59 }
 0x2e7   : > { %v5107_v31 = vpop.xlane.xlu0 %5106 }
 0x2e8   : > { %v5122_v49 = vpop.xlane.xlu1 %5121  ;;  %13791 = vst [vmem:[#allocation62_spill] sm:$0xff] %v10770_v42  ;;  %v5255_v13 = vmul.f32 %v10770_v42, %v10770_v42  ;;  %13796 = vst [vmem:[#allocation65_spill] sm:$0xff] %v10797_v29  ;;  %v5253_v17 = vmul.f32 %v10797_v29, %v10797_v29 }
 0x2e9   : > { %5334 = vrot.lane.b32.xlu0 %v5251_v46, %s9941_s20  ;;  %v10777_v46 = vsub.f32 %v13792_v21, %v5186_v12  ;;  %v5171_v12 = vmul.f32 0.015625, %v10695_v2 }
 0x2eb   : > { %13793 = vst [vmem:[#allocation6_spill] sm:$0xff] %v10777_v46  ;;  %v5250_v47 = vmul.f32 %v10777_v46, %v10777_v46  ;;  %v10807_v2 = vsub.f32 %v10123_v30, %v5171_v12 }
 0x2ec   : > { %v5092_v32 = vpop.xlane.xlu1 %5091 }
 0x2ed   : > { %5298 = vrot.lane.b32.xlu0 %v5233_v36, %s9941_s20  ;;  %v5168_v36 = vmul.f32 0.015625, %v5074_v20  ;;  %v5155_v20 = vpop.xlane.xlu0 %5154  ;;  %13798 = vst [vmem:[#allocation67_spill] sm:$0xff] %v10807_v2  ;;  %v5235_v59 = vmul.f32 %v10807_v2, %v10807_v2 }
 0x2ef   : > { %v10789_v52 = vsub.f32 %v10099_v11, %v5168_v36  ;;  %v5179_v11 = vmul.f32 0.015625, %v5107_v31 }
 0x2f0   : > { %v5140_v5 = vpop.xlane.xlu1 %5139 }
 0x2f1   : > { %5330 = vrot.lane.b32.xlu0 %v5249_v4, %s9941_s20  ;;  %13795 = vst [vmem:[#allocation64_spill] sm:$0xff] %v10789_v52  ;;  %v5184_v4 = vmul.f32 0.015625, %v5122_v49  ;;  %v5232_v57 = vmul.f32 %v10789_v52, %v10789_v52  ;;  %v5101_v21 = vpop.xlane.xlu0 %5100  ;;  %v10812_v36 = vsub.f32 %v10294_v16, %v5179_v11 }
 0x2f3   : > { %v10802_v49 = vsub.f32 %v10106_v18, %v5184_v4  ;;  %13799 = vst [vmem:[#allocation68_spill] sm:$0xff] %v10812_v36  ;;  %v5174_v18 = vmul.f32 0.015625, %v5092_v32  ;;  %v5243_v16 = vmul.f32 %v10812_v36, %v10812_v36 }
 0x2f4   : > { %v5086_v14 = vpop.xlane.xlu1 %5085 }
 0x2f5   : > { %5310 = vrot.lane.b32.xlu0 %v5239_v6, %s9941_s20  ;;  %5300 = vrot.lane.b32.xlu1 %v5234_v61, %s9941_s20  ;;  %v5237_v61 = vmul.f32 %v10784_v37, %v10784_v37  ;;  %13797 = vst [vmem:[#allocation66_spill] sm:$0xff] %v10802_v49  ;;  %v5195_v6 = vmul.f32 0.015625, %v5155_v20  ;;  %v5248_v31 = vmul.f32 %v10802_v49, %v10802_v49  ;;  %v5190_v20 = vmul.f32 0.015625, %v5140_v5  ;;  %v5149_v32 = vpop.xlane.xlu0 %5148 }
 0x2f6   : > { %v10826_v4 = vsub.f32 %v10159_v44, %v5174_v18  ;;  %v5193_v44 = vmul.f32 0.015625, %v5149_v32  ;;  %v5172_v5 = vmul.f32 0.015625, %v5086_v14 }
 0x2f7   : > { %v10819_v30 = vsub.f32 %v10306_v26, %v5195_v6  ;;  %v10838_v11 = vsub.f32 %v10164_v48, %v5190_v20 }
 0x2f8   : > { %13801 = vst [vmem:[#allocation70_spill] sm:$0xff] %v10826_v4 }
 0x2f9   : > { %5342 = vrot.lane.b32.xlu0 %v5255_v13, %s9941_s20  ;;  %5332 = vrot.lane.b32.xlu1 %v5250_v47, %s9941_s20  ;;  %v5134_v13 = vpop.xlane.xlu1 %5133  ;;  %13800 = vst [vmem:[#allocation69_spill] sm:$0xff] %v10819_v30  ;;  %v5177_v47 = vmul.f32 0.015625, %v5101_v21  ;;  %v5259_v26 = vmul.f32 %v10819_v30, %v10819_v30  ;;  %13803 = vst [vmem:[#allocation72_spill] sm:$0xff] %v10838_v11  ;;  %v10847_v21 = vsub.f32 %v13775_v15, %v5193_v44 }
 0x2fa   : > { %v5188_v48 = vmul.f32 0.015625, %v5134_v13 }
 0x2fb   : > { %v10833_v12 = vsub.f32 %v10312_v28, %v5177_v47  ;;  %v5254_v28 = vmul.f32 %v10838_v11, %v10838_v11  ;;  %13804 = vst [vmem:[#allocation73_spill] sm:$0xff] %v10847_v21  ;;  %v5257_v14 = vmul.f32 %v10847_v21, %v10847_v21 }
 0x2fc   : > { %v10859_v47 = vsub.f32 %v10174_v54, %v5188_v48 }
 0x2fd   : > { %5306 = vrot.lane.b32.xlu0 %v5237_v61, %s9941_s20  ;;  %5296 = vrot.lane.b32.xlu1 %v5232_v57, %s9941_s20  ;;  %13802 = vst [vmem:[#allocation71_spill] sm:$0xff] %v10833_v12  ;;  %v5104_v61 = vpop.xlane.xlu1 %5103  ;;  %v5238_v57 = vmul.f32 %v10826_v4, %v10826_v4  ;;  %v5241_v6 = vmul.f32 %v10833_v12, %v10833_v12 }
 0x2fe   : > { %13806 = vst [vmem:[#allocation75_spill] sm:$0xff] %v10859_v47  ;;  %v5178_v15 = vmul.f32 0.015625, %v5104_v61  ;;  %v5252_v13 = vmul.f32 %v10859_v47, %v10859_v47 }
 0x301   : > { %5338 = vrot.lane.b32.xlu0 %v5253_v17, %s9941_s20  ;;  %5328 = vrot.lane.b32.xlu1 %v5248_v31, %s9941_s20  ;;  %v10850_v17 = vsub.f32 %v10169_v51, %v5172_v5  ;;  %v5152_v31 = vpop.xlane.xlu1 %5151 }
 0x303   : > { %13805 = vst [vmem:[#allocation74_spill] sm:$0xff] %v10850_v17  ;;  %v5236_v18 = vmul.f32 %v10850_v17, %v10850_v17 }
 0x305   : > { %5318 = vrot.lane.b32.xlu0 %v5243_v16, %s9941_s20  ;;  %5302 = vrot.lane.b32.xlu1 %v5235_v59, %s9941_s20  ;;  %v5098_v51 = vpop.xlane.xlu1 %5097  ;;  %v10866_v59 = vsub.f32 %v10240_v23, %v5178_v15  ;;  %v5194_v16 = vmul.f32 0.015625, %v5152_v31 }
 0x306   : > { %v5176_v61 = vmul.f32 0.015625, %v5098_v51 }
 0x307   : > { %13807 = vst [vmem:[#allocation76_spill] sm:$0xff] %v10866_v59  ;;  %v5242_v54 = vmul.f32 %v10866_v59, %v10866_v59 }
 0x308   : > { %v10883_v48 = vsub.f32 %v10254_v41, %v5176_v61 }
 0x309   : > { %5350 = vrot.lane.b32.xlu0 %v5259_v26, %s9941_s20  ;;  %5308 = vrot.lane.b32.xlu1 %v5238_v57, %s9941_s20  ;;  %v10872_v26 = vsub.f32 %v10246_v27, %v5194_v16  ;;  %v5146_v44 = vpop.xlane.xlu1 %5145 }
 0x30a   : > { %13810 = vst [vmem:[#allocation79_spill] sm:$0xff] %v10883_v48  ;;  %v5192_v27 = vmul.f32 0.015625, %v5146_v44  ;;  %v5240_v15 = vmul.f32 %v10883_v48, %v10883_v48 }
 0x30b   : > { %13808 = vst [vmem:[#allocation77_spill] sm:$0xff] %v10872_v26 }
 0x30c   : > { %v10895_v51 = vsub.f32 %v10260_v43, %v5192_v27 }
 0x30d   : > { %5314 = vrot.lane.b32.xlu0 %v5241_v6, %s9941_s20  ;;  %5340 = vrot.lane.b32.xlu1 %v5254_v28, %s9941_s20  ;;  %v5258_v28 = vmul.f32 %v10872_v26, %v10872_v26 }
 0x30e   : > { %13812 = vst [vmem:[#allocation81_spill] sm:$0xff] %v10895_v51 }
 0x311   : > { %5346 = vrot.lane.b32.xlu0 %v5257_v14, %s9941_s20  ;;  %5304 = vrot.lane.b32.xlu1 %v5236_v18, %s9941_s20 }
 0x314   : > { %v5119_v20 = vpop.xlane.xlu0 %5118 }
 0x315   : > { %v5183_v32 = vmul.f32 0.015625, %v5119_v20  ;;  %5336 = vrot.lane.b32.xlu1 %v5252_v13, %s9941_s20 }
 0x317   : > { %v10875_v57 = vsub.f32 %v10402_v38, %v5183_v32  ;;  %v5256_v32 = vmul.f32 %v10895_v51, %v10895_v51 }
 0x318   : > { %v5167_v5 = vpop.xlane.xlu0 %5166 }
 0x319   : > { %13809 = vst [vmem:[#allocation78_spill] sm:$0xff] %v10875_v57  ;;  %v5247_v23 = vmul.f32 %v10875_v57, %v10875_v57  ;;  %v5199_v6 = vmul.f32 0.015625, %v5167_v5  ;;  %5316 = vrot.lane.b32.xlu1 %v5242_v54, %s9941_s20 }
 0x31b   : > { %v10886_v31 = vsub.f32 %v13780_v55, %v5199_v6  ;;  %5326 = vrot.lane.b32.xlu0 %v5247_v23, %s9941_s20 }
 0x31c   : > { %v5113_v38 = vpop.xlane.xlu0 %5112 }
 0x31d   : > { %13811 = vst [vmem:[#allocation80_spill] sm:$0xff] %v10886_v31  ;;  %v5263_v14 = vmul.f32 %v10886_v31, %v10886_v31  ;;  %v5181_v18 = vmul.f32 0.015625, %v5113_v38  ;;  %5348 = vrot.lane.b32.xlu1 %v5258_v28, %s9941_s20 }
 0x31f   : > { %v10898_v41 = vsub.f32 %v13782_v7, %v5181_v18  ;;  %5358 = vrot.lane.b32.xlu0 %v5263_v14, %s9941_s20 }
 0x320   : > { %v5161_v55 = vpop.xlane.xlu0 %5160 }
 0x321   : > { %13813 = vst [vmem:[#allocation82_spill] sm:$0xff] %v10898_v41  ;;  %v5245_v13 = vmul.f32 %v10898_v41, %v10898_v41  ;;  %v5197_v16 = vmul.f32 0.015625, %v5161_v55  ;;  %5312 = vrot.lane.b32.xlu1 %v5240_v15, %s9941_s20 }
 0x322   : > { %v5116_v20 = vpop.xlane.xlu1 %5115 }
 0x323   : > { %v10907_v54 = vsub.f32 %v13784_v56, %v5197_v16  ;;  %v5182_v43 = vmul.f32 0.015625, %v5116_v20  ;;  %5322 = vrot.lane.b32.xlu0 %v5245_v13, %s9941_s20 }
 0x324   : > { %v816_v7 = vpop.xlane.xlu0 %815 }
 0x325   : > { %13814 = vst [vmem:[#allocation83_spill] sm:$0xff] %v10907_v54  ;;  %v5261_v61 = vmul.f32 %v10907_v54, %v10907_v54  ;;  %v10913_v44 = vsub.f32 %v10354_v45, %v5182_v43  ;;  %v906_v5 = vmul.f32 0.015625, %v816_v7  ;;  %5344 = vrot.lane.b32.xlu1 %v5256_v32, %s9941_s20 }
 0x326   : > { %v5164_v23 = vpop.xlane.xlu1 %5163 }
 0x327   : > { %13815 = vst [vmem:[#allocation84_spill] sm:$0xff] %v10913_v44  ;;  %v5246_v6 = vmul.f32 %v10913_v44, %v10913_v44  ;;  %v938_v28 = vadd.f32 1e-12, %v906_v5  ;;  %v5198_v56 = vmul.f32 0.015625, %v5164_v23  ;;  %5354 = vrot.lane.b32.xlu0 %v5261_v61, %s9941_s20 }
 0x328   : > { %v864_v27 = vpop.xlane.xlu0 %863 }
 0x329   : > { %9784 = vrsqrt.f32 %v938_v28  ;;  %v10920_v38 = vsub.f32 %v10358_v53, %v5198_v56  ;;  %v922_v14 = vmul.f32 0.015625, %v864_v27  ;;  %5324 = vrot.lane.b32.xlu1 %v5246_v6, %s9941_s20 }
 0x32a   : > { %v5110_v45 = vpop.xlane.xlu1 %5109 }
 0x32b   : > { %13816 = vst [vmem:[#allocation85_spill] sm:$0xff] %v10920_v38  ;;  %v5262_v18 = vmul.f32 %v10920_v38, %v10920_v38  ;;  %v954_v15 = vadd.f32 1e-12, %v922_v14  ;;  %v5180_v55 = vmul.f32 0.015625, %v5110_v45  ;;  %v9912_v14 = vld [vmem:[%s13578_s3] sm:$0xff] }
 0x32c   : > { %v810_v13 = vpop.xlane.xlu0 %809  ;;  %v13819_v45 = vld [vmem:[#allocation5_spill] sm:$0xff] }
 0x32d   : > { %9786 = vrsqrt.f32 %v954_v15  ;;  %v10926_v16 = vsub.f32 %v10368_v62, %v5180_v55  ;;  %v904_v20 = vmul.f32 0.015625, %v810_v13  ;;  %5356 = vrot.lane.b32.xlu1 %v5262_v18, %s9941_s20  ;;  %v13820_v18 = vsub.s32 1, %v13819_v45 }
 0x32e   : > { %v5158_v32 = vpop.xlane.xlu1 %5157 }
 0x32f   : > { %13817 = vst [vmem:[#allocation86_spill] sm:$0xff] %v10926_v16  ;;  %v5244_v53 = vmul.f32 %v10926_v16, %v10926_v16  ;;  %v936_v43 = vadd.f32 1e-12, %v904_v20  ;;  %v5196_v7 = vmul.f32 0.015625, %v5158_v32  ;;  %v10942_v15 = vrot.slane %v9912_v14, %v13820_v18 }
 0x330   : > { %v858_v61 = vpop.xlane.xlu0 %857 }
 0x331   : > { %9788 = vrsqrt.f32 %v936_v43  ;;  %v10932_v5 = vsub.f32 %v13777_v60, %v5196_v7  ;;  %v920_v23 = vmul.f32 0.015625, %v858_v61  ;;  %5320 = vrot.lane.b32.xlu1 %v5244_v53, %s9941_s20  ;;  %13821 = vst [vmem:[#allocation88_spill] sm:$0xff] %v10942_v15  ;;  %v1070_v60 = vsub.s32 2, %v13819_v45 }
 0x332   : > { %v819_v6 = vpop.xlane.xlu1 %818 }
 0x333   : > { %13818 = vst [vmem:[#allocation87_spill] sm:$0xff] %v10932_v5  ;;  %v9785_v62 = vpop.eup %9784  ;;  %v5260_v28 = vmul.f32 %v10932_v5, %v10932_v5  ;;  %v952_v56 = vadd.f32 1e-12, %v920_v23  ;;  %v907_v27 = vmul.f32 0.015625, %v819_v6  ;;  %v10947_v23 = vrot.slane %v9912_v14, %v1070_v60 }
 0x334   : > { %v828_v55 = vpop.xlane.xlu0 %827  ;;  %v1002_v13 = vmul.f32 %v9785_v62, %v10515_v8  ;;  %v1106_v6 = vsub.s32 3, %v13819_v45 }
 0x335   : > { %9790 = vrsqrt.f32 %v952_v56  ;;  %v939_v20 = vadd.f32 1e-12, %v907_v27  ;;  %v910_v32 = vmul.f32 0.015625, %v828_v55  ;;  %5352 = vrot.lane.b32.xlu1 %v5260_v28, %s9941_s20  ;;  %13822 = vst [vmem:[#allocation89_spill] sm:$0xff] %v10947_v23 }
 0x336   : > { %v867_v53 = vpop.xlane.xlu1 %866  ;;  %v1038_v5 = vmul.f32 %v10942_v15, %v1002_v13  ;;  %v10952_v16 = vrot.slane %v9912_v14, %v1106_v6 }
 0x337   : > { %v9787_v43 = vpop.eup %9786  ;;  %v942_v7 = vadd.f32 1e-12, %v910_v32  ;;  %v923_v61 = vmul.f32 0.015625, %v867_v53  ;;  %9792 = vrsqrt.f32 %v939_v20  ;;  %v13824_v53 = vld [vmem:[#allocation44_spill] sm:$0xff] }
 0x338   : > { %v876_v18 = vpop.xlane.xlu0 %875  ;;  %v1018_v8 = vmul.f32 %v9787_v43, %v10521_v33  ;;  %13823 = vst [vmem:[#allocation90_spill] sm:$0xff] %v10952_v16  ;;  %v1074_v60 = vadd.f32 %v10947_v23, %v1038_v5 }
 0x339   : > { %9794 = vrsqrt.f32 %v942_v7  ;;  %v926_v54 = vmul.f32 0.015625, %v876_v18  ;;  %v955_v62 = vadd.f32 1e-12, %v923_v61 }
 0x33a   : > { %v813_v56 = vpop.xlane.xlu1 %812  ;;  %v1054_v13 = vmul.f32 %v10942_v15, %v1018_v8  ;;  %v1110_v14 = vmul.f32 %v10952_v16, %v1074_v60 }
 0x33b   : > { %v9789_v27 = vpop.eup %9788  ;;  %v958_v28 = vadd.f32 1e-12, %v926_v54  ;;  %v905_v55 = vmul.f32 0.015625, %v813_v56 }
 0x33c   : > { %v822_v32 = vpop.xlane.xlu0 %821  ;;  %v1000_v41 = vmul.f32 %v9789_v27, %v13824_v53  ;;  %v1090_v27 = vadd.f32 %v10947_v23, %v1054_v13  ;;  %v1146_v60 = vsel %vm614_vm1, %v1110_v14, 0.0 }
 0x33d   : > { %9796 = vrsqrt.f32 %v958_v28  ;;  %v937_v20 = vadd.f32 1e-12, %v905_v55  ;;  %v908_v38 = vmul.f32 0.015625, %v822_v32 }
 0x33e   : > { %9798 = vrsqrt.f32 %v955_v62  ;;  %v861_v7 = vpop.xlane.xlu1 %860  ;;  %v1036_v6 = vmul.f32 %v10942_v15, %v1000_v41  ;;  %v1126_v13 = vmul.f32 %v10952_v16, %v1090_v27 }
 0x33f   : > { %v9791_v33 = vpop.eup %9790  ;;  %v940_v43 = vadd.f32 1e-12, %v908_v38  ;;  %v921_v61 = vmul.f32 0.015625, %v861_v7  ;;  %9800 = vrsqrt.f32 %v937_v20 }
 0x340   : > { %v870_v54 = vpop.xlane.xlu0 %869  ;;  %v1016_v5 = vmul.f32 %v9791_v33, %v10538_v22  ;;  %v1072_v41 = vadd.f32 %v10947_v23, %v1036_v6 }
 0x341   : > { %9802 = vrsqrt.f32 %v940_v43  ;;  %v953_v18 = vadd.f32 1e-12, %v921_v61  ;;  %v924_v56 = vmul.f32 0.015625, %v870_v54  ;;  %v9793_v28 = vpop.eup %9792 }
 0x342   : > { %v831_v8 = vpop.xlane.xlu1 %830  ;;  %v1052_v62 = vmul.f32 %v10942_v15, %v1016_v5  ;;  %v1003_v61 = vmul.f32 %v9793_v28, %v10545_v35  ;;  %v1108_v6 = vmul.f32 %v10952_v16, %v1072_v41 }
 0x343   : > { %v9795_v55 = vpop.eup %9794  ;;  %v956_v38 = vadd.f32 1e-12, %v924_v56  ;;  %v911_v32 = vmul.f32 0.015625, %v831_v8  ;;  %9804 = vrsqrt.f32 %v953_v18 }
 0x344   : > { %v840_v53 = vpop.xlane.xlu0 %839  ;;  %v1006_v22 = vmul.f32 %v9795_v55, %v10550_v63  ;;  %v1088_v43 = vadd.f32 %v10947_v23, %v1052_v62  ;;  %v1194_v55 = vsel %vm614_vm1, %v1126_v13, 0.0  ;;  %v1039_v28 = vmul.f32 %v10942_v15, %v1003_v61 }
 0x345   : > { %9806 = vrsqrt.f32 %v956_v38  ;;  %v943_v20 = vadd.f32 1e-12, %v911_v32  ;;  %v914_v7 = vmul.f32 0.015625, %v840_v53 }
 0x346   : > { %1147 = vadd.xlane.f32.xlu0 %v1146_v60  ;;  %v879_v33 = vpop.xlane.xlu1 %878  ;;  %v1042_v63 = vmul.f32 %v10942_v15, %v1006_v22  ;;  %v1124_v35 = vmul.f32 %v10952_v16, %v1088_v43 }
 0x347   : > { %v9797_v54 = vpop.eup %9796  ;;  %v946_v5 = vadd.f32 1e-12, %v914_v7  ;;  %v927_v18 = vmul.f32 0.015625, %v879_v33  ;;  %9808 = vrsqrt.f32 %v943_v20 }
 0x348   : > { %v9799_v56 = vpop.eup %9798  ;;  %v888_v14 = vpop.xlane.xlu0 %887  ;;  %v1022_v8 = vmul.f32 %v9797_v54, %v10564_v1  ;;  %v1140_v1 = vsel %vm614_vm1, %v1108_v6, 0.0  ;;  %v1078_v7 = vadd.f32 %v10947_v23, %v1042_v63 }
 0x349   : > { %9810 = vrsqrt.f32 %v946_v5  ;;  %v930_v27 = vmul.f32 0.015625, %v888_v14  ;;  %v9801_v38 = vpop.eup %9800  ;;  %v959_v53 = vadd.f32 1e-12, %v927_v18  ;;  %v1019_v41 = vmul.f32 %v9799_v56, %v10558_v34 }
 0x34a   : > { %1195 = vadd.xlane.f32.xlu0 %v1194_v55  ;;  %v825_v62 = vpop.xlane.xlu1 %824  ;;  %v1058_v13 = vmul.f32 %v10942_v15, %v1022_v8  ;;  %v1001_v61 = vmul.f32 %v9801_v38, %v10571_v25  ;;  %v1188_v14 = vsel %vm614_vm1, %v1124_v35, 0.0  ;;  %v1075_v34 = vadd.f32 %v10947_v23, %v1039_v28 }
 0x34b   : > { %v9803_v32 = vpop.eup %9802  ;;  %v962_v60 = vadd.f32 1e-12, %v930_v27  ;;  %v909_v20 = vmul.f32 0.015625, %v825_v62  ;;  %v1055_v8 = vmul.f32 %v10942_v15, %v1019_v41  ;;  %v1114_v27 = vmul.f32 %v10952_v16, %v1078_v7 }
 0x34c   : > { %v834_v22 = vpop.xlane.xlu0 %833  ;;  %v1004_v33 = vmul.f32 %v9803_v32, %v10578_v0  ;;  %v1094_v62 = vadd.f32 %v10947_v23, %v1058_v13  ;;  %v1037_v35 = vmul.f32 %v10942_v15, %v1001_v61 }
 0x34d   : > { %9812 = vrsqrt.f32 %v962_v60  ;;  %v941_v54 = vadd.f32 1e-12, %v909_v20  ;;  %v912_v43 = vmul.f32 0.015625, %v834_v22  ;;  %v9805_v5 = vpop.eup %9804  ;;  %v1091_v7 = vadd.f32 %v10947_v23, %v1055_v8 }
 0x34e   : > { %1141 = vadd.xlane.f32.xlu0 %v1140_v1  ;;  %v873_v18 = vpop.xlane.xlu1 %872  ;;  %9814 = vrsqrt.f32 %v959_v53  ;;  %v1040_v55 = vmul.f32 %v10942_v15, %v1004_v33  ;;  %v1017_v60 = vmul.f32 %v9805_v5, %v10585_v9  ;;  %v1111_v1 = vmul.f32 %v10952_v16, %v1075_v34 }
 0x34f   : > { %v9807_v56 = vpop.eup %9806  ;;  %v944_v6 = vadd.f32 1e-12, %v912_v43  ;;  %v925_v63 = vmul.f32 0.015625, %v873_v18  ;;  %9816 = vrsqrt.f32 %v941_v54  ;;  %v1158_v33 = vsel %vm614_vm1, %v1114_v27, 0.0 }
 0x350   : > { %v882_v0 = vpop.xlane.xlu0 %881  ;;  %v1020_v25 = vmul.f32 %v9807_v56, %v10592_v58  ;;  %v1076_v13 = vadd.f32 %v10947_v23, %v1040_v55  ;;  %v1130_v9 = vmul.f32 %v10952_v16, %v1094_v62  ;;  %v1073_v5 = vadd.f32 %v10947_v23, %v1037_v35 }
 0x351   : > { %9818 = vrsqrt.f32 %v944_v6  ;;  %v928_v38 = vmul.f32 0.015625, %v882_v0  ;;  %v9809_v28 = vpop.eup %9808  ;;  %v957_v32 = vadd.f32 1e-12, %v925_v63  ;;  %v1053_v34 = vmul.f32 %v10942_v15, %v1017_v60 }
 0x352   : > { %1189 = vadd.xlane.f32.xlu0 %v1188_v14  ;;  %v843_v53 = vpop.xlane.xlu1 %842  ;;  %v1056_v54 = vmul.f32 %v10942_v15, %v1020_v25  ;;  %v1007_v56 = vmul.f32 %v9809_v28, %v10599_v40  ;;  %v1127_v0 = vmul.f32 %v10952_v16, %v1091_v7  ;;  %v1149_v27 = vsel %vm614_vm1, %v1111_v1, 0.0 }
 0x353   : > { %v9811_v20 = vpop.eup %9810  ;;  %v960_v41 = vadd.f32 1e-12, %v928_v38  ;;  %v915_v22 = vmul.f32 0.015625, %v843_v53  ;;  %v1112_v55 = vmul.f32 %v10952_v16, %v1076_v13  ;;  %v1206_v40 = vsel %vm614_vm1, %v1130_v9, 0.0 }
 0x354   : > { %v852_v58 = vpop.xlane.xlu0 %851  ;;  %v1010_v43 = vmul.f32 %v9811_v20, %v10606_v24  ;;  %v1092_v25 = vadd.f32 %v10947_v23, %v1056_v54  ;;  %v1109_v60 = vmul.f32 %v10952_v16, %v1073_v5  ;;  %v1089_v20 = vadd.f32 %v10947_v23, %v1053_v34 }
 0x355   : > { %9820 = vrsqrt.f32 %v960_v41  ;;  %v918_v61 = vmul.f32 0.015625, %v852_v58  ;;  %v947_v18 = vadd.f32 1e-12, %v915_v22  ;;  %v1043_v41 = vmul.f32 %v10942_v15, %v1007_v56 }
 0x356   : > { %9822 = vrsqrt.f32 %v957_v32  ;;  %1159 = vadd.xlane.f32.xlu0 %v1158_v33  ;;  %v891_v14 = vpop.xlane.xlu1 %890  ;;  %v1046_v38 = vmul.f32 %v10942_v15, %v1010_v43  ;;  %v1197_v33 = vsel %vm614_vm1, %v1127_v0, 0.0  ;;  %v1152_v54 = vsel %vm614_vm1, %v1112_v55, 0.0  ;;  %v13827_v0 = vld [vmem:[#allocation46_spill] sm:$0xff] }
 0x357   : > { %v9813_v6 = vpop.eup %9812  ;;  %v950_v63 = vadd.f32 1e-12, %v918_v61  ;;  %v931_v8 = vmul.f32 0.015625, %v891_v14  ;;  %v13825_v61 = vld [vmem:[#allocation45_spill] sm:$0xff]  ;;  %v13826_v14 = vld [vmem:[#allocation47_spill] sm:$0xff] }
 0x358   : > { %v900_v24 = vpop.xlane.xlu0 %899  ;;  %v9815_v62 = vpop.eup %9814  ;;  %v1026_v28 = vmul.f32 %v9813_v6, %v10620_v10  ;;  %v1128_v10 = vmul.f32 %v10952_v16, %v1092_v25  ;;  %v1082_v43 = vadd.f32 %v10947_v23, %v1046_v38  ;;  %v1143_v6 = vsel %vm614_vm1, %v1109_v60, 0.0  ;;  %v13828_v60 = vld [vmem:[#allocation49_spill] sm:$0xff] }
 0x359   : > { %9824 = vrsqrt.f32 %v950_v63  ;;  %v934_v35 = vmul.f32 0.015625, %v900_v24  ;;  %1150 = vadd.xlane.f32.xlu1 %v1149_v27  ;;  %v9817_v32 = vpop.eup %9816  ;;  %v963_v1 = vadd.f32 1e-12, %v931_v8  ;;  %v1023_v9 = vmul.f32 %v9815_v62, %v13825_v61 }
 0x35a   : > { %9826 = vrsqrt.f32 %v947_v18  ;;  %1207 = vadd.xlane.f32.xlu0 %v1206_v40  ;;  %v837_v53 = vpop.xlane.xlu1 %836  ;;  %v1062_v18 = vmul.f32 %v10942_v15, %v1026_v28  ;;  %v1125_v63 = vmul.f32 %v10952_v16, %v1089_v20  ;;  %v1079_v8 = vadd.f32 %v10947_v23, %v1043_v41 }
 0x35b   : > { %v9819_v22 = vpop.eup %9818  ;;  %v966_v7 = vadd.f32 1e-12, %v934_v35  ;;  %v913_v58 = vmul.f32 0.015625, %v837_v53  ;;  %v1005_v24 = vmul.f32 %v9817_v32, %v13827_v0  ;;  %v1200_v40 = vsel %vm614_vm1, %v1128_v10, 0.0 }
 0x35c   : > { %v846_v13 = vpop.xlane.xlu0 %845  ;;  %v1008_v34 = vmul.f32 %v9819_v22, %v13826_v14  ;;  %v1118_v28 = vmul.f32 %v10952_v16, %v1082_v43  ;;  %v1059_v53 = vmul.f32 %v10942_v15, %v1023_v9  ;;  %v1098_v32 = vadd.f32 %v10947_v23, %v1062_v18  ;;  %v13830_v18 = vld [vmem:[#allocation51_spill] sm:$0xff] }
 0x35d   : > { %9828 = vrsqrt.f32 %v966_v7  ;;  %v916_v5 = vmul.f32 0.015625, %v846_v13  ;;  %1198 = vadd.xlane.f32.xlu1 %v1197_v33  ;;  %v945_v55 = vadd.f32 1e-12, %v913_v58  ;;  %v1041_v7 = vmul.f32 %v10942_v15, %v1005_v24 }
 0x35e   : > { %1153 = vadd.xlane.f32.xlu0 %v1152_v54  ;;  %v885_v56 = vpop.xlane.xlu1 %884  ;;  %9830 = vrsqrt.f32 %v963_v1  ;;  %v1044_v41 = vmul.f32 %v10942_v15, %v1008_v34  ;;  %v13829_v54 = vld [vmem:[#allocation48_spill] sm:$0xff]  ;;  %v1191_v61 = vsel %vm614_vm1, %v1125_v63, 0.0  ;;  %v1115_v9 = vmul.f32 %v10952_v16, %v1079_v8 }
 0x35f   : > { %v9821_v27 = vpop.eup %9820  ;;  %v948_v25 = vadd.f32 1e-12, %v916_v5  ;;  %v929_v38 = vmul.f32 0.015625, %v885_v56  ;;  %v1095_v5 = vadd.f32 %v10947_v23, %v1059_v53  ;;  %v1170_v56 = vsel %vm614_vm1, %v1118_v28, 0.0 }
 0x360   : > { %v9823_v62 = vpop.eup %9822  ;;  %v894_v35 = vpop.xlane.xlu0 %893  ;;  %v1024_v22 = vmul.f32 %v9821_v27, %v13828_v60  ;;  %v1080_v0 = vadd.f32 %v10947_v23, %v1044_v41  ;;  %v1077_v63 = vadd.f32 %v10947_v23, %v1041_v7 }
 0x361   : > { %9832 = vrsqrt.f32 %v948_v25  ;;  %v932_v20 = vmul.f32 0.015625, %v894_v35  ;;  %1144 = vadd.xlane.f32.xlu1 %v1143_v6  ;;  %v961_v1 = vadd.f32 1e-12, %v929_v38  ;;  %v1021_v10 = vmul.f32 %v9823_v62, %v13829_v54  ;;  %v13831_v25 = vld [vmem:[#allocation50_spill] sm:$0xff] }
 0x362   : > { %1201 = vadd.xlane.f32.xlu0 %v1200_v40  ;;  %9834 = vrsqrt.f32 %v945_v55  ;;  %v1060_v13 = vmul.f32 %v10942_v15, %v1024_v22  ;;  %v1134_v6 = vmul.f32 %v10952_v16, %v1098_v32  ;;  %v1161_v35 = vsel %vm614_vm1, %v1115_v9, 0.0  ;;  %v13832_v32 = vld [vmem:[#allocation53_spill] sm:$0xff]  ;;  %v13833_v9 = vld [vmem:[#allocation52_spill] sm:$0xff] }
 0x363   : > { %v9825_v58 = vpop.eup %9824  ;;  %v964_v33 = vadd.f32 1e-12, %v932_v20  ;;  %v1057_v55 = vmul.f32 %v10942_v15, %v1021_v10  ;;  %v1131_v40 = vmul.f32 %v10952_v16, %v1095_v5  ;;  %v1116_v20 = vmul.f32 %v10952_v16, %v1080_v0 }
 0x364   : > { %v9827_v43 = vpop.eup %9826  ;;  %v1014_v14 = vmul.f32 %v9825_v58, %v13830_v18  ;;  %v1096_v8 = vadd.f32 %v10947_v23, %v1060_v13  ;;  %v1218_v22 = vsel %vm614_vm1, %v1134_v6, 0.0  ;;  %v1113_v7 = vmul.f32 %v10952_v16, %v1077_v63  ;;  %v13834_v6 = vld [vmem:[#allocation55_spill] sm:$0xff] }
 0x365   : > { %9836 = vrsqrt.f32 %v964_v33  ;;  %v855_v34 = vpop.xlane.xlu1 %854  ;;  %1192 = vadd.xlane.f32.xlu1 %v1191_v61  ;;  %v1011_v38 = vmul.f32 %v9827_v43, %v13831_v25  ;;  %v1093_v13 = vadd.f32 %v10947_v23, %v1057_v55  ;;  %v1209_v43 = vsel %vm614_vm1, %v1131_v40, 0.0 }
 0x366   : > { %9838 = vrsqrt.f32 %v961_v1  ;;  %v919_v24 = vmul.f32 0.015625, %v855_v34  ;;  %1171 = vadd.xlane.f32.xlu0 %v1170_v56  ;;  %v1050_v28 = vmul.f32 %v10942_v15, %v1014_v14  ;;  %v1132_v33 = vmul.f32 %v10952_v16, %v1096_v8 }
 0x367   : > { %v9829_v27 = vpop.eup %9828  ;;  %v1047_v54 = vmul.f32 %v10942_v15, %v1011_v38  ;;  %v1164_v34 = vsel %vm614_vm1, %v1116_v20, 0.0  ;;  %v1129_v25 = vmul.f32 %v10952_v16, %v1093_v13  ;;  %v13837_v13 = vld [vmem:[#allocation25_spill] sm:$0xff] }
 0x368   : > { %v951_v62 = vadd.f32 1e-12, %v919_v24  ;;  %v9831_v53 = vpop.eup %9830  ;;  %v1030_v41 = vmul.f32 %v9829_v27, %v13832_v32  ;;  %v1086_v61 = vadd.f32 %v10947_v23, %v1050_v28  ;;  %v11056_v24 = vpop.permute.xlu0 %5334  ;;  %v1155_v27 = vsel %vm614_vm1, %v1113_v7, 0.0 }
 0x369   : > { %v903_v60 = vpop.xlane.xlu1 %902  ;;  %1162 = vadd.xlane.f32.xlu1 %v1161_v35  ;;  %v1027_v5 = vmul.f32 %v9831_v53, %v13833_v9  ;;  %v1212_v55 = vsel %vm614_vm1, %v1132_v33, 0.0  ;;  %v1083_v38 = vadd.f32 %v10947_v23, %v1047_v54  ;;  %v13835_v53 = vld [vmem:[#allocation54_spill] sm:$0xff]  ;;  %v1203_v33 = vsel %vm614_vm1, %v1129_v25, 0.0  ;;  %v13838_v25 = vld [vmem:[#allocation56_spill] sm:$0xff] }
 0x36a   : > { %v935_v1 = vmul.f32 0.015625, %v903_v60  ;;  %1219 = vadd.xlane.f32.xlu0 %v1218_v22  ;;  %9840 = vrsqrt.f32 %v951_v62  ;;  %v1066_v56 = vmul.f32 %v10942_v15, %v1030_v41  ;;  %v1122_v40 = vmul.f32 %v10952_v16, %v1086_v61  ;;  %v13836_v41 = vld [vmem:[#allocation36_spill] sm:$0xff] }
 0x36b   : > { %v9833_v58 = vpop.eup %9832  ;;  %v1063_v28 = vmul.f32 %v10942_v15, %v1027_v5  ;;  %v1119_v61 = vmul.f32 %v10952_v16, %v1083_v38 }
 0x36c   : > { %v967_v10 = vadd.f32 1e-12, %v935_v1  ;;  %v9835_v18 = vpop.eup %9834  ;;  %v1012_v0 = vmul.f32 %v9833_v58, %v13834_v6  ;;  %v1102_v20 = vadd.f32 %v10947_v23, %v1066_v56  ;;  %v9942_v58 = vmov 0  }
 0x36d   : > { %v849_v14 = vpop.xlane.xlu1 %848  ;;  %1210 = vadd.xlane.f32.xlu1 %v1209_v43  ;;  %v1009_v60 = vmul.f32 %v9835_v18, %v13835_v53  ;;  %9781 = vset.pattern.permute.xlu0 %v9942_v58  ;;  %v1099_v9 = vadd.f32 %v10947_v23, %v1063_v28 }
 0x36e   : > { %v917_v63 = vmul.f32 0.015625, %v849_v14  ;;  %1165 = vadd.xlane.f32.xlu0 %v1164_v34  ;;  %9842 = vrsqrt.f32 %v967_v10  ;;  %v1048_v32 = vmul.f32 %v10942_v15, %v1012_v0  ;;  %9780 = vset.pattern.permute.xlu1 %v9942_v58  ;;  %v11070_v10 = vpop.permute.xlu0 %5298  ;;  %v1182_v34 = vsel %vm614_vm1, %v1122_v40, 0.0 }
 0x36f   : > { %v9837_v8 = vpop.eup %9836  ;;  %v1045_v5 = vmul.f32 %v10942_v15, %v1009_v60  ;;  %v1138_v56 = vmul.f32 %v10952_v16, %v1102_v20 }
 0x370   : > { %v9839_v62 = vpop.eup %9838  ;;  %v949_v35 = vadd.f32 1e-12, %v917_v63  ;;  %v1028_v1 = vmul.f32 %v9837_v8, %v13836_v41  ;;  %v1084_v6 = vadd.f32 %v10947_v23, %v1048_v32  ;;  %v1135_v8 = vmul.f32 %v10952_v16, %v1099_v9 }
 0x371   : > { %v897_v22 = vpop.xlane.xlu1 %896  ;;  %1156 = vadd.xlane.f32.xlu1 %v1155_v27  ;;  %v1025_v54 = vmul.f32 %v9839_v62, %v13837_v13  ;;  %v1173_v27 = vsel %vm614_vm1, %v1119_v61, 0.0  ;;  %v1230_v40 = vsel %vm614_vm1, %v1138_v56, 0.0 }
 0x372   : > { %v933_v7 = vmul.f32 0.015625, %v897_v22  ;;  %1213 = vadd.xlane.f32.xlu0 %v1212_v55  ;;  %9844 = vrsqrt.f32 %v949_v35  ;;  %v1064_v0 = vmul.f32 %v10942_v15, %v1028_v1  ;;  %v1081_v55 = vadd.f32 %v10947_v23, %v1045_v5  ;;  %v11087_v60 = vpop.permute.xlu0 %5330  ;;  %v13839_v1 = vld [vmem:[#allocation41_spill] sm:$0xff] }
 0x373   : > { %v1061_v63 = vmul.f32 %v10942_v15, %v1025_v54  ;;  %v1120_v28 = vmul.f32 %v10952_v16, %v1084_v6  ;;  %v1221_v20 = vsel %vm614_vm1, %v1135_v8, 0.0 }
 0x374   : > { %v965_v43 = vadd.f32 1e-12, %v933_v7  ;;  %v9841_v18 = vpop.eup %9840  ;;  %v1100_v53 = vadd.f32 %v10947_v23, %v1064_v0  ;;  %v1117_v32 = vmul.f32 %v10952_v16, %v1081_v55 }
 0x375   : > { %v5301_v14 = vpop.permute.xlu1 %5300  ;;  %1204 = vadd.xlane.f32.xlu1 %v1203_v33  ;;  %v1015_v38 = vmul.f32 %v9841_v18, %v13838_v25  ;;  %v1097_v22 = vadd.f32 %v10947_v23, %v1061_v63  ;;  %v1176_v13 = vsel %vm614_vm1, %v1120_v28, 0.0 }
 0x376   : > { %1183 = vadd.xlane.f32.xlu0 %v1182_v34  ;;  %9846 = vrsqrt.f32 %v965_v43  ;;  %v1136_v54 = vmul.f32 %v10952_v16, %v1100_v53  ;;  %v11097_v61 = vpop.permute.xlu0 %5310  ;;  %v1167_v9 = vsel %vm614_vm1, %v1117_v32, 0.0  ;;  %v13840_v34 = vld [vmem:[#allocation42_spill] sm:$0xff]  ;;  %v5398_v28 = vsel %vm614_vm1, %v5301_v14, 0.0 }
 0x377   : > { %v1051_v41 = vmul.f32 %v10942_v15, %v1015_v38  ;;  %v1133_v43 = vmul.f32 %v10952_v16, %v1097_v22  ;;  %v13841_v38 = vld [vmem:[#allocation43_spill] sm:$0xff] }
 0x378   : > { %v9843_v62 = vpop.eup %9842  ;;  %v1224_v63 = vsel %vm614_vm1, %v1136_v54, 0.0 }
 0x379   : > { %v5333_v35 = vpop.permute.xlu1 %5332  ;;  %1174 = vadd.xlane.f32.xlu1 %v1173_v27  ;;  %v1031_v7 = vmul.f32 %v9843_v62, %v13839_v1  ;;  %v1087_v5 = vadd.f32 %v10947_v23, %v1051_v41  ;;  %v1215_v27 = vsel %vm614_vm1, %v1133_v43, 0.0 }
 0x37a   : > { %1231 = vadd.xlane.f32.xlu0 %v1230_v40  ;;  %v5343_v53 = vpop.permute.xlu0 %5342 }
 0x37b   : > { %v1067_v18 = vmul.f32 %v10942_v15, %v1031_v7  ;;  %v1123_v8 = vmul.f32 %v10952_v16, %v1087_v5  ;;  %v5446_v7 = vsel %vm614_vm1, %v5333_v35, 0.0 }
 0x37c   : > { %v9845_v58 = vpop.eup %9844 }
 0x37d   : > { %v5297_v33 = vpop.permute.xlu1 %5296  ;;  %1222 = vadd.xlane.f32.xlu1 %v1221_v20  ;;  %v1013_v56 = vmul.f32 %v9845_v58, %v13840_v34  ;;  %v1103_v55 = vadd.f32 %v10947_v23, %v1067_v18  ;;  %v1185_v22 = vsel %vm614_vm1, %v1123_v8, 0.0 }
 0x37e   : > { %1177 = vadd.xlane.f32.xlu0 %v1176_v13  ;;  %v5307_v58 = vpop.permute.xlu0 %5306  ;;  %v5392_v8 = vsel %vm614_vm1, %v5297_v33, 0.0  ;;  %v5413_v33 = vsel %vm614_vm1, %v11097_v61, 0.0 }
 0x37f   : > { %v1049_v25 = vmul.f32 %v10942_v15, %v1013_v56  ;;  %v1139_v20 = vmul.f32 %v10952_v16, %v1103_v55 }
 0x380   : > { %v9847_v6 = vpop.eup %9846 }
 0x381   : > { %v5329_v0 = vpop.permute.xlu1 %5328  ;;  %1168 = vadd.xlane.f32.xlu1 %v1167_v9  ;;  %v1029_v62 = vmul.f32 %v9847_v6, %v13841_v38  ;;  %v1085_v32 = vadd.f32 %v10947_v23, %v1049_v25  ;;  %v1233_v13 = vsel %vm614_vm1, %v1139_v20, 0.0  ;;  %v5449_v38 = vsel %vm614_vm1, %v11056_v24, 0.0 }
 0x382   : > { %1225 = vadd.xlane.f32.xlu0 %v1224_v63  ;;  %v5440_v9 = vsel %vm614_vm1, %v5329_v0, 0.0  ;;  %v5339_v56 = vpop.permute.xlu0 %5338  ;;  %v5407_v24 = vsel %vm614_vm1, %v5307_v58, 0.0 }
 0x383   : > { %v1065_v41 = vmul.f32 %v10942_v15, %v1029_v62  ;;  %v1121_v14 = vmul.f32 %v10952_v16, %v1085_v32 }
 0x385   : > { %1216 = vadd.xlane.f32.xlu1 %v1215_v27  ;;  %v5303_v40 = vpop.permute.xlu1 %5302  ;;  %v1101_v54 = vadd.f32 %v10947_v23, %v1065_v41  ;;  %v1179_v5 = vsel %vm614_vm1, %v1121_v14, 0.0  ;;  %v5395_v27 = vsel %vm614_vm1, %v11070_v10, 0.0  ;;  %v5443_v10 = vsel %vm614_vm1, %v11087_v60, 0.0 }
 0x386   : > { %5399 = vadd.xlane.f32.xlu0 %v5398_v28  ;;  %v5401_v35 = vsel %vm614_vm1, %v5303_v40, 0.0  ;;  %v5319_v0 = vpop.permute.xlu0 %5318 }
 0x387   : > { %v1137_v18 = vmul.f32 %v10952_v16, %v1101_v54  ;;  %v5461_v54 = vsel %vm614_vm1, %v5343_v53, 0.0  ;;  %v5425_v58 = vsel %vm614_vm1, %v5319_v0, 0.0 }
 0x389   : > { %1186 = vadd.xlane.f32.xlu1 %v1185_v22  ;;  %v5309_v1 = vpop.permute.xlu1 %5308  ;;  %v1227_v6 = vsel %vm614_vm1, %v1137_v18, 0.0 }
 0x38a   : > { %5447 = vadd.xlane.f32.xlu0 %v5446_v7  ;;  %v5351_v28 = vpop.permute.xlu0 %5350  ;;  %v5410_v32 = vsel %vm614_vm1, %v5309_v1, 0.0 }
 0x38d   : > { %1234 = vadd.xlane.f32.xlu1 %v1233_v13  ;;  %v5341_v43 = vpop.permute.xlu1 %5340 }
 0x38e   : > { %5441 = vadd.xlane.f32.xlu0 %v5440_v9  ;;  %v5458_v25 = vsel %vm614_vm1, %v5341_v43, 0.0  ;;  %v5315_v20 = vpop.permute.xlu0 %5314  ;;  %v5455_v9 = vsel %vm614_vm1, %v5339_v56, 0.0 }
 0x391   : > { %1180 = vadd.xlane.f32.xlu1 %v1179_v5  ;;  %v5305_v34 = vpop.permute.xlu1 %5304 }
 0x392   : > { %5402 = vadd.xlane.f32.xlu0 %v5401_v35  ;;  %v5404_v7 = vsel %vm614_vm1, %v5305_v34, 0.0  ;;  %v5347_v14 = vpop.permute.xlu0 %5346  ;;  %v5419_v34 = vsel %vm614_vm1, %v5315_v20, 0.0  ;;  %v11155_v20 = vstv %s613_s24 }
 0x395   : > { %1228 = vadd.xlane.f32.xlu1 %v1227_v6  ;;  %v5337_v63 = vpop.permute.xlu1 %5336 }
 0x396   : > { %5396 = vadd.xlane.f32.xlu0 %v5395_v27  ;;  %v5452_v40 = vsel %vm614_vm1, %v5337_v63, 0.0  ;;  %v5327_v1 = vpop.permute.xlu0 %5326  ;;  %v5473_v27 = vsel %vm614_vm1, %v5351_v28, 0.0 }
 0x397   : > { %v5437_v28 = vsel %vm614_vm1, %v5327_v1, 0.0 }
 0x399   : > { %5393 = vadd.xlane.f32.xlu1 %v5392_v8  ;;  %v5317_v55 = vpop.permute.xlu1 %5316  ;;  %v5467_v8 = vsel %vm614_vm1, %v5347_v14, 0.0 }
 0x39a   : > { %5459 = vadd.xlane.f32.xlu0 %v5458_v25  ;;  %v5422_v18 = vsel %vm614_vm1, %v5317_v55, 0.0  ;;  %v5359_v35 = vpop.permute.xlu0 %5358 }
 0x39b   : > { %v5485_v55 = vsel %vm614_vm1, %v5359_v35, 0.0 }
 0x39d   : > { %v5349_v62 = vpop.permute.xlu1 %5348  ;;  %5450 = vadd.xlane.f32.xlu1 %v5449_v38 }
 0x39e   : > { %5453 = vadd.xlane.f32.xlu0 %v5452_v40  ;;  %v5470_v60 = vsel %vm614_vm1, %v5349_v62, 0.0  ;;  %v5323_v56 = vpop.permute.xlu0 %5322 }
 0x3a1   : > { %v5313_v22 = vpop.permute.xlu1 %5312  ;;  %5444 = vadd.xlane.f32.xlu1 %v5443_v10  ;;  %v5431_v10 = vsel %vm614_vm1, %v5323_v56, 0.0 }
 0x3a2   : > { %5414 = vadd.xlane.f32.xlu0 %v5413_v33  ;;  %v5416_v53 = vsel %vm614_vm1, %v5313_v22, 0.0  ;;  %v5355_v25 = vpop.permute.xlu0 %5354  ;;  %v9943_v22 = vmov 1966171168  }
 0x3a3   : > { %v5479_v62 = vsel %vm614_vm1, %v5355_v25, 0.0  ;;  %v1502_v33 = vunpack.c.l.s4 %v9943_v22 }
 0x3a5   : > { %v5345_v41 = vpop.permute.xlu1 %5344  ;;  %5411 = vadd.xlane.f32.xlu1 %v5410_v32 }
 0x3a6   : > { %5408 = vadd.xlane.f32.xlu0 %v5407_v24  ;;  %v5464_v61 = vsel %vm614_vm1, %v5345_v41, 0.0  ;;  %v1503_v41 = vunpack.c.0.s8 %v1502_v33 }
 0x3a9   : > { %v5325_v13 = vpop.permute.xlu1 %5324  ;;  %5405 = vadd.xlane.f32.xlu1 %v5404_v7  ;;  %v13842_v7 = vld [vmem:[#allocation15_spill] sm:$0xff] }
 0x3aa   : > { %5471 = vadd.xlane.f32.xlu0 %v5470_v60  ;;  %v5434_v38 = vsel %vm614_vm1, %v5325_v13, 0.0  ;;  %v11160_v60 = vsub.s32 %v1503_v41, %v13819_v45 }
 0x3ad   : > { %5462 = vadd.xlane.f32.xlu1 %v5461_v54  ;;  %v5357_v43 = vpop.permute.xlu1 %5356 }
 0x3ae   : > { %5465 = vadd.xlane.f32.xlu0 %v5464_v61  ;;  %v5482_v6 = vsel %vm614_vm1, %v5357_v43, 0.0 }
 0x3b1   : > { %5456 = vadd.xlane.f32.xlu1 %v5455_v9  ;;  %v5321_v5 = vpop.permute.xlu1 %5320 }
 0x3b2   : > { %5426 = vadd.xlane.f32.xlu0 %v5425_v58  ;;  %v5428_v40 = vsel %vm614_vm1, %v5321_v5, 0.0 }
 0x3b5   : > { %5423 = vadd.xlane.f32.xlu1 %v5422_v18  ;;  %v5353_v63 = vpop.permute.xlu1 %5352  ;;  %v13843_v18 = vld [vmem:[#allocation18_spill] sm:$0xff] }
 0x3b6   : > { %5420 = vadd.xlane.f32.xlu0 %v5419_v34  ;;  %v5476_v0 = vsel %vm614_vm1, %v5353_v63, 0.0 }
 0x3b9   : > { %5417 = vadd.xlane.f32.xlu1 %v5416_v53 }
 0x3ba   : > { %5483 = vadd.xlane.f32.xlu0 %v5482_v6 }
 0x3bd   : > { %5474 = vadd.xlane.f32.xlu1 %v5473_v27 }
 0x3be   : > { %5477 = vadd.xlane.f32.xlu0 %v5476_v0 }
 0x3c1   : > { %5468 = vadd.xlane.f32.xlu1 %v5467_v8 }
 0x3c2   : > { %5486 = vadd.xlane.f32.xlu0 %v5485_v55 }
 0x3c5   : > { %5435 = vadd.xlane.f32.xlu1 %v5434_v38  ;;  %v13844_v38 = vld [vmem:[#allocation7_spill] sm:$0xff] }
 0x3c6   : > { %5480 = vadd.xlane.f32.xlu0 %v5479_v62 }
 0x3c9   : > { %5429 = vadd.xlane.f32.xlu1 %v5428_v40 }
 0x3cd   : > { %5438 = vadd.xlane.f32.xlu1 %v5437_v28 }
 0x3d1   : > { %5432 = vadd.xlane.f32.xlu1 %v5431_v10 }
 0x3d3   : > { %v1148_v32 = vpop.xlane.xlu0 %1147 }
 0x3d4   : > { %v1239_v24 = vadd.f32 %v11155_v20, %v1148_v32 }
 0x3d6   : > { %v1438_v13 = vsub.f32 %v1239_v24, %v13842_v7 }
 0x3d7   : > { %v1196_v14 = vpop.xlane.xlu0 %1195 }
 0x3d8   : > { %v1598_v54 = vcombine.high %v1438_v13, %v1438_v13  ;;  %v1605_v61 = vrot.slane %v1438_v13, %v11160_v60  ;;  %v1255_v1 = vadd.f32 %v11155_v20, %v1196_v14 }
 0x3da   : > { %v1612_v43 = vrot.slane %v1598_v54, %v11160_v60  ;;  %v1613_v58 = vcombine.high %v1605_v61, %v1605_v61  ;;  %v1454_v34 = vsub.f32 %v1255_v1, %v13843_v18  ;;  %v1621_v56 = vrot.slane %v1605_v61, %v11160_v60  ;;  %v13845_v54 = vld [vmem:[#allocation16_spill] sm:$0xff] }
 0x3db   : > { %v1142_v9 = vpop.xlane.xlu0 %1141 }
 0x3dc   : > { %v1614_v5 = vcombine.high %v1612_v43, %v1612_v43  ;;  %v1635_v35 = vrot.slane %v1613_v58, %v11160_v60  ;;  %v1237_v53 = vadd.f32 %v11155_v20, %v1142_v9  ;;  %v2382_v27 = vcombine.high %v1454_v34, %v1454_v34 }
 0x3dd   : > { %v1628_v0 = vrot.slane %v1612_v43, %v11160_v60  ;;  %v2389_v8 = vrot.slane %v1454_v34, %v11160_v60 }
 0x3de   : > { %v1642_v63 = vrot.slane %v1614_v5, %v11160_v60  ;;  %v3166_v55 = vcombine.low %v1621_v56, %v1635_v35  ;;  %v9573_v25 = vcombine.high %v1621_v56, %v1635_v35  ;;  %v1436_v62 = vsub.f32 %v1237_v53, %v13844_v38 }
 0x3df   : > { %v1190_v6 = vpop.xlane.xlu0 %1189  ;;  %v2396_v22 = vrot.slane %v2382_v27, %v11160_v60  ;;  %v2397_v32 = vcombine.high %v2389_v8, %v2389_v8  ;;  %v2405_v34 = vrot.slane %v2389_v8, %v11160_v60  ;;  %v13846_v27 = vld [vmem:[#allocation9_spill] sm:$0xff] }
 0x3e0   : > { %v3168_v40 = vcombine.low %v1628_v0, %v1642_v63  ;;  %v9574_v28 = vcombine.high %v1628_v0, %v1642_v63  ;;  %v1253_v10 = vadd.f32 %v11155_v20, %v1190_v6  ;;  %v3176_v41 = vrot.slane %v3166_v55, %v11160_v60 }
 0x3e1   : > { %v3183_v24 = vrot.slane %v9573_v25, %v11160_v60  ;;  %v1500_v13 = vcombine.high %v1436_v62, %v1436_v62  ;;  %v1507_v14 = vrot.slane %v1436_v62, %v11160_v60  ;;  %v2398_v58 = vcombine.high %v2396_v22, %v2396_v22 }
 0x3e2   : > { %v1452_v61 = vsub.f32 %v1253_v10, %v13845_v54  ;;  %v3190_v1 = vrot.slane %v3168_v40, %v11160_v60  ;;  %v3197_v9 = vrot.slane %v9574_v28, %v11160_v60  ;;  %v2419_v5 = vrot.slane %v2397_v32, %v11160_v60 }
 0x3e3   : > { %v1160_v33 = vpop.xlane.xlu0 %1159  ;;  %v1514_v35 = vrot.slane %v1500_v13, %v11160_v60  ;;  %v3198_v6 = vcombine.low %v3176_v41, %v3183_v24  ;;  %v1515_v63 = vcombine.high %v1507_v14, %v1507_v14  ;;  %v2426_v25 = vrot.slane %v2398_v58, %v11160_v60 }
 0x3e4   : > { %v1243_v43 = vadd.f32 %v11155_v20, %v1160_v33  ;;  %v2284_v56 = vcombine.high %v1452_v61, %v1452_v61  ;;  %v3199_v55 = vcombine.low %v3190_v1, %v3197_v9  ;;  %v2412_v62 = vrot.slane %v2396_v22, %v11160_v60 }
 0x3e5   : > { %v3950_v40 = vcombine.low %v2405_v34, %v2419_v5  ;;  %v9605_v28 = vcombine.high %v2405_v34, %v2419_v5  ;;  %v1516_v33 = vcombine.high %v1514_v35, %v1514_v35  ;;  %v2291_v8 = vrot.slane %v1452_v61, %v11160_v60  ;;  %v13847_v34 = vld [vmem:[#allocation17_spill] sm:$0xff] }
 0x3e6   : > { %v1151_v53 = vpop.xlane.xlu1 %1150  ;;  %v1442_v0 = vsub.f32 %v1243_v43, %v13846_v27  ;;  %v3206_v32 = vrot.slane %v3198_v6, %v11160_v60  ;;  %v3213_v41 = vrot.slane %v3199_v55, %v11160_v60  ;;  %v1537_v24 = vrot.slane %v1515_v63, %v11160_v60 }
 0x3e7   : > { %v1240_v10 = vadd.f32 %v11155_v20, %v1151_v53  ;;  %v2298_v13 = vrot.slane %v2284_v56, %v11160_v60  ;;  %v3952_v1 = vcombine.low %v2412_v62, %v2426_v25  ;;  %v9606_v9 = vcombine.high %v2412_v62, %v2426_v25  ;;  %v1208_v27 = vpop.xlane.xlu0 %1207 }
 0x3e8   : > { %v1794_v43 = vcombine.high %v1442_v0, %v1442_v0  ;;  %v1801_v22 = vrot.slane %v1442_v0, %v11160_v60  ;;  %v3214_v58 = vcombine.low %v3206_v32, %v3213_v41  ;;  %v1523_v5 = vrot.slane %v1507_v14, %v11160_v60 }
 0x3e9   : > { %v1439_v53 = vsub.f32 %v1240_v10, %v13847_v34  ;;  %v3960_v61 = vrot.slane %v3950_v40, %v11160_v60  ;;  %v3967_v6 = vrot.slane %v9605_v28, %v11160_v60  ;;  %v1544_v55 = vrot.slane %v1516_v33, %v11160_v60 }
 0x3ea   : > { %v2299_v63 = vcombine.high %v2291_v8, %v2291_v8  ;;  %4643 = vperm.xlu1 %9780, %v3214_v58   ;;  %v1530_v56 = vrot.slane %v1514_v35, %v11160_v60  ;;  %v3068_v54 = vcombine.low %v1523_v5, %v1537_v24  ;;  %v2300_v25 = vcombine.high %v2298_v13, %v2298_v13  ;;  %v1199_v34 = vpop.xlane.xlu1 %1198 }
 0x3eb   : > { %v1808_v0 = vrot.slane %v1794_v43, %v11160_v60  ;;  %v1809_v62 = vcombine.high %v1801_v22, %v1801_v22  ;;  %v1259_v14 = vadd.f32 %v11155_v20, %v1208_v27  ;;  %v3974_v10 = vrot.slane %v3952_v1, %v11160_v60 }
 0x3ec   : > { %v3981_v32 = vrot.slane %v9606_v9, %v11160_v60  ;;  %v9569_v40 = vcombine.high %v1523_v5, %v1537_v24  ;;  %v1647_v41 = vcombine.high %v1439_v53, %v1439_v53  ;;  %v3070_v28 = vcombine.low %v1530_v56, %v1544_v55  ;;  %v13848_v24 = vld [vmem:[#allocation22_spill] sm:$0xff] }
 0x3ed   : > { %v2307_v33 = vrot.slane %v2291_v8, %v11160_v60  ;;  %v2321_v58 = vrot.slane %v2299_v63, %v11160_v60  ;;  %v3982_v35 = vcombine.low %v3960_v61, %v3967_v6  ;;  %v9570_v38 = vcombine.high %v1530_v56, %v1544_v55 }
 0x3ee   : > { %v3078_v18 = vrot.slane %v3068_v54, %v11160_v60  ;;  %v11209_v43 = vrot.slane %v2300_v25, %v11160_v60  ;;  %v1654_v27 = vrot.slane %v1439_v53, %v11160_v60  ;;  %v1810_v1 = vcombine.high %v1808_v0, %v1808_v0 }
 0x3ef   : > { %v1831_v9 = vrot.slane %v1809_v62, %v11160_v60  ;;  %v1458_v5 = vsub.f32 %v1259_v14, %v13848_v24  ;;  %v3983_v7 = vcombine.low %v3974_v10, %v3981_v32  ;;  %v3085_v8 = vrot.slane %v9569_v40, %v11160_v60  ;;  %v1154_v10 = vpop.xlane.xlu0 %1153 }
 0x3f0   : > { %v11216_v63 = vrot.slane %v2298_v13, %v11160_v60  ;;  %v1661_v61 = vrot.slane %v1647_v41, %v11160_v60  ;;  %v1256_v54 = vadd.f32 %v11155_v20, %v1199_v34  ;;  %v3852_v6 = vcombine.low %v2307_v33, %v2321_v58 }
 0x3f1   : > { %v1817_v55 = vrot.slane %v1801_v22, %v11160_v60  ;;  %v3990_v53 = vrot.slane %v3982_v35, %v11160_v60  ;;  %v3997_v56 = vrot.slane %v3983_v7, %v11160_v60  ;;  %v9601_v25 = vcombine.high %v2307_v33, %v2321_v58  ;;  %v13849_v7 = vld [vmem:[#allocation33_spill] sm:$0xff] }
 0x3f2   : > { %v3854_v62 = vcombine.low %v11216_v63, %v11209_v43  ;;  %v11226_v14 = vrot.slane %v1808_v0, %v11160_v60  ;;  %v1662_v13 = vcombine.high %v1654_v27, %v1654_v27  ;;  %v11229_v32 = vrot.slane %v1810_v1, %v11160_v60 }
 0x3f3   : > { %v3362_v34 = vcombine.low %v1817_v55, %v1831_v9  ;;  %v2578_v40 = vcombine.high %v1458_v5, %v1458_v5  ;;  %v3998_v41 = vcombine.low %v3990_v53, %v3997_v56  ;;  %v9581_v22 = vcombine.high %v1817_v55, %v1831_v9  ;;  %v1145_v55 = vpop.xlane.xlu1 %1144 }
 0x3f4   : > { %v1663_v24 = vcombine.high %v1661_v61, %v1661_v61  ;;  %v2585_v35 = vrot.slane %v1458_v5, %v11160_v60  ;;  %v1455_v33 = vsub.f32 %v1256_v54, %v13849_v7  ;;  %v9602_v58 = vcombine.high %v11216_v63, %v11209_v43 }
 0x3f5   : > { %v1241_v0 = vadd.f32 %v11155_v20, %v1154_v10  ;;  %4691 = vperm.xlu1 %9780, %v3998_v41   ;;  %v3092_v45 = vrot.slane %v3070_v28, %v11160_v60  ;;  %v3099_v1 = vrot.slane %v9570_v38, %v11160_v60  ;;  %v3862_v31 = vrot.slane %v3852_v6, %v11160_v60  ;;  %v1202_v41 = vpop.xlane.xlu0 %1201 }
 0x3f6   : > { %v3869_v53 = vrot.slane %v9601_v25, %v11160_v60  ;;  %v1670_v9 = vrot.slane %v1654_v27, %v11160_v60  ;;  %v1684_v5 = vrot.slane %v1662_v13, %v11160_v60  ;;  %v11247_v63 = vrot.slane %v3362_v34, %v11160_v60  ;;  %v13850_v25 = vld [vmem:[#allocation8_spill] sm:$0xff] }
 0x3f7   : > { %v2592_v38 = vrot.slane %v2578_v40, %v11160_v60  ;;  %v11251_v28 = vrot.slane %v9581_v22, %v11160_v60  ;;  %v11254_v6 = vrot.slane %v1663_v24, %v11160_v60  ;;  %v2593_v27 = vcombine.high %v2585_v35, %v2585_v35 }
 0x3f8   : > { %v2431_v56 = vcombine.high %v1455_v33, %v1455_v33  ;;  %v1440_v13 = vsub.f32 %v1241_v0, %v13850_v25  ;;  %v1238_v10 = vadd.f32 %v11155_v20, %v1145_v55  ;;  %v3100_v54 = vcombine.low %v3078_v18, %v3085_v8 }
 0x3f9   : > { %v3101_v43 = vcombine.low %v3092_v45, %v3099_v1  ;;  %v11259_v34 = vrot.slane %v1661_v61, %v11160_v60  ;;  %v3215_v7 = vcombine.low %v1670_v9, %v1684_v5  ;;  %v9575_v40 = vcombine.high %v1670_v9, %v1684_v5  ;;  %v13851_v1 = vld [vmem:[#allocation13_spill] sm:$0xff]  ;;  %v1193_v5 = vpop.xlane.xlu1 %1192 }
 0x3fa   : > { %v2438_v22 = vrot.slane %v1455_v33, %v11160_v60  ;;  %v2594_v44 = vcombine.high %v2592_v38, %v2592_v38  ;;  %v2601_v24 = vrot.slane %v2585_v35, %v11160_v60  ;;  %v3108_v57 = vrot.slane %v3100_v54, %v11160_v60 }
 0x3fb   : > { %v3115_v51 = vrot.slane %v3101_v43, %v11160_v60  ;;  %v2445_v18 = vrot.slane %v2431_v56, %v11160_v60  ;;  %v1257_v8 = vadd.f32 %v11155_v20, %v1202_v41  ;;  %v2615_v61 = vrot.slane %v2593_v27, %v11160_v60 }
 0x3fc   : > { %v1696_v33 = vcombine.high %v1440_v13, %v1440_v13  ;;  %v1437_v9 = vsub.f32 %v1238_v10, %v13851_v1  ;;  %v11274_v55 = vrot.slane %v3215_v7, %v11160_v60  ;;  %v2446_v54 = vcombine.high %v2438_v22, %v2438_v22 }
 0x3fd   : > { %v3116_v35 = vcombine.low %v3108_v57, %v3115_v51  ;;  %v3876_v43 = vrot.slane %v3854_v62, %v11160_v60  ;;  %v3883_v0 = vrot.slane %v9602_v58, %v11160_v60  ;;  %v11279_v45 = vrot.slane %v9575_v40, %v11160_v60  ;;  %v13852_v51 = vld [vmem:[#allocation20_spill] sm:$0xff] }
 0x3fe   : > { %v11282_v56 = vrot.slane %v2594_v44, %v11160_v60  ;;  %v1703_v27 = vrot.slane %v1440_v13, %v11160_v60  ;;  %v3884_v10 = vcombine.low %v3862_v31, %v3869_v53  ;;  %v2447_v57 = vcombine.high %v2445_v18, %v2445_v18 }
 0x3ff   : > { %4637 = vperm.xlu0 %9781, %v3116_v35   ;;  %v1456_v41 = vsub.f32 %v1257_v8, %v13852_v51  ;;  %v1254_v7 = vadd.f32 %v11155_v20, %v1193_v5  ;;  %v3885_v25 = vcombine.low %v3876_v43, %v3883_v0  ;;  %v11288_v62 = vrot.slane %v2592_v38, %v11160_v60  ;;  %v1172_v5 = vpop.xlane.xlu0 %1171 }
 0x400   : > { %v4146_v58 = vcombine.low %v2601_v24, %v2615_v61  ;;  %v1710_v40 = vrot.slane %v1696_v33, %v11160_v60  ;;  %v1549_v1 = vcombine.high %v1437_v9, %v1437_v9  ;;  %v9613_v21 = vcombine.high %v2601_v24, %v2615_v61 }
 0x401   : > { %v2454_v44 = vrot.slane %v2438_v22, %v11160_v60  ;;  %v2468_v13 = vrot.slane %v2446_v54, %v11160_v60  ;;  %v1556_v31 = vrot.slane %v1437_v9, %v11160_v60  ;;  %v1711_v8 = vcombine.high %v1703_v27, %v1703_v27  ;;  %v13853_v22 = vld [vmem:[#allocation32_spill] sm:$0xff] }
 0x402   : > { %v3892_v0 = vrot.slane %v3884_v10, %v11160_v60  ;;  %v3899_v38 = vrot.slane %v3885_v25, %v11160_v60  ;;  %v11301_v33 = vrot.slane %v2447_v57, %v11160_v60  ;;  %v2480_v24 = vcombine.high %v1456_v41, %v1456_v41 }
 0x403   : > { %v1453_v61 = vsub.f32 %v1254_v7, %v13853_v22  ;;  %v1712_v54 = vcombine.high %v1710_v40, %v1710_v40  ;;  %v1563_v9 = vrot.slane %v1549_v1, %v11160_v60  ;;  %v2487_v43 = vrot.slane %v1456_v41, %v11160_v60  ;;  %v13854_v1 = vld [vmem:[#allocation11_spill] sm:$0xff] }
 0x404   : > { %v3900_v53 = vcombine.low %v3892_v0, %v3899_v38  ;;  %v11307_v10 = vrot.slane %v2445_v18, %v11160_v60  ;;  %v3999_v25 = vcombine.low %v2454_v44, %v2468_v13  ;;  %v9607_v51 = vcombine.high %v2454_v44, %v2468_v13  ;;  %v1163_v13 = vpop.xlane.xlu1 %1162 }
 0x405   : > { %v1564_v48 = vcombine.high %v1556_v31, %v1556_v31  ;;  %v11310_v35 = vrot.slane %v4146_v58, %v11160_v60  ;;  %v11313_v57 = vrot.slane %v9613_v21, %v11160_v60  ;;  %v1733_v7 = vrot.slane %v1711_v8, %v11160_v60 }
 0x406   : > { %v1247_v22 = vadd.f32 %v11155_v20, %v1172_v5  ;;  %4685 = vperm.xlu1 %9780, %v3900_v53   ;;  %v1719_v18 = vrot.slane %v1703_v27, %v11160_v60  ;;  %v2494_v41 = vrot.slane %v2480_v24, %v11160_v60  ;;  %v2333_v44 = vcombine.high %v1453_v61, %v1453_v61 }
 0x407   : > { %v11322_v58 = vrot.slane %v1712_v54, %v11160_v60  ;;  %v1565_v0 = vcombine.high %v1563_v9, %v1563_v9  ;;  %v2495_v21 = vcombine.high %v2487_v43, %v2487_v43  ;;  %v2340_v38 = vrot.slane %v1453_v61, %v11160_v60 }
 0x408   : > { %v11328_v53 = vrot.slane %v3999_v25, %v11160_v60  ;;  %v11331_v5 = vrot.slane %v9607_v51, %v11160_v60  ;;  %v1586_v27 = vrot.slane %v1564_v48, %v11160_v60  ;;  %v11335_v24 = vrot.slane %v1710_v40, %v11160_v60  ;;  %v13855_v51 = vld [vmem:[#allocation21_spill] sm:$0xff]  ;;  %v1211_v37 = vpop.xlane.xlu1 %1210 }
 0x409   : > { %v3264_v54 = vcombine.low %v1719_v18, %v1733_v7  ;;  %v1446_v12 = vsub.f32 %v1247_v22, %v13854_v1  ;;  %v1244_v26 = vadd.f32 %v11155_v20, %v1163_v13  ;;  %v9577_v61 = vcombine.high %v1719_v18, %v1733_v7 }
 0x40a   : > { %v1572_v30 = vrot.slane %v1556_v31, %v11160_v60  ;;  %v2496_v8 = vcombine.high %v2494_v41, %v2494_v41  ;;  %v2347_v25 = vrot.slane %v2333_v44, %v11160_v60  ;;  %v11344_v59 = vrot.slane %v1565_v0, %v11160_v60 }
 0x40b   : > { %v2517_v48 = vrot.slane %v2495_v21, %v11160_v60  ;;  %v2348_v40 = vcombine.high %v2340_v38, %v2340_v38  ;;  %v11350_v13 = vrot.slane %v1563_v9, %v11160_v60  ;;  %v2503_v18 = vrot.slane %v2487_v43, %v11160_v60 }
 0x40c   : > { %v3117_v7 = vcombine.low %v1572_v30, %v1586_v27  ;;  %v9571_v31 = vcombine.high %v1572_v30, %v1586_v27  ;;  %v1990_v44 = vcombine.high %v1446_v12, %v1446_v12  ;;  %v1997_v1 = vrot.slane %v1446_v12, %v11160_v60 }
 0x40d   : > { %v1443_v36 = vsub.f32 %v1244_v26, %v13855_v51  ;;  %v11356_v0 = vrot.slane %v3264_v54, %v11160_v60  ;;  %v11359_v21 = vrot.slane %v9577_v61, %v11160_v60  ;;  %v11362_v22 = vrot.slane %v2496_v8, %v11160_v60  ;;  %v1220_v26 = vpop.xlane.xlu0 %1219 }
 0x40e   : > { %v2349_v9 = vcombine.high %v2347_v25, %v2347_v25  ;;  %v4048_v27 = vcombine.low %v2503_v18, %v2517_v48  ;;  %v2370_v12 = vrot.slane %v2348_v40, %v11160_v60  ;;  %v11370_v54 = vrot.slane %v3117_v7, %v11160_v60 }
 0x40f   : > { %v11373_v61 = vrot.slane %v9571_v31, %v11160_v60  ;;  %v11376_v8 = vrot.slane %v2494_v41, %v11160_v60  ;;  %v9609_v51 = vcombine.high %v2503_v18, %v2517_v48  ;;  %v2356_v29 = vrot.slane %v2340_v38, %v11160_v60 }
 0x410   : > { %v2004_v30 = vrot.slane %v1990_v44, %v11160_v60  ;;  %v2005_v47 = vcombine.high %v1997_v1, %v1997_v1  ;;  %v1843_v43 = vcombine.high %v1443_v36, %v1443_v36  ;;  %v11385_v31 = vrot.slane %v2349_v9, %v11160_v60 }
 0x411   : > { %v1263_v41 = vadd.f32 %v11155_v20, %v1220_v26  ;;  %v11389_v48 = vrot.slane %v4048_v27, %v11160_v60  ;;  %v11392_v38 = vrot.slane %v2347_v25, %v11160_v60  ;;  %v3901_v18 = vcombine.low %v2356_v29, %v2370_v12 }
 0x412   : > { %v1850_v44 = vrot.slane %v1443_v36, %v11160_v60  ;;  %v9603_v17 = vcombine.high %v2356_v29, %v2370_v12  ;;  %v1260_v40 = vadd.f32 %v11155_v20, %v1211_v37  ;;  %v13856_v7 = vcombine.low %v11259_v34, %v11254_v6  ;;  %v1166_v36 = vpop.xlane.xlu0 %1165  ;;  %v13859_v37 = vld [vmem:[#allocation35_spill] sm:$0xff] }
 0x413   : > { %v13857_v26 = vcombine.high %v11259_v34, %v11254_v6  ;;  %v11405_v42 = vrot.slane %v9609_v51, %v11160_v60  ;;  %v2006_v25 = vcombine.high %v2004_v30, %v2004_v30  ;;  %v2027_v11 = vrot.slane %v2005_v47, %v11160_v60 }
 0x414   : > { %v3239_v9 = vrot.slane %v13856_v7, %v11160_v60  ;;  %v1857_v29 = vrot.slane %v1843_v43, %v11160_v60  ;;  %v2013_v12 = vrot.slane %v1997_v1, %v11160_v60  ;;  %v11413_v7 = vrot.slane %v2004_v30, %v11160_v60 }
 0x415   : > { %v3246_v27 = vrot.slane %v13857_v26, %v11160_v60  ;;  %v1462_v6 = vsub.f32 %v1263_v41, %v13858_v3  ;;  %v11419_v51 = vrot.slane %v3901_v18, %v11160_v60  ;;  %v1858_v47 = vcombine.high %v1850_v44, %v1850_v44 }
 0x416   : > { %v3247_v43 = vcombine.low %v11274_v55, %v11279_v45  ;;  %v11424_v26 = vrot.slane %v9603_v17, %v11160_v60  ;;  %v1459_v1 = vsub.f32 %v1260_v40, %v13859_v37  ;;  %v1245_v30 = vadd.f32 %v11155_v20, %v1166_v36  ;;  %v1157_v40 = vpop.xlane.xlu1 %1156 }
 0x417   : > { %v3248_v4 = vcombine.low %v3239_v9, %v3246_v27  ;;  %v11429_v41 = vrot.slane %v2006_v25, %v11160_v60  ;;  %v3558_v3 = vcombine.low %v2013_v12, %v2027_v11  ;;  %v1859_v34 = vcombine.high %v1857_v29, %v1857_v29 }
 0x418   : > { %v13860_v18 = vcombine.low %v11307_v10, %v11301_v33  ;;  %v2774_v2 = vcombine.high %v1462_v6, %v1462_v6  ;;  %v2781_v45 = vrot.slane %v1462_v6, %v11160_v60  ;;  %v3255_v17 = vrot.slane %v3247_v43, %v11160_v60  ;;  %v13862_v6 = vld [vmem:[#allocation10_spill] sm:$0xff] }
 0x419   : > { %v3262_v55 = vrot.slane %v3248_v4, %v11160_v60  ;;  %v9589_v36 = vcombine.high %v2013_v12, %v2027_v11  ;;  %v1880_v9 = vrot.slane %v1858_v47, %v11160_v60  ;;  %v13861_v27 = vcombine.high %v11307_v10, %v11301_v33  ;;  %v1214_v47 = vpop.xlane.xlu0 %1213 }
 0x41a   : > { %v4023_v50 = vrot.slane %v13860_v18, %v11160_v60  ;;  %v4031_v37 = vcombine.low %v11328_v53, %v11331_v5  ;;  %v1866_v18 = vrot.slane %v1850_v44, %v11160_v60  ;;  %v2627_v19 = vcombine.high %v1459_v1, %v1459_v1 }
 0x41b   : > { %v4030_v25 = vrot.slane %v13861_v27, %v11160_v60  ;;  %v1444_v49 = vsub.f32 %v1245_v30, %v13862_v6  ;;  %v3263_v43 = vcombine.low %v3255_v17, %v3262_v55  ;;  %v2634_v12 = vrot.slane %v1459_v1, %v11160_v60 }
 0x41c   : > { %v11453_v10 = vrot.slane %v1859_v34, %v11160_v60  ;;  %v2788_v53 = vrot.slane %v2774_v2, %v11160_v60  ;;  %v2789_v5 = vcombine.high %v2781_v45, %v2781_v45  ;;  %v1242_v44 = vadd.f32 %v11155_v20, %v1157_v40 }
 0x41d   : > { %v4032_v33 = vcombine.low %v4023_v50, %v4030_v25  ;;  %4646 = vperm.xlu0 %9781, %v3263_v43   ;;  %v3411_v30 = vcombine.low %v1866_v18, %v1880_v9  ;;  %v9583_v17 = vcombine.high %v1866_v18, %v1880_v9  ;;  %v4039_v55 = vrot.slane %v4031_v37, %v11160_v60  ;;  %v1205_v25 = vpop.xlane.xlu1 %1204 }
 0x41e   : > { %v11460_v11 = vrot.slane %v3558_v3, %v11160_v60  ;;  %v2641_v50 = vrot.slane %v2627_v19, %v11160_v60  ;;  %v1892_v1 = vcombine.high %v1444_v49, %v1444_v49  ;;  %v1261_v34 = vadd.f32 %v11155_v20, %v1214_v47 }
 0x41f   : > { %v4046_v27 = vrot.slane %v4032_v33, %v11160_v60  ;;  %v11465_v2 = vrot.slane %v9589_v36, %v11160_v60  ;;  %v11468_v40 = vrot.slane %v1857_v29, %v11160_v60  ;;  %v2642_v9 = vcombine.high %v2634_v12, %v2634_v12  ;;  %v13863_v33 = vld [vmem:[#allocation19_spill] sm:$0xff] }
 0x420   : > { %v2790_v37 = vcombine.high %v2788_v53, %v2788_v53  ;;  %v2811_v43 = vrot.slane %v2789_v5, %v11160_v60  ;;  %v1899_v3 = vrot.slane %v1444_v49, %v11160_v60  ;;  %v1441_v4 = vsub.f32 %v1242_v44, %v13863_v33 }
 0x421   : > { %v4047_v18 = vcombine.low %v4039_v55, %v4046_v27  ;;  %v11478_v36 = vrot.slane %v3411_v30, %v11160_v60  ;;  %v11481_v29 = vrot.slane %v9583_v17, %v11160_v60  ;;  %v2797_v55 = vrot.slane %v2781_v45, %v11160_v60  ;;  %v13864_v27 = vld [vmem:[#allocation24_spill] sm:$0xff]  ;;  %v11497_v16 = vpop.xlane.xlu1 %1174 }
 0x422   : > { %v2643_v5 = vcombine.high %v2641_v50, %v2641_v50  ;;  %v1906_v49 = vrot.slane %v1892_v1, %v11160_v60  ;;  %v1460_v44 = vsub.f32 %v1261_v34, %v13864_v27  ;;  %v11487_v6 = vrot.slane %v2788_v53, %v11160_v60 }
 0x423   : > { %4694 = vperm.xlu0 %9781, %v4047_v18   ;;  %v2650_v19 = vrot.slane %v2634_v12, %v11160_v60  ;;  %v11491_v47 = vrot.slane %v2641_v50, %v11160_v60  ;;  %v2664_v30 = vrot.slane %v2642_v9, %v11160_v60  ;;  %v11495_v17 = vrot.slane %v2790_v37, %v11160_v60 }
 0x424   : > { %v4342_v18 = vcombine.low %v2797_v55, %v2811_v43  ;;  %v1907_v45 = vcombine.high %v1899_v3, %v1899_v3  ;;  %v1745_v33 = vcombine.high %v1441_v4, %v1441_v4  ;;  %v1752_v1 = vrot.slane %v1441_v4, %v11160_v60 }
 0x425   : > { %v13865_v53 = vcombine.low %v11350_v13, %v11344_v59  ;;  %v13866_v50 = vcombine.high %v11350_v13, %v11344_v59  ;;  %v3149_v9 = vcombine.low %v11370_v54, %v11373_v61  ;;  %v9621_v37 = vcombine.high %v2797_v55, %v2811_v43 }
 0x426   : > { %v11511_v27 = vrot.slane %v2643_v5, %v11160_v60  ;;  %v1908_v52 = vcombine.high %v1906_v49, %v1906_v49  ;;  %v2676_v23 = vcombine.high %v1460_v44, %v1460_v44  ;;  %v4195_v4 = vcombine.low %v2650_v19, %v2664_v30 }
 0x427   : > { %v3141_v12 = vrot.slane %v13865_v53, %v11160_v60  ;;  %v3148_v34 = vrot.slane %v13866_v50, %v11160_v60  ;;  %v9615_v46 = vcombine.high %v2650_v19, %v2664_v30  ;;  %v1258_v15 = vadd.f32 %v11155_v20, %v1205_v25 }
 0x428   : > { %v1915_v59 = vrot.slane %v1899_v3, %v11160_v60  ;;  %v1759_v13 = vrot.slane %v1745_v33, %v11160_v60  ;;  %v2683_v54 = vrot.slane %v1460_v44, %v11160_v60  ;;  %v1929_v61 = vrot.slane %v1907_v45, %v11160_v60  ;;  %v11531_v33 = vpop.xlane.xlu1 %1222 }
 0x429   : > { %v3150_v39 = vcombine.low %v3141_v12, %v3148_v34  ;;  %v1760_v43 = vcombine.high %v1752_v1, %v1752_v1  ;;  %v3157_v55 = vrot.slane %v3149_v9, %v11160_v60  ;;  %v11525_v19 = vrot.slane %v4342_v18, %v11160_v60  ;;  %13868 = vst [vmem:[#allocation45_spill] sm:$0xff] %v11531_v33  ;;  %v1184_v33 = vpop.xlane.xlu0 %1183 }
 0x42a   : > { %v11528_v30 = vrot.slane %v1908_v52, %v11160_v60  ;;  %v2690_v3 = vrot.slane %v2676_v23, %v11160_v60  ;;  %v11534_v44 = vrot.slane %v9621_v37, %v11160_v60  ;;  %v11542_v34 = vrot.slane %v1906_v49, %v11160_v60 }
 0x42b   : > { %v3164_v5 = vrot.slane %v3150_v39, %v11160_v60  ;;  %v13869_v39 = vld [vmem:[#allocation34_spill] sm:$0xff]  ;;  %v1761_v52 = vcombine.high %v1759_v13, %v1759_v13  ;;  %v2691_v9 = vcombine.high %v2683_v54, %v2683_v54  ;;  %v11545_v23 = vrot.slane %v4195_v4, %v11160_v60 }
 0x42c   : > { %13867 = vst [vmem:[#allocation44_spill] sm:$0xff] %v11528_v30  ;;  %v1457_v12 = vsub.f32 %v1258_v15, %v13869_v39  ;;  %13870 = vst [vmem:[#allocation47_spill] sm:$0xff] %v11542_v34  ;;  %v3460_v25 = vcombine.low %v1915_v59, %v1929_v61  ;;  %v9585_v37 = vcombine.high %v1915_v59, %v1929_v61 }
 0x42d   : > { %v3165_v50 = vcombine.low %v3157_v55, %v3164_v5  ;;  %v1782_v53 = vrot.slane %v1760_v43, %v11160_v60  ;;  %v11549_v15 = vrot.slane %v9615_v46, %v11160_v60  ;;  %v1768_v49 = vrot.slane %v1752_v1, %v11160_v60  ;;  %v11572_v55 = vpop.xlane.xlu1 %1168 }
 0x42e   : > { %v2692_v5 = vcombine.high %v2690_v3, %v2690_v3  ;;  %v2529_v18 = vcombine.high %v1457_v12, %v1457_v12  ;;  %v2536_v45 = vrot.slane %v1457_v12, %v11160_v60  ;;  %v13871_v4 = vcombine.low %v11392_v38, %v11385_v31 }
 0x42f   : > { %4640 = vperm.xlu1 %9780, %v3165_v50   ;;  %v13872_v61 = vcombine.high %v11392_v38, %v11385_v31  ;;  %v11566_v50 = vrot.slane %v1761_v52, %v11160_v60  ;;  %v11569_v1 = vrot.slane %v2691_v9, %v11160_v60  ;;  %v1251_v12 = vadd.f32 %v11155_v20, %v1184_v33 }
 0x430   : > { %v3925_v59 = vrot.slane %v13871_v4, %v11160_v60  ;;  %v11575_v4 = vrot.slane %v3460_v25, %v11160_v60  ;;  %v11578_v39 = vrot.slane %v9585_v37, %v11160_v60  ;;  %v3313_v31 = vcombine.low %v1768_v49, %v1782_v53 }
 0x431   : > { %v3932_v46 = vrot.slane %v13872_v61, %v11160_v60  ;;  %v9579_v38 = vcombine.high %v1768_v49, %v1782_v53  ;;  %v11581_v61 = vrot.slane %v1759_v13, %v11160_v60  ;;  %v11584_v52 = vrot.slane %v2683_v54, %v11160_v60 }
 0x432   : > { %13873 = vst [vmem:[#allocation46_spill] sm:$0xff] %v11575_v4  ;;  %13874 = vst [vmem:[#allocation49_spill] sm:$0xff] %v11578_v39  ;;  %v11587_v9 = vrot.slane %v2690_v3, %v11160_v60  ;;  %v3933_v33 = vcombine.low %v11419_v51, %v11424_v26  ;;  %v11592_v25 = vrot.slane %v2692_v5, %v11160_v60  ;;  %v13875_v3 = vld [vmem:[#allocation14_spill] sm:$0xff]  ;;  %v1232_v39 = vpop.xlane.xlu0 %1231  ;;  %v11622_v51 = vpop.xlane.xlu1 %1216 }
 0x433   : > { %v2543_v37 = vrot.slane %v2529_v18, %v11160_v60  ;;  %v2544_v43 = vcombine.high %v2536_v45, %v2536_v45  ;;  %v3934_v4 = vcombine.low %v3925_v59, %v3932_v46  ;;  %v4244_v13 = vcombine.low %v11584_v52, %v11569_v1 }
 0x434   : > { %v9617_v54 = vcombine.high %v11584_v52, %v11569_v1  ;;  %v1450_v49 = vsub.f32 %v1251_v12, %v13875_v3  ;;  %v11605_v26 = vrot.slane %v3313_v31, %v11160_v60  ;;  %v11608_v18 = vrot.slane %v9579_v38, %v11160_v60 }
 0x435   : > { %v1248_v5 = vadd.f32 %v11155_v20, %v11497_v16  ;;  %v3941_v59 = vrot.slane %v3933_v33, %v11160_v60  ;;  %v3948_v46 = vrot.slane %v3934_v4, %v11160_v60  ;;  %v13876_v1 = vcombine.low %v11226_v14, %v11229_v32 }
 0x436   : > { %v13877_v31 = vcombine.high %v11226_v14, %v11229_v32  ;;  %v2545_v38 = vcombine.high %v2543_v37, %v2543_v37  ;;  %v2566_v53 = vrot.slane %v2544_v43, %v11160_v60  ;;  %v1267_v16 = vadd.f32 %v11155_v20, %v1232_v39  ;;  %v13879_v32 = vld [vmem:[#allocation26_spill] sm:$0xff] }
 0x437   : > { %v3386_v12 = vrot.slane %v13876_v1, %v11160_v60  ;;  %v3394_v4 = vcombine.low %v11247_v63, %v11251_v28  ;;  %v2186_v33 = vcombine.high %v1450_v49, %v1450_v49  ;;  %v3949_v3 = vcombine.low %v3941_v59, %v3948_v46 }
 0x438   : > { %v3393_v52 = vrot.slane %v13877_v31, %v11160_v60  ;;  %v13878_v1 = vcombine.low %v11468_v40, %v11453_v10  ;;  %v2193_v14 = vrot.slane %v1450_v49, %v11160_v60  ;;  %v1447_v31 = vsub.f32 %v1248_v5, %v13879_v32 }
 0x439   : > { %v13880_v43 = vcombine.high %v11468_v40, %v11453_v10  ;;  %v3443_v63 = vcombine.low %v11478_v36, %v11481_v29  ;;  %4688 = vperm.xlu0 %9781, %v3949_v3   ;;  %v3402_v28 = vrot.slane %v3394_v4, %v11160_v60  ;;  %v13881_v46 = vcombine.low %v11288_v62, %v11282_v56 }
 0x43a   : > { %v3395_v30 = vcombine.low %v3386_v12, %v3393_v52  ;;  %v3435_v34 = vrot.slane %v13878_v1, %v11160_v60  ;;  %v13882_v5 = vcombine.high %v11288_v62, %v11282_v56  ;;  %v2552_v36 = vrot.slane %v2536_v45, %v11160_v60  ;;  %v13883_v52 = vld [vmem:[#allocation31_spill] sm:$0xff]  ;;  %v11660_v56 = vpop.xlane.xlu1 %1186 }
 0x43b   : > { %v3442_v39 = vrot.slane %v13880_v43, %v11160_v60  ;;  %v4170_v49 = vrot.slane %v13881_v46, %v11160_v60  ;;  %v2200_v3 = vrot.slane %v2186_v33, %v11160_v60  ;;  %v1466_v4 = vsub.f32 %v1267_v16, %v13883_v52  ;;  %v1178_v43 = vpop.xlane.xlu0 %1177 }
 0x43c   : > { %v3409_v59 = vrot.slane %v3395_v30, %v11160_v60  ;;  %v4177_v12 = vrot.slane %v13882_v5, %v11160_v60  ;;  %v11656_v30 = vrot.slane %v2545_v38, %v11160_v60  ;;  %v2201_v62 = vcombine.high %v2193_v14, %v2193_v14 }
 0x43d   : > { %v3444_v29 = vcombine.low %v3435_v34, %v3442_v39  ;;  %v2039_v46 = vcombine.high %v1447_v31, %v1447_v31  ;;  %v3451_v5 = vrot.slane %v3443_v63, %v11160_v60  ;;  %v11665_v45 = vrot.slane %v2543_v37, %v11160_v60 }
 0x43e   : > { %v3410_v1 = vcombine.low %v3402_v28, %v3409_v59  ;;  %v4097_v34 = vcombine.low %v2552_v36, %v2566_v53  ;;  %v9611_v38 = vcombine.high %v2552_v36, %v2566_v53  ;;  %v4179_v39 = vcombine.low %v4170_v49, %v4177_v12 }
 0x43f   : > { %v3458_v40 = vrot.slane %v3444_v29, %v11160_v60  ;;  %v2046_v33 = vrot.slane %v1447_v31, %v11160_v60  ;;  %v1249_v16 = vadd.f32 %v11155_v20, %v1178_v43  ;;  %v4178_v59 = vcombine.low %v11310_v35, %v11313_v57  ;;  %v13885_v43 = vld [vmem:[#allocation12_spill] sm:$0xff] }
 0x440   : > { %4655 = vperm.xlu1 %9780, %v3410_v1   ;;  %v11672_v10 = vrot.slane %v4244_v13, %v11160_v60  ;;  %v11675_v63 = vrot.slane %v9617_v54, %v11160_v60  ;;  %v2202_v37 = vcombine.high %v2200_v3, %v2200_v3  ;;  %v2970_v29 = vcombine.high %v1466_v4, %v1466_v4 }
 0x441   : > { %v3459_v28 = vcombine.low %v3451_v5, %v3458_v40  ;;  %v2223_v49 = vrot.slane %v2201_v62, %v11160_v60  ;;  %v2053_v31 = vrot.slane %v2039_v46, %v11160_v60  ;;  %v4193_v12 = vrot.slane %v4179_v39, %v11160_v60  ;;  %v11691_v40 = vpop.xlane.xlu1 %1234 }
 0x442   : > { %v11685_v57 = vrot.slane %v4097_v34, %v11160_v60  ;;  %v11688_v13 = vrot.slane %v9611_v38, %v11160_v60  ;;  %v2209_v54 = vrot.slane %v2193_v14, %v11160_v60  ;;  %13884 = vst [vmem:[#allocation48_spill] sm:$0xff] %v11691_v40  ;;  %v2054_v36 = vcombine.high %v2046_v33, %v2046_v33  ;;  %v1226_v14 = vpop.xlane.xlu0 %1225 }
 0x443   : > { %4658 = vperm.xlu0 %9781, %v3459_v28   ;;  %v2977_v1 = vrot.slane %v1466_v4, %v11160_v60  ;;  %v1448_v62 = vsub.f32 %v1249_v16, %v13885_v43  ;;  %v4186_v46 = vrot.slane %v4178_v59, %v11160_v60  ;;  %v11697_v5 = vrot.slane %v2200_v3, %v11160_v60 }
 0x444   : > { %v11700_v34 = vrot.slane %v2202_v37, %v11160_v60  ;;  %v2062_v38 = vrot.slane %v2046_v33, %v11160_v60  ;;  %v2984_v39 = vrot.slane %v2970_v29, %v11160_v60  ;;  %v3754_v28 = vcombine.low %v2209_v54, %v2223_v49 }
 0x445   : > { %v2055_v35 = vcombine.high %v2053_v31, %v2053_v31  ;;  %v4194_v53 = vcombine.low %v4186_v46, %v4193_v12  ;;  %v13886_v4 = vcombine.low %v11491_v47, %v11511_v27  ;;  %v13887_v3 = vcombine.high %v11491_v47, %v11511_v27  ;;  %v11726_v32 = vpop.xlane.xlu1 %1180 }
 0x446   : > { %v4227_v37 = vcombine.low %v11545_v23, %v11549_v15  ;;  %v13888_v33 = vcombine.low %v11335_v24, %v11322_v58  ;;  %v13889_v12 = vcombine.high %v11335_v24, %v11322_v58  ;;  %v2088_v52 = vcombine.high %v1448_v62, %v1448_v62 }
 0x447   : > { %v4219_v16 = vrot.slane %v13886_v4, %v11160_v60  ;;  %v4226_v59 = vrot.slane %v13887_v3, %v11160_v60  ;;  %v2076_v4 = vrot.slane %v2054_v36, %v11160_v60  ;;  %v2095_v43 = vrot.slane %v1448_v62, %v11160_v60  ;;  %4703 = vperm.xlu1 %9780, %v4194_v53  }
 0x448   : > { %v3288_v29 = vrot.slane %v13888_v33, %v11160_v60  ;;  %v3295_v46 = vrot.slane %v13889_v12, %v11160_v60  ;;  %v3296_v47 = vcombine.low %v11356_v0, %v11359_v21  ;;  %v9597_v27 = vcombine.high %v2209_v54, %v2223_v49  ;;  %v11739_v54 = vpop.xlane.xlu0 %5399 }
 0x449   : > { %v2985_v23 = vcombine.high %v2977_v1, %v2977_v1  ;;  %v4228_v15 = vcombine.low %v4219_v16, %v4226_v59  ;;  %v11731_v58 = vrot.slane %v2053_v31, %v11160_v60  ;;  %v2986_v24 = vcombine.high %v2984_v39, %v2984_v39 }
 0x44a   : > { %v3297_v3 = vcombine.low %v3288_v29, %v3295_v46  ;;  %v1246_v36 = vadd.f32 %v11155_v20, %v11572_v55  ;;  %v4235_v53 = vrot.slane %v4227_v37, %v11160_v60  ;;  %v3304_v21 = vrot.slane %v3296_v47, %v11160_v60 }
 0x44b   : > { %v4242_v0 = vrot.slane %v4228_v15, %v11160_v60  ;;  %v11742_v62 = vrot.slane %v2055_v35, %v11160_v60  ;;  %v3607_v16 = vcombine.low %v2062_v38, %v2076_v4  ;;  %v2102_v31 = vrot.slane %v2088_v52, %v11160_v60  ;;  %v13890_v35 = vld [vmem:[#allocation23_spill] sm:$0xff] }
 0x44c   : > { %v3311_v49 = vrot.slane %v3297_v3, %v11160_v60  ;;  %v2103_v59 = vcombine.high %v2095_v43, %v2095_v43  ;;  %v9591_v29 = vcombine.high %v2062_v38, %v2076_v4  ;;  %v3007_v55 = vrot.slane %v2985_v23, %v11160_v60  ;;  %v11762_v4 = vpop.xlane.xlu1 %1228 }
 0x44d   : > { %v4243_v12 = vcombine.low %v4235_v53, %v4242_v0  ;;  %v11749_v47 = vrot.slane %v3754_v28, %v11160_v60  ;;  %v11752_v15 = vrot.slane %v9597_v27, %v11160_v60  ;;  %v1445_v3 = vsub.f32 %v1246_v36, %v13890_v35  ;;  %v11776_v0 = vpop.xlane.xlu0 %5447  ;;  %v13893_v35 = vld [vmem:[#allocation29_spill] sm:$0xff] }
 0x44e   : > { %v3312_v37 = vcombine.low %v3304_v21, %v3311_v49  ;;  %v2993_v33 = vrot.slane %v2977_v1, %v11160_v60  ;;  %v11757_v52 = vrot.slane %v2984_v39, %v11160_v60  ;;  %v11760_v38 = vrot.slane %v2986_v24, %v11160_v60 }
 0x44f   : > { %4706 = vperm.xlu0 %9781, %v4243_v12   ;;  %v2104_v23 = vcombine.high %v2102_v31, %v2102_v31  ;;  %v2125_v27 = vrot.slane %v2103_v59, %v11160_v60  ;;  %v1265_v36 = vadd.f32 %v11155_v20, %v1226_v14  ;;  %v11771_v39 = vrot.slane %v3607_v16, %v11160_v60 }
 0x450   : > { %4649 = vperm.xlu1 %9780, %v3312_v37   ;;  %v11774_v24 = vrot.slane %v9591_v29, %v11160_v60  ;;  %v4538_v53 = vcombine.low %v2993_v33, %v3007_v55  ;;  %v2111_v21 = vrot.slane %v2095_v43, %v11160_v60  ;;  %v1941_v49 = vcombine.high %v1445_v3, %v1445_v3 }
 0x451   : > { %v13891_v59 = vcombine.low %v11581_v61, %v11566_v50  ;;  %v13892_v12 = vcombine.high %v11581_v61, %v11566_v50  ;;  %v9629_v37 = vcombine.high %v2993_v33, %v3007_v55  ;;  %v1948_v43 = vrot.slane %v1445_v3, %v11160_v60  ;;  %v11818_v29 = vpop.xlane.xlu0 %5441 }
 0x452   : > { %v11793_v1 = vrot.slane %v2102_v31, %v11160_v60  ;;  %v11796_v28 = vrot.slane %v2104_v23, %v11160_v60  ;;  %v1464_v40 = vsub.f32 %v1265_v36, %v13893_v35  ;;  %v3345_v50 = vcombine.low %v11605_v26, %v11608_v18 }
 0x453   : > { %v3337_v14 = vrot.slane %v13891_v59, %v11160_v60  ;;  %v3344_v16 = vrot.slane %v13892_v12, %v11160_v60  ;;  %v3656_v59 = vcombine.low %v2111_v21, %v2125_v27  ;;  %v13894_v33 = vcombine.low %v11376_v8, %v11362_v22  ;;  %v11809_v12 = vpop.xlane.xlu1 %5393 }
 0x454   : > { %v13895_v31 = vcombine.high %v11376_v8, %v11362_v22  ;;  %v9593_v23 = vcombine.high %v2111_v21, %v2125_v27  ;;  %v1955_v46 = vrot.slane %v1941_v49, %v11160_v60  ;;  %v1262_v36 = vadd.f32 %v11155_v20, %v11622_v51 }
 0x455   : > { %v3346_v61 = vcombine.low %v3337_v14, %v3344_v16  ;;  %v4072_v55 = vrot.slane %v13894_v33, %v11160_v60  ;;  %v4080_v26 = vcombine.low %v11389_v48, %v11405_v42  ;;  %v1956_v18 = vcombine.high %v1948_v43, %v1948_v43 }
 0x456   : > { %v4079_v3 = vrot.slane %v13895_v31, %v11160_v60  ;;  %v3353_v14 = vrot.slane %v3345_v50, %v11160_v60  ;;  %v11821_v22 = vrot.slane %v4538_v53, %v11160_v60  ;;  %v11824_v8 = vrot.slane %v9629_v37, %v11160_v60 }
 0x457   : > { %v3360_v16 = vrot.slane %v3346_v61, %v11160_v60  ;;  %v2872_v27 = vcombine.high %v1464_v40, %v1464_v40  ;;  %v2879_v42 = vrot.slane %v1464_v40, %v11160_v60  ;;  %v4088_v21 = vrot.slane %v4080_v26, %v11160_v60  ;;  %v13896_v40 = vld [vmem:[#allocation37_spill] sm:$0xff] }
 0x458   : > { %v4081_v33 = vcombine.low %v4072_v55, %v4079_v3  ;;  %v11834_v53 = vrot.slane %v3656_v59, %v11160_v60  ;;  %v11837_v37 = vrot.slane %v9593_v23, %v11160_v60  ;;  %v1957_v61 = vcombine.high %v1955_v46, %v1955_v46 }
 0x459   : > { %v3361_v48 = vcombine.low %v3353_v14, %v3360_v16  ;;  %v1964_v55 = vrot.slane %v1948_v43, %v11160_v60  ;;  %v1978_v31 = vrot.slane %v1956_v18, %v11160_v60  ;;  %v1461_v3 = vsub.f32 %v1262_v36, %v13896_v40  ;;  %v11842_v14 = vpop.xlane.xlu1 %5450 }
 0x45a   : > { %v4095_v49 = vrot.slane %v4081_v33, %v11160_v60  ;;  %v13897_v16 = vcombine.low %v11665_v45, %v11656_v30  ;;  %v13898_v23 = vcombine.high %v11665_v45, %v11656_v30  ;;  %v4129_v43 = vcombine.low %v11685_v57, %v11688_v13  ;;  %v11865_v30 = vpop.xlane.xlu0 %5402 }
 0x45b   : > { %4652 = vperm.xlu0 %9781, %v3361_v48   ;;  %v13899_v36 = vcombine.low %v11413_v7, %v11429_v41  ;;  %v11859_v48 = vrot.slane %v1955_v46, %v11160_v60  ;;  %v11868_v45 = vrot.slane %v1957_v61, %v11160_v60  ;;  %v13900_v13 = vcombine.high %v11413_v7, %v11429_v41 }
 0x45c   : > { %v4096_v26 = vcombine.low %v4088_v21, %v4095_v49  ;;  %v4121_v59 = vrot.slane %v13897_v16, %v11160_v60  ;;  %v4128_v33 = vrot.slane %v13898_v23, %v11160_v60  ;;  %v2886_v21 = vrot.slane %v2872_v27, %v11160_v60 }
 0x45d   : > { %v3582_v18 = vrot.slane %v13899_v36, %v11160_v60  ;;  %v2887_v49 = vcombine.high %v2879_v42, %v2879_v42  ;;  %v11863_v16 = vrot.slane %v2879_v42, %v11160_v60  ;;  %v3589_v23 = vrot.slane %v13900_v13, %v11160_v60 }
 0x45e   : > { %4697 = vperm.xlu1 %9780, %v4096_v26   ;;  %v4130_v57 = vcombine.low %v4121_v59, %v4128_v33  ;;  %v3590_v46 = vcombine.low %v11460_v11, %v11465_v2  ;;  %v3509_v27 = vcombine.low %v1964_v55, %v1978_v31  ;;  %v9587_v36 = vcombine.high %v1964_v55, %v1978_v31  ;;  %v11888_v2 = vpop.xlane.xlu1 %5444  ;;  %v11904_v13 = vpop.xlane.xlu0 %5396 }
 0x45f   : > { %v2725_v50 = vcombine.high %v1461_v3, %v1461_v3  ;;  %v1252_v42 = vadd.f32 %v11155_v20, %v11660_v56  ;;  %v2732_v26 = vrot.slane %v1461_v3, %v11160_v60  ;;  %v4137_v61 = vrot.slane %v4129_v43, %v11160_v60  ;;  %v13907_v56 = vld [vmem:[#allocation47_spill] sm:$0xff] }
 0x460   : > { %v4144_v59 = vrot.slane %v4130_v57, %v11160_v60  ;;  %v3591_v33 = vcombine.low %v3582_v18, %v3589_v23  ;;  %v2888_v51 = vcombine.high %v2886_v21, %v2886_v21  ;;  %v11882_v7 = vrot.slane %v2886_v21, %v11160_v60  ;;  %v13901_v21 = vld [vmem:[#allocation30_spill] sm:$0xff] }
 0x461   : > { %v11885_v41 = vrot.slane %v2887_v49, %v11160_v60  ;;  %v5490_v11 = vmul.f32 0.015625, %v11739_v54  ;;  %v3598_v31 = vrot.slane %v3590_v46, %v11160_v60  ;;  %v11897_v18 = vrot.slane %v3509_v27, %v11160_v60 }
 0x462   : > { %v4145_v55 = vcombine.low %v4137_v61, %v4144_v59  ;;  %v3605_v3 = vrot.slane %v3591_v33, %v11160_v60  ;;  %v1451_v49 = vsub.f32 %v1252_v42, %v13901_v21  ;;  %v13902_v54 = vcombine.low %v11731_v58, %v11742_v62 }
 0x463   : > { %v11907_v23 = vrot.slane %v9587_v36, %v11160_v60  ;;  %v2739_v46 = vrot.slane %v2725_v50, %v11160_v60  ;;  %v2740_v61 = vcombine.high %v2732_v26, %v2732_v26  ;;  %v13903_v27 = vcombine.high %v11731_v58, %v11742_v62 }
 0x464   : > { %v3631_v57 = vrot.slane %v13902_v54, %v11160_v60  ;;  %4700 = vperm.xlu0 %9781, %v4145_v55   ;;  %v3606_v59 = vcombine.low %v3598_v31, %v3605_v3  ;;  %v3639_v33 = vcombine.low %v11771_v39, %v11774_v24  ;;  %v13904_v54 = vcombine.low %v11487_v6, %v11495_v17 }
 0x465   : > { %v3638_v42 = vrot.slane %v13903_v27, %v11160_v60  ;;  %v13905_v50 = vcombine.high %v11487_v6, %v11495_v17  ;;  %v11925_v55 = vrot.slane %v2888_v51, %v11160_v60  ;;  %v4440_v58 = vcombine.low %v11863_v16, %v11885_v41  ;;  %v11935_v17 = vpop.xlane.xlu1 %5411 }
 0x466   : > { %v4366_v43 = vrot.slane %v13904_v54, %v11160_v60  ;;  %v9625_v62 = vcombine.high %v11863_v16, %v11885_v41  ;;  %4667 = vperm.xlu1 %9780, %v3606_v59   ;;  %v4374_v39 = vcombine.low %v11525_v19, %v11534_v44  ;;  %v2235_v24 = vcombine.high %v1451_v49, %v1451_v49  ;;  %v13906_v44 = vld [vmem:[#allocation28_spill] sm:$0xff] }
 0x467   : > { %v4373_v36 = vrot.slane %v13905_v50, %v11160_v60  ;;  %v3640_v31 = vcombine.low %v3631_v57, %v3638_v42  ;;  %v1250_v6 = vadd.f32 %v11155_v20, %v11726_v32  ;;  %v2741_v51 = vcombine.high %v2739_v46, %v2739_v46  ;;  %v11944_v57 = vpop.xlane.xlu0 %5459  ;;  %v13908_v32 = vld [vmem:[#allocation44_spill] sm:$0xff] }
 0x468   : > { %v2762_v27 = vrot.slane %v2740_v61, %v11160_v60  ;;  %v2242_v54 = vrot.slane %v1451_v49, %v11160_v60  ;;  %v3647_v50 = vrot.slane %v3639_v33, %v11160_v60  ;;  %v4382_v41 = vrot.slane %v4374_v39, %v11160_v60 }
 0x469   : > { %v4375_v3 = vcombine.low %v4366_v43, %v4373_v36  ;;  %v3654_v16 = vrot.slane %v3640_v31, %v11160_v60  ;;  %v1449_v43 = vsub.f32 %v1250_v6, %v13906_v44  ;;  %v2748_v49 = vrot.slane %v2732_v26, %v11160_v60 }
 0x46a   : > { %v5522_v59 = vadd.f32 1e-12, %v5490_v11  ;;  %v2249_v42 = vrot.slane %v2235_v24, %v11160_v60  ;;  %v5506_v33 = vmul.f32 0.015625, %v11776_v0  ;;  %v11954_v31 = vrot.slane %v2741_v51, %v11160_v60  ;;  %v11963_v0 = vpop.xlane.xlu1 %5405 }
 0x46b   : > { %v4389_v19 = vrot.slane %v4375_v3, %v11160_v60  ;;  %v3655_v36 = vcombine.low %v3647_v50, %v3654_v16  ;;  %v2250_v3 = vcombine.high %v2242_v54, %v2242_v54  ;;  %v2137_v6 = vcombine.high %v1449_v43, %v1449_v43 }
 0x46c   : > { %v13909_v44 = vcombine.low %v13907_v56, %v13908_v32  ;;  %v11961_v61 = vrot.slane %v4440_v58, %v11160_v60  ;;  %v4293_v26 = vcombine.low %v2748_v49, %v2762_v27  ;;  %v9619_v11 = vcombine.high %v2748_v49, %v2762_v27 }
 0x46d   : > { %v4390_v39 = vcombine.low %v4382_v41, %v4389_v19  ;;  %4670 = vperm.xlu0 %9781, %v3655_v36   ;;  %v11966_v24 = vrot.slane %v2739_v46, %v11160_v60  ;;  %v2144_v51 = vrot.slane %v1449_v43, %v11160_v60  ;;  %v13910_v50 = vcombine.high %v13907_v56, %v13908_v32  ;;  %v13911_v41 = vld [vmem:[#allocation49_spill] sm:$0xff]  ;;  %v13912_v19 = vld [vmem:[#allocation46_spill] sm:$0xff]  ;;  %v11978_v36 = vpop.xlane.xlu0 %5453 }
 0x46e   : > { %v3484_v21 = vrot.slane %v13909_v44, %v11160_v60  ;;  %v3492_v58 = vcombine.low %v13912_v19, %v13911_v41  ;;  %v11976_v44 = vrot.slane %v9625_v62, %v11160_v60  ;;  %9848 = vrsqrt.f32 %v5522_v59 }
 0x46f   : > { %4715 = vperm.xlu1 %9780, %v4390_v39   ;;  %v3491_v16 = vrot.slane %v13910_v50, %v11160_v60  ;;  %v2251_v27 = vcombine.high %v2249_v42, %v2249_v42  ;;  %v5538_v49 = vadd.f32 1e-12, %v5506_v33  ;;  %v4295_v46 = vcombine.low %v11966_v24, %v11954_v31 }
 0x470   : > { %v2272_v43 = vrot.slane %v2250_v3, %v11160_v60  ;;  %v2151_v39 = vrot.slane %v2137_v6, %v11160_v60  ;;  %v9620_v32 = vcombine.high %v11966_v24, %v11954_v31  ;;  %v11987_v50 = vrot.slane %v4293_v26, %v11160_v60 }
 0x471   : > { %v3493_v56 = vcombine.low %v3484_v21, %v3491_v16  ;;  %v11990_v62 = vrot.slane %v9619_v11, %v11160_v60  ;;  %v2258_v59 = vrot.slane %v2242_v54, %v11160_v60  ;;  %v5504_v33 = vmul.f32 0.015625, %v11818_v29  ;;  %v12002_v11 = vpop.xlane.xlu1 %5462 }
 0x472   : > { %v2152_v41 = vcombine.high %v2144_v51, %v2144_v51  ;;  %v3500_v19 = vrot.slane %v3492_v58, %v11160_v60  ;;  %v2265_v21 = vrot.slane %v2249_v42, %v11160_v60  ;;  %v2279_v6 = vrot.slane %v2251_v27, %v11160_v60 }
 0x473   : > { %v3507_v3 = vrot.slane %v3493_v56, %v11160_v60  ;;  %9850 = vrsqrt.f32 %v5538_v49  ;;  %v13913_v31 = vcombine.low %v11859_v48, %v11868_v45  ;;  %v3803_v54 = vcombine.low %v2258_v59, %v2272_v43 }
 0x474   : > { %v9599_v24 = vcombine.high %v2258_v59, %v2272_v43  ;;  %v2153_v29 = vcombine.high %v2151_v39, %v2151_v39  ;;  %v13914_v58 = vcombine.high %v11859_v48, %v11868_v45  ;;  %v3541_v42 = vcombine.low %v11897_v18, %v11907_v23  ;;  %v12018_v59 = vpop.xlane.xlu0 %5414 }
 0x475   : > { %v3533_v26 = vrot.slane %v13913_v31, %v11160_v60  ;;  %v3508_v16 = vcombine.low %v3500_v19, %v3507_v3  ;;  %v13915_v27 = vcombine.low %v11587_v9, %v11592_v25  ;;  %v13916_v31 = vcombine.high %v11587_v9, %v11592_v25 }
 0x476   : > { %v3540_v56 = vrot.slane %v13914_v58, %v11160_v60  ;;  %v12020_v19 = vadd.f32 1e-12, %v5504_v33  ;;  %v2174_v48 = vrot.slane %v2152_v41, %v11160_v60  ;;  %v5491_v45 = vmul.f32 0.015625, %v11865_v30 }
 0x477   : > { %v4268_v49 = vrot.slane %v13915_v27, %v11160_v60  ;;  %v4275_v43 = vrot.slane %v13916_v31, %v11160_v60  ;;  %4661 = vperm.xlu1 %9780, %v3508_v16   ;;  %v4276_v18 = vcombine.low %v11672_v10, %v11675_v63  ;;  %v3805_v23 = vcombine.low %v2265_v21, %v2279_v6 }
 0x478   : > { %v9600_v3 = vcombine.high %v2265_v21, %v2279_v6  ;;  %v3542_v58 = vcombine.low %v3533_v26, %v3540_v56  ;;  %v3813_v35 = vrot.slane %v3803_v54, %v11160_v60  ;;  %v2160_v9 = vrot.slane %v2144_v51, %v11160_v60  ;;  %v12032_v41 = vpop.eup %9848  ;;  %v12038_v21 = vpop.xlane.xlu1 %5456 }
 0x479   : > { %v4277_v27 = vcombine.low %v4268_v49, %v4275_v43  ;;  %v12029_v25 = vrot.slane %v2153_v29, %v11160_v60  ;;  %v5489_v33 = vmul.f32 0.015625, %v11904_v13  ;;  %v3549_v30 = vrot.slane %v3541_v42, %v11160_v60  ;;  %v12047_v49 = vpop.xlane.xlu0 %5408 }
 0x47a   : > { %v3556_v16 = vrot.slane %v3542_v58, %v11160_v60  ;;  %v4284_v10 = vrot.slane %v4276_v18, %v11160_v60  ;;  %v3820_v6 = vrot.slane %v9599_v24, %v11160_v60  ;;  %v12042_v51 = vrot.slane %v2151_v39, %v11160_v60 }
 0x47b   : > { %v4291_v63 = vrot.slane %v4277_v27, %v11160_v60  ;;  %v3705_v26 = vcombine.low %v2160_v9, %v2174_v48  ;;  %v12044_v54 = vadd.f32 1e-12, %v5491_v45  ;;  %v9595_v13 = vcombine.high %v2160_v9, %v2174_v48 }
 0x47c   : > { %v3557_v29 = vcombine.low %v3549_v30, %v3556_v16  ;;  %v5488_v42 = vmul.f32 0.015625, %v11809_v12  ;;  %v4317_v31 = vrot.slane %v4295_v46, %v11160_v60  ;;  %v4324_v43 = vrot.slane %v9620_v32, %v11160_v60 }
 0x47d   : > { %v4292_v56 = vcombine.low %v4284_v10, %v4291_v63  ;;  %v4325_v24 = vcombine.low %v11987_v50, %v11990_v62  ;;  %v13917_v39 = vcombine.low %v11697_v5, %v11700_v34  ;;  %v12057_v18 = vpop.eup %9850  ;;  %v3707_v48 = vcombine.low %v12042_v51, %v12029_v25 }
 0x47e   : > { %v5521_v12 = vadd.f32 1e-12, %v5489_v33  ;;  %4664 = vperm.xlu0 %9781, %v3557_v29   ;;  %v13918_v46 = vcombine.high %v11697_v5, %v11700_v34  ;;  %v3786_v50 = vcombine.low %v11749_v47, %v11752_v15  ;;  %v9596_v62 = vcombine.high %v12042_v51, %v12029_v25  ;;  %v12075_v5 = vpop.xlane.xlu1 %5423  ;;  %v12089_v29 = vpop.xlane.xlu0 %5471 }
 0x47f   : > { %v3778_v45 = vrot.slane %v13917_v39, %v11160_v60  ;;  %4709 = vperm.xlu1 %9780, %v4292_v56   ;;  %v4326_v58 = vcombine.low %v4317_v31, %v4324_v43  ;;  %v5507_v27 = vmul.f32 0.015625, %v11842_v14  ;;  %v3827_v9 = vrot.slane %v3805_v23, %v11160_v60 }
 0x480   : > { %v3785_v32 = vrot.slane %v13918_v46, %v11160_v60  ;;  %v12072_v33 = vrot.slane %v3705_v26, %v11160_v60  ;;  %v5520_v30 = vadd.f32 1e-12, %v5488_v42  ;;  %v3834_v10 = vrot.slane %v9600_v3, %v11160_v60 }
 0x481   : > { %v4333_v34 = vrot.slane %v4325_v24, %v11160_v60  ;;  %v4340_v47 = vrot.slane %v4326_v58, %v11160_v60  ;;  %v3835_v15 = vcombine.low %v3813_v35, %v3820_v6  ;;  %v13919_v14 = vcombine.low %v11757_v52, %v11760_v38 }
 0x482   : > { %v3787_v16 = vcombine.low %v3778_v45, %v3785_v32  ;;  %v3794_v23 = vrot.slane %v3786_v50, %v11160_v60  ;;  %v3836_v51 = vcombine.low %v3827_v9, %v3834_v10  ;;  %v13920_v3 = vcombine.high %v11757_v52, %v11760_v38 }
 0x483   : > { %v4562_v25 = vrot.slane %v13919_v14, %v11160_v60  ;;  %v3722_v56 = vrot.slane %v9595_v13, %v11160_v60  ;;  %v4341_v35 = vcombine.low %v4333_v34, %v4340_v47  ;;  %v5539_v6 = vadd.f32 1e-12, %v5507_v27 }
 0x484   : > { %v3801_v63 = vrot.slane %v3787_v16, %v11160_v60  ;;  %v4569_v26 = vrot.slane %v13920_v3, %v11160_v60  ;;  %v4570_v42 = vcombine.low %v11821_v22, %v11824_v8  ;;  %v3843_v43 = vrot.slane %v3835_v15, %v11160_v60  ;;  %v12116_v16 = vpop.xlane.xlu0 %5465 }
 0x485   : > { %v3850_v24 = vrot.slane %v3836_v51, %v11160_v60  ;;  %9852 = vrsqrt.f32 %v5520_v30  ;;  %4712 = vperm.xlu0 %9781, %v4341_v35   ;;  %v5505_v52 = vmul.f32 0.015625, %v11888_v2  ;;  %v13921_v38 = vcombine.low %v11793_v1, %v11796_v28  ;;  %v12109_v2 = vpop.xlane.xlu1 %5417 }
 0x486   : > { %v3802_v31 = vcombine.low %v3794_v23, %v3801_v63  ;;  %v4571_v39 = vcombine.low %v4562_v25, %v4569_v26  ;;  %v13922_v45 = vcombine.high %v11793_v1, %v11796_v28  ;;  %v4578_v46 = vrot.slane %v4570_v42, %v11160_v60  ;;  %v13927_v42 = vld [vmem:[#allocation6_spill] sm:$0xff] }
 0x487   : > { %v3680_v13 = vrot.slane %v13921_v38, %v11160_v60  ;;  %v3851_v8 = vcombine.low %v3843_v43, %v3850_v24  ;;  %v3688_v50 = vcombine.low %v11834_v53, %v11837_v37  ;;  %v5510_v58 = vmul.f32 0.015625, %v11944_v57 }
 0x488   : > { %v3687_v22 = vrot.slane %v13922_v45, %v11160_v60  ;;  %4679 = vperm.xlu1 %9780, %v3802_v31   ;;  %v4585_v32 = vrot.slane %v4571_v39, %v11160_v60  ;;  %9854 = vrsqrt.f32 %v5539_v6  ;;  %v5494_v9 = vmul.f32 0.015625, %v11935_v17  ;;  %v5427_v26 = vpop.xlane.xlu0 %5426 }
 0x489   : > { %9856 = vrsqrt.f32 %v12020_v19  ;;  %v5495_v1 = vmul.f32 0.015625, %v12018_v59  ;;  %v3729_v30 = vrot.slane %v3707_v48, %v11160_v60  ;;  %4682 = vperm.xlu0 %9781, %v3851_v8   ;;  %v5537_v53 = vadd.f32 1e-12, %v5505_v52  ;;  %v12133_v23 = vpop.xlane.xlu1 %5474  ;;  %v13928_v52 = vld [vmem:[#allocation89_spill] sm:$0xff] }
 0x48a   : > { %v3689_v27 = vcombine.low %v3680_v13, %v3687_v22  ;;  %v4586_v28 = vcombine.low %v4578_v46, %v4585_v32  ;;  %9858 = vrsqrt.f32 %v5521_v12  ;;  %v3696_v37 = vrot.slane %v3688_v50, %v11160_v60  ;;  %v13930_v50 = vld [vmem:[#allocation90_spill] sm:$0xff] }
 0x48b   : > { %v3736_v10 = vrot.slane %v9596_v62, %v11160_v60  ;;  %v3737_v17 = vcombine.low %v12072_v33, %v3722_v56  ;;  %v13923_v59 = vcombine.low %v11882_v7, %v11925_v55  ;;  %v13924_v48 = vcombine.high %v11882_v7, %v11925_v55  ;;  %v13925_v7 = vld [vmem:[#allocation60_spill] sm:$0xff] }
 0x48c   : > { %v3703_v57 = vrot.slane %v3689_v27, %v11160_v60  ;;  %4727 = vperm.xlu1 %9780, %v4586_v28   ;;  %9860 = vrsqrt.f32 %v12044_v54  ;;  %v5542_v34 = vadd.f32 1e-12, %v5510_v58  ;;  %v5526_v47 = vadd.f32 1e-12, %v5494_v9  ;;  %v13931_v28 = vld [vmem:[#allocation57_spill] sm:$0xff] }
 0x48d   : > { %v4464_v19 = vrot.slane %v13923_v59, %v11160_v60  ;;  %v4471_v12 = vrot.slane %v13924_v48, %v11160_v60  ;;  %v4472_v15 = vcombine.low %v11961_v61, %v11976_v44  ;;  %v5527_v62 = vadd.f32 1e-12, %v5495_v1  ;;  %v12151_v8 = vpop.xlane.xlu1 %5468 }
 0x48e   : > { %v3704_v14 = vcombine.low %v3696_v37, %v3703_v57  ;;  %v3738_v33 = vcombine.low %v3729_v30, %v3736_v10  ;;  %9862 = vrsqrt.f32 %v5537_v53  ;;  %v5493_v63 = vmul.f32 0.015625, %v12047_v49  ;;  %v13926_v49 = vld [vmem:[#allocation88_spill] sm:$0xff]  ;;  %v5421_v30 = vpop.xlane.xlu0 %5420  ;;  %v13932_v10 = vld [vmem:[#allocation66_spill] sm:$0xff] }
 0x48f   : > { %v4473_v25 = vcombine.low %v4464_v19, %v4471_v12  ;;  %v3745_v51 = vrot.slane %v3737_v17, %v11160_v60  ;;  %v5586_v55 = vmul.f32 %v12032_v41, %v13925_v7  ;;  %v4480_v3 = vrot.slane %v4472_v15, %v11160_v60  ;;  %v9853_v56 = vpop.eup %9852 }
 0x490   : > { %4673 = vperm.xlu1 %9780, %v3704_v14   ;;  %v3752_v54 = vrot.slane %v3738_v33, %v11160_v60  ;;  %v5511_v44 = vmul.f32 0.015625, %v12002_v11  ;;  %9864 = vrsqrt.f32 %v5526_v47  ;;  %v5492_v35 = vmul.f32 0.015625, %v11963_v0  ;;  %v13929_v0 = vld [vmem:[#allocation64_spill] sm:$0xff] }
 0x491   : > { %v4487_v61 = vrot.slane %v4473_v25, %v11160_v60  ;;  %v5618_v6 = vmul.f32 %v5586_v55, %v13926_v49  ;;  %v5602_v31 = vmul.f32 %v12057_v18, %v13927_v42  ;;  %v5508_v41 = vmul.f32 0.015625, %v11978_v36  ;;  %v12167_v33 = vpop.xlane.xlu1 %5435 }
 0x492   : > { %v3753_v43 = vcombine.low %v3745_v51, %v3752_v54  ;;  %v9855_v39 = vpop.eup %9854  ;;  %9866 = vrsqrt.f32 %v5527_v62  ;;  %v5543_v13 = vadd.f32 1e-12, %v5511_v44  ;;  %v5584_v22 = vmul.f32 %v9853_v56, %v13929_v0  ;;  %v13934_v51 = vld [vmem:[#allocation67_spill] sm:$0xff] }
 0x493   : > { %v4488_v24 = vcombine.low %v4480_v3, %v4487_v61  ;;  %v5650_v38 = vadd.f32 %v5618_v6, %v13928_v52  ;;  %v5634_v11 = vmul.f32 %v5602_v31, %v13926_v49  ;;  %v9857_v45 = vpop.eup %9856  ;;  %9868 = vrsqrt.f32 %v5542_v34  ;;  %v13933_v34 = vld [vmem:[#allocation58_spill] sm:$0xff]  ;;  %v12174_v61 = vpop.xlane.xlu0 %5483  ;;  %v13935_v6 = vld [vmem:[#allocation59_spill] sm:$0xff] }
 0x494   : > { %4676 = vperm.xlu0 %9781, %v3753_v43   ;;  %v9859_v46 = vpop.eup %9858  ;;  %v5525_v18 = vadd.f32 1e-12, %v5493_v63  ;;  %v5524_v36 = vadd.f32 1e-12, %v5492_v35  ;;  %v5509_v32 = vmul.f32 0.015625, %v12038_v21  ;;  %v5616_v9 = vmul.f32 %v5584_v22, %v13926_v49  ;;  %v13936_v43 = vld [vmem:[#allocation70_spill] sm:$0xff] }
 0x495   : > { %4721 = vperm.xlu1 %9780, %v4488_v24   ;;  %v5682_v58 = vmul.f32 %v5650_v38, %v13930_v50  ;;  %v5666_v27 = vadd.f32 %v5634_v11, %v13928_v52  ;;  %v5603_v1 = vmul.f32 %v9855_v39, %v13931_v28  ;;  %v5540_v37 = vadd.f32 1e-12, %v5508_v41  ;;  %v12189_v22 = vpop.xlane.xlu1 %5429  ;;  %v13938_v28 = vld [vmem:[#allocation72_spill] sm:$0xff] }
 0x496   : > { %v9861_v53 = vpop.eup %9860  ;;  %9870 = vrsqrt.f32 %v5543_v13  ;;  %v5499_v57 = vmul.f32 0.015625, %v5427_v26  ;;  %v5600_v17 = vmul.f32 %v9857_v45, %v13932_v10  ;;  %v5498_v59 = vmul.f32 0.015625, %v12075_v5  ;;  %v13937_v45 = vld [vmem:[#allocation61_spill] sm:$0xff] }
 0x497   : > { %v5635_v21 = vmul.f32 %v5603_v1, %v13926_v49  ;;  %9872 = vrsqrt.f32 %v5524_v36  ;;  %v5541_v48 = vadd.f32 1e-12, %v5509_v32  ;;  %v5585_v47 = vmul.f32 %v9859_v46, %v13933_v34 }
 0x498   : > { %v9863_v19 = vpop.eup %9862  ;;  %v5632_v12 = vmul.f32 %v5600_v17, %v13926_v49  ;;  %9874 = vrsqrt.f32 %v5525_v18  ;;  %v5698_v15 = vmul.f32 %v5666_v27, %v13930_v50  ;;  %v5648_v62 = vadd.f32 %v5616_v9, %v13928_v52 }
 0x499   : > { %5748 = vrot.lane.b32.xlu1 %v5682_v58, %s9941_s20  ;;  %v5667_v14 = vadd.f32 %v5635_v21, %v13928_v52  ;;  %9876 = vrsqrt.f32 %v5540_v37  ;;  %v5531_v5 = vadd.f32 1e-12, %v5499_v57  ;;  %v5617_v63 = vmul.f32 %v5585_v47, %v13926_v49 }
 0x49a   : > { %v9865_v25 = vpop.eup %9864  ;;  %v5587_v7 = vmul.f32 %v9861_v53, %v13934_v51  ;;  %v5514_v55 = vmul.f32 0.015625, %v12089_v29  ;;  %v5530_v54 = vadd.f32 1e-12, %v5498_v59  ;;  %v5515_v44 = vmul.f32 0.015625, %v12133_v23  ;;  %v13941_v51 = vld [vmem:[#allocation63_spill] sm:$0xff] }
 0x49b   : > { %v5699_v3 = vmul.f32 %v5667_v14, %v13930_v50  ;;  %9878 = vrsqrt.f32 %v5541_v48  ;;  %v5664_v56 = vadd.f32 %v5632_v12, %v13928_v52  ;;  %v5649_v35 = vadd.f32 %v5617_v63, %v13928_v52  ;;  %v5439_v14 = vpop.xlane.xlu1 %5438 }
 0x49c   : > { %v9867_v26 = vpop.eup %9866  ;;  %v5601_v42 = vmul.f32 %v9863_v19, %v13935_v6  ;;  %v5680_v31 = vmul.f32 %v5648_v62, %v13930_v50  ;;  %v5619_v29 = vmul.f32 %v5587_v7, %v13926_v49  ;;  %v5547_v41 = vadd.f32 1e-12, %v5515_v44  ;;  %v13939_v19 = vld [vmem:[#allocation62_spill] sm:$0xff] }
 0x49d   : > { %5780 = vrot.lane.b32.xlu1 %v5698_v15, %s9941_s20  ;;  %5782 = vrot.lane.b32.xlu0 %v5699_v3, %s9941_s20  ;;  %v5590_v24 = vmul.f32 %v9865_v25, %v13936_v43  ;;  %v9869_v39 = vpop.eup %9868  ;;  %9880 = vrsqrt.f32 %v5531_v5  ;;  %v5497_v23 = vmul.f32 0.015625, %v5421_v30  ;;  %v5496_v13 = vmul.f32 0.015625, %v12109_v2  ;;  %v12196_v2 = vpop.xlane.xlu0 %5477  ;;  %v13940_v15 = vld [vmem:[#allocation74_spill] sm:$0xff]  ;;  %v13942_v43 = vld [vmem:[#allocation75_spill] sm:$0xff] }
 0x49e   : > { %v5633_v38 = vmul.f32 %v5601_v42, %v13926_v49  ;;  %9882 = vrsqrt.f32 %v5530_v54  ;;  %v5681_v11 = vmul.f32 %v5649_v35, %v13930_v50  ;;  %v5591_v0 = vmul.f32 %v9867_v26, %v13937_v45 }
 0x49f   : > { %v5546_v18 = vadd.f32 1e-12, %v5514_v55  ;;  %v5696_v36 = vmul.f32 %v5664_v56, %v13930_v50  ;;  %v5622_v58 = vmul.f32 %v5590_v24, %v13926_v49  ;;  %v5651_v27 = vadd.f32 %v5619_v29, %v13928_v52 }
 0x4a0   : > { %v9871_v46 = vpop.eup %9870  ;;  %v5665_v32 = vadd.f32 %v5633_v38, %v13928_v52  ;;  %9884 = vrsqrt.f32 %v5547_v41  ;;  %v5623_v9 = vmul.f32 %v5591_v0, %v13926_v49  ;;  %v5606_v1 = vmul.f32 %v9869_v39, %v13938_v28  ;;  %v5433_v0 = vpop.xlane.xlu1 %5432 }
 0x4a1   : > { %5744 = vrot.lane.b32.xlu1 %v5680_v31, %s9941_s20  ;;  %5746 = vrot.lane.b32.xlu0 %v5681_v11, %s9941_s20  ;;  %v9873_v30 = vpop.eup %9872  ;;  %v5512_v53 = vmul.f32 0.015625, %v12116_v16  ;;  %v5529_v37 = vadd.f32 1e-12, %v5497_v23  ;;  %v5513_v57 = vmul.f32 0.015625, %v12151_v8  ;;  %v5528_v17 = vadd.f32 1e-12, %v5496_v13  ;;  %v5487_v54 = vpop.xlane.xlu0 %5486 }
 0x4a2   : > { %v9875_v10 = vpop.eup %9874  ;;  %v5697_v59 = vmul.f32 %v5665_v32, %v13930_v50  ;;  %v5655_v21 = vadd.f32 %v5623_v9, %v13928_v52  ;;  %v5607_v48 = vmul.f32 %v9871_v46, %v13939_v19  ;;  %9886 = vrsqrt.f32 %v5546_v18  ;;  %v13944_v46 = vld [vmem:[#allocation68_spill] sm:$0xff] }
 0x4a3   : > { %v9877_v12 = vpop.eup %9876  ;;  %v5654_v34 = vadd.f32 %v5622_v58, %v13928_v52  ;;  %v5638_v47 = vmul.f32 %v5606_v1, %v13926_v49  ;;  %v5683_v16 = vmul.f32 %v5651_v27, %v13930_v50  ;;  %v5588_v62 = vmul.f32 %v9873_v30, %v13940_v15  ;;  %v13945_v58 = vld [vmem:[#allocation76_spill] sm:$0xff]  ;;  %v13947_v15 = vld [vmem:[#allocation77_spill] sm:$0xff] }
 0x4a4   : > { %v5639_v8 = vmul.f32 %v5607_v48, %v13926_v49  ;;  %v5544_v5 = vadd.f32 1e-12, %v5512_v53  ;;  %9888 = vrsqrt.f32 %v5529_v37  ;;  %v5545_v63 = vadd.f32 1e-12, %v5513_v57  ;;  %v13946_v57 = vld [vmem:[#allocation69_spill] sm:$0xff] }
 0x4a5   : > { %5776 = vrot.lane.b32.xlu1 %v5696_v36, %s9941_s20  ;;  %5778 = vrot.lane.b32.xlu0 %v5697_v59, %s9941_s20  ;;  %v9879_v25 = vpop.eup %9878  ;;  %v5589_v7 = vmul.f32 %v9875_v10, %v13941_v51  ;;  %9890 = vrsqrt.f32 %v5528_v17  ;;  %v5687_v55 = vmul.f32 %v5655_v21, %v13930_v50  ;;  %v5502_v3 = vmul.f32 0.015625, %v12167_v33  ;;  %v13943_v33 = vld [vmem:[#allocation65_spill] sm:$0xff]  ;;  %v13948_v51 = vld [vmem:[#allocation71_spill] sm:$0xff] }
 0x4a6   : > { %v5671_v44 = vadd.f32 %v5639_v8, %v13928_v52  ;;  %v5686_v56 = vmul.f32 %v5654_v34, %v13930_v50  ;;  %v5670_v35 = vadd.f32 %v5638_v47, %v13928_v52  ;;  %v5503_v42 = vmul.f32 0.015625, %v5439_v14 }
 0x4a7   : > { %v9881_v26 = vpop.eup %9880  ;;  %v5621_v6 = vmul.f32 %v5589_v7, %v13926_v49  ;;  %v5620_v41 = vmul.f32 %v5588_v62, %v13926_v49  ;;  %v5604_v24 = vmul.f32 %v9877_v12, %v13942_v43  ;;  %v5605_v39 = vmul.f32 %v9879_v25, %v13943_v33 }
 0x4a8   : > { %v9883_v31 = vpop.eup %9882  ;;  %v5703_v29 = vmul.f32 %v5671_v44, %v13930_v50  ;;  %9892 = vrsqrt.f32 %v5545_v63  ;;  %v5519_v23 = vmul.f32 0.015625, %v5487_v54  ;;  %v5535_v38 = vadd.f32 1e-12, %v5503_v42  ;;  %v13949_v42 = vld [vmem:[#allocation79_spill] sm:$0xff] }
 0x4a9   : > { %5750 = vrot.lane.b32.xlu1 %v5683_v16, %s9941_s20  ;;  %5758 = vrot.lane.b32.xlu0 %v5687_v55, %s9941_s20  ;;  %9894 = vrsqrt.f32 %v5544_v5  ;;  %v5653_v11 = vadd.f32 %v5621_v6, %v13928_v52  ;;  %v5637_v45 = vmul.f32 %v5605_v39, %v13926_v49  ;;  %v5595_v18 = vmul.f32 %v9881_v26, %v13944_v46  ;;  %v13952_v46 = vld [vmem:[#allocation78_spill] sm:$0xff] }
 0x4aa   : > { %v9885_v13 = vpop.eup %9884  ;;  %v5518_v36 = vmul.f32 0.015625, %v12174_v61  ;;  %v5534_v32 = vadd.f32 1e-12, %v5502_v3  ;;  %9896 = vrsqrt.f32 %v5535_v38  ;;  %v5594_v27 = vmul.f32 %v9883_v31, %v13945_v58  ;;  %v5481_v61 = vpop.xlane.xlu0 %5480  ;;  %v13951_v38 = vld [vmem:[#allocation81_spill] sm:$0xff] }
 0x4ab   : > { %v5702_v9 = vmul.f32 %v5670_v35, %v13930_v50  ;;  %v5652_v28 = vadd.f32 %v5620_v41, %v13928_v52  ;;  %v5636_v1 = vmul.f32 %v5604_v24, %v13926_v49  ;;  %v5551_v53 = vadd.f32 1e-12, %v5519_v23  ;;  %v13950_v24 = vld [vmem:[#allocation73_spill] sm:$0xff] }
 0x4ac   : > { %v9887_v30 = vpop.eup %9886  ;;  %v5501_v37 = vmul.f32 0.015625, %v5433_v0  ;;  %v5611_v10 = vmul.f32 %v9885_v13, %v13946_v57  ;;  %v5685_v17 = vmul.f32 %v5653_v11, %v13930_v50  ;;  %v5669_v59 = vadd.f32 %v5637_v45, %v13928_v52 }
 0x4ad   : > { %5756 = vrot.lane.b32.xlu1 %v5686_v56, %s9941_s20  ;;  %5790 = vrot.lane.b32.xlu0 %v5703_v29, %s9941_s20  ;;  %v5627_v21 = vmul.f32 %v5595_v18, %v13926_v49  ;;  %v5550_v48 = vadd.f32 1e-12, %v5518_v36  ;;  %9898 = vrsqrt.f32 %v5534_v32  ;;  %v5500_v12 = vmul.f32 0.015625, %v12189_v22 }
 0x4ae   : > { %v9889_v19 = vpop.eup %9888  ;;  %v5626_v34 = vmul.f32 %v5594_v27, %v13926_v49  ;;  %v5684_v16 = vmul.f32 %v5652_v28, %v13930_v50  ;;  %v5668_v8 = vadd.f32 %v5636_v1, %v13928_v52  ;;  %v5610_v62 = vmul.f32 %v9887_v30, %v13947_v15  ;;  %v13953_v30 = vld [vmem:[#allocation84_spill] sm:$0xff]  ;;  %v12288_v15 = vpop.permute.xlu1 %4643 }
 0x4af   : > { %v9891_v47 = vpop.eup %9890  ;;  %v5643_v14 = vmul.f32 %v5611_v10, %v13926_v49  ;;  %9900 = vrsqrt.f32 %v5551_v53  ;;  %v5517_v25 = vmul.f32 0.015625, %v5481_v61  ;;  %v5533_v5 = vadd.f32 1e-12, %v5501_v37 }
 0x4b0   : > { %v5701_v22 = vmul.f32 %v5669_v59, %v13930_v50  ;;  %v5659_v63 = vadd.f32 %v5627_v21, %v13928_v52  ;;  %v5593_v7 = vmul.f32 %v9889_v19, %v13948_v51  ;;  %9902 = vrsqrt.f32 %v5550_v48 }
 0x4b1   : > { %5788 = vrot.lane.b32.xlu1 %v5702_v9, %s9941_s20  ;;  %5754 = vrot.lane.b32.xlu0 %v5685_v17, %s9941_s20  ;;  %v5516_v54 = vmul.f32 0.015625, %v12196_v2  ;;  %v5532_v3 = vadd.f32 1e-12, %v5500_v12  ;;  %v5658_v44 = vadd.f32 %v5626_v34, %v13928_v52  ;;  %v5700_v56 = vmul.f32 %v5668_v8, %v13930_v50  ;;  %v13954_v17 = vld [vmem:[#allocation80_spill] sm:$0xff]  ;;  %v13955_v34 = vld [vmem:[#allocation85_spill] sm:$0xff] }
 0x4b2   : > { %v9893_v55 = vpop.eup %9892  ;;  %v5642_v35 = vmul.f32 %v5610_v62, %v13926_v49  ;;  %v5675_v6 = vadd.f32 %v5643_v14, %v13928_v52  ;;  %v5592_v31 = vmul.f32 %v9891_v47, %v13949_v42  ;;  %v5549_v41 = vadd.f32 1e-12, %v5517_v25  ;;  %v13956_v25 = vld [vmem:[#allocation82_spill] sm:$0xff]  ;;  %v12304_v42 = vpop.permute.xlu1 %4691 }
 0x4b3   : > { %v9895_v26 = vpop.eup %9894  ;;  %9904 = vrsqrt.f32 %v5533_v5  ;;  %v5691_v2 = vmul.f32 %v5659_v63, %v13930_v50  ;;  %v5625_v43 = vmul.f32 %v5593_v7, %v13926_v49  ;;  %v5609_v33 = vmul.f32 %v9893_v55, %v13950_v24 }
 0x4b4   : > { %v9897_v29 = vpop.eup %9896  ;;  %v5548_v39 = vadd.f32 1e-12, %v5516_v54  ;;  %9906 = vrsqrt.f32 %v5532_v3  ;;  %v5690_v23 = vmul.f32 %v5658_v44, %v13930_v50  ;;  %v5608_v13 = vmul.f32 %v9895_v26, %v13951_v38  ;;  %v13957_v54 = vld [vmem:[#allocation86_spill] sm:$0xff] }
 0x4b5   : > { %5752 = vrot.lane.b32.xlu1 %v5684_v16, %s9941_s20  ;;  %5786 = vrot.lane.b32.xlu0 %v5701_v22, %s9941_s20  ;;  %v5674_v11 = vadd.f32 %v5642_v35, %v13928_v52  ;;  %v5707_v45 = vmul.f32 %v5675_v6, %v13930_v50  ;;  %v5624_v0 = vmul.f32 %v5592_v31, %v13926_v49  ;;  %9908 = vrsqrt.f32 %v5549_v41  ;;  %v13958_v35 = vld [vmem:[#allocation83_spill] sm:$0xff] }
 0x4b6   : > { %v5599_v18 = vmul.f32 %v9897_v29, %v13952_v46  ;;  %v5657_v32 = vadd.f32 %v5625_v43, %v13928_v52  ;;  %v5641_v58 = vmul.f32 %v5609_v33, %v13926_v49  ;;  %9910 = vrsqrt.f32 %v5548_v39 }
 0x4b7   : > { %v9899_v36 = vpop.eup %9898  ;;  %v5640_v9 = vmul.f32 %v5608_v13, %v13926_v49  ;;  %v5706_v28 = vmul.f32 %v5674_v11, %v13930_v50  ;;  %v5656_v1 = vadd.f32 %v5624_v0, %v13928_v52 }
 0x4b8   : > { %v5598_v53 = vmul.f32 %v9899_v36, %v13953_v30  ;;  %v5631_v37 = vmul.f32 %v5599_v18, %v13926_v49  ;;  %v5689_v10 = vmul.f32 %v5657_v32, %v13930_v50  ;;  %v5673_v61 = vadd.f32 %v5641_v58, %v13928_v52  ;;  %v12329_v32 = vpop.permute.xlu0 %4637 }
 0x4b9   : > { %5784 = vrot.lane.b32.xlu1 %v5700_v56, %s9941_s20  ;;  %5766 = vrot.lane.b32.xlu0 %v5691_v2, %s9941_s20  ;;  %v9901_v27 = vpop.eup %9900  ;;  %v5672_v19 = vadd.f32 %v5640_v9, %v13928_v52  ;;  %v5688_v48 = vmul.f32 %v5656_v1, %v13930_v50  ;;  %v13959_v2 = vld [vmem:[#allocation87_spill] sm:$0xff] }
 0x4ba   : > { %v9903_v57 = vpop.eup %9902  ;;  %v5615_v59 = vmul.f32 %v9901_v27, %v13954_v17  ;;  %v5630_v12 = vmul.f32 %v5598_v53, %v13926_v49  ;;  %v5663_v16 = vadd.f32 %v5631_v37, %v13928_v52  ;;  %v5705_v62 = vmul.f32 %v5673_v61, %v13930_v50 }
 0x4bb   : > { %v5614_v47 = vmul.f32 %v9903_v57, %v13955_v34  ;;  %v5704_v63 = vmul.f32 %v5672_v19, %v13930_v50 }
 0x4bc   : > { %v5647_v14 = vmul.f32 %v5615_v59, %v13926_v49  ;;  %v5662_v51 = vadd.f32 %v5630_v12, %v13928_v52  ;;  %v5695_v55 = vmul.f32 %v5663_v16, %v13930_v50  ;;  %v12335_v27 = vpop.permute.xlu0 %4646 }
 0x4bd   : > { %5764 = vrot.lane.b32.xlu1 %v5690_v23, %s9941_s20  ;;  %5798 = vrot.lane.b32.xlu0 %v5707_v45, %s9941_s20  ;;  %v9905_v21 = vpop.eup %9904  ;;  %v5646_v7 = vmul.f32 %v5614_v47, %v13926_v49  ;;  %v12315_v23 = vpop.permute.xlu1 %4685 }
 0x4be   : > { %v9907_v8 = vpop.eup %9906  ;;  %v5597_v5 = vmul.f32 %v9905_v21, %v13956_v25  ;;  %v5679_v26 = vadd.f32 %v5647_v14, %v13928_v52  ;;  %v5694_v31 = vmul.f32 %v5662_v51, %v13930_v50 }
 0x4bf   : > { %v9909_v22 = vpop.eup %9908  ;;  %v5596_v3 = vmul.f32 %v9907_v8, %v13957_v54  ;;  %v5678_v29 = vadd.f32 %v5646_v7, %v13928_v52 }
 0x4c0   : > { %v9911_v44 = vpop.eup %9910  ;;  %v5629_v56 = vmul.f32 %v5597_v5, %v13926_v49  ;;  %v5613_v6 = vmul.f32 %v9909_v22, %v13958_v35  ;;  %v5711_v24 = vmul.f32 %v5679_v26, %v13930_v50 }
 0x4c1   : > { %5796 = vrot.lane.b32.xlu1 %v5706_v28, %s9941_s20  ;;  %5762 = vrot.lane.b32.xlu0 %v5689_v10, %s9941_s20  ;;  %v5628_v41 = vmul.f32 %v5596_v3, %v13926_v49  ;;  %v5612_v43 = vmul.f32 %v9911_v44, %v13959_v2  ;;  %v5710_v38 = vmul.f32 %v5678_v29, %v13930_v50  ;;  %v12324_v46 = vpop.permute.xlu1 %4640  ;;  %v12340_v28 = vpop.permute.xlu0 %4694 }
 0x4c2   : > { %v5661_v33 = vadd.f32 %v5629_v56, %v13928_v52  ;;  %v5645_v39 = vmul.f32 %v5613_v6, %v13926_v49 }
 0x4c3   : > { %v5660_v13 = vadd.f32 %v5628_v41, %v13928_v52  ;;  %v5644_v11 = vmul.f32 %v5612_v43, %v13926_v49 }
 0x4c4   : > { %v5693_v45 = vmul.f32 %v5661_v33, %v13930_v50  ;;  %v5677_v0 = vadd.f32 %v5645_v39, %v13928_v52 }
 0x4c5   : > { %5760 = vrot.lane.b32.xlu1 %v5688_v48, %s9941_s20  ;;  %5794 = vrot.lane.b32.xlu0 %v5705_v62, %s9941_s20  ;;  %v5692_v18 = vmul.f32 %v5660_v13, %v13930_v50  ;;  %v5676_v36 = vadd.f32 %v5644_v11, %v13928_v52  ;;  %v12337_v9 = vpop.permute.xlu1 %4655  ;;  %v12344_v1 = vpop.permute.xlu0 %4688 }
 0x4c6   : > { %v5709_v49 = vmul.f32 %v5677_v0, %v13930_v50 }
 0x4c7   : > { %v5708_v58 = vmul.f32 %v5676_v36, %v13930_v50 }
 0x4c9   : > { %5792 = vrot.lane.b32.xlu1 %v5704_v63, %s9941_s20  ;;  %5774 = vrot.lane.b32.xlu0 %v5695_v55, %s9941_s20  ;;  %v12342_v52 = vpop.permute.xlu1 %4703  ;;  %v12348_v53 = vpop.permute.xlu0 %4658 }
 0x4cd   : > { %5772 = vrot.lane.b32.xlu1 %v5694_v31, %s9941_s20  ;;  %5806 = vrot.lane.b32.xlu0 %v5711_v24, %s9941_s20 }
 0x4ce   : > { %v12352_v50 = vpop.permute.xlu0 %4706 }
 0x4cf   : > { %v12346_v30 = vpop.permute.xlu1 %4649 }
 0x4d1   : > { %5804 = vrot.lane.b32.xlu1 %v5710_v38, %s9941_s20  ;;  %5770 = vrot.lane.b32.xlu0 %v5693_v45, %s9941_s20 }
 0x4d5   : > { %5768 = vrot.lane.b32.xlu1 %v5692_v18, %s9941_s20  ;;  %5802 = vrot.lane.b32.xlu0 %v5709_v49, %s9941_s20 }
 0x4d9   : > { %5800 = vrot.lane.b32.xlu1 %v5708_v58, %s9941_s20 }
 0x4da   : > { %v12356_v10 = vpop.permute.xlu0 %4652 }
 0x4dd   : > { %v12350_v37 = vpop.permute.xlu1 %4697 }
 0x4e3   : > { %v12360_v17 = vpop.permute.xlu0 %4700 }
 0x4e5   : > { %v12354_v57 = vpop.permute.xlu1 %4667 }
 0x4ec   : > { %v12364_v21 = vpop.permute.xlu0 %4670 }
 0x4ee   : > { %v12358_v61 = vpop.permute.xlu1 %4715 }
 0x4f6   : > { %v12362_v59 = vpop.permute.xlu1 %4661 }
 0x4fd   : > { %v12368_v48 = vpop.permute.xlu0 %4664 }
 0x4fe   : > { %v12366_v19 = vpop.permute.xlu1 %4709 }
 0x504   : > { %v12372_v34 = vpop.permute.xlu0 %4712 }
 0x507   : > { %v12370_v12 = vpop.permute.xlu1 %4679 }
 0x508   : > { %v12376_v16 = vpop.permute.xlu0 %4682 }
 0x50b   : > { %v12374_v47 = vpop.permute.xlu1 %4727 }
 0x50c   : > { %13960 = vst [vmem:[#allocation51_spill] sm:$0xff] %v12374_v47  ;;  %v14000_v47 = vld [vmem:[#allocation35_spill] sm:$0xff] }
 0x50f   : > { %v12378_v8 = vpop.permute.xlu1 %4673 }
 0x513   : > { %v12382_v14 = vpop.permute.xlu0 %4676 }
 0x514   : > { %v12380_v62 = vpop.permute.xlu1 %4721 }
 0x515   : > { %13961 = vst [vmem:[#allocation50_spill] sm:$0xff] %v12380_v62 }
 0x517   : > { %v5783_v5 = vpop.permute.xlu0 %5782 }
 0x518   : > { %v5749_v25 = vpop.permute.xlu1 %5748  ;;  %v5897_v43 = vsel %vm614_vm1, %v5783_v5, 0.0 }
 0x519   : > { %v5846_v22 = vsel %vm614_vm1, %v5749_v25, 0.0 }
 0x51a   : > { %5847 = vadd.xlane.f32.xlu0 %v5846_v22 }
 0x51b   : > { %v5747_v51 = vpop.permute.xlu0 %5746 }
 0x51c   : > { %v5781_v63 = vpop.permute.xlu1 %5780  ;;  %v5843_v33 = vsel %vm614_vm1, %v5747_v51, 0.0 }
 0x51d   : > { %v5894_v7 = vsel %vm614_vm1, %v5781_v63, 0.0 }
 0x51e   : > { %5895 = vadd.xlane.f32.xlu1 %v5894_v7 }
 0x51f   : > { %v5779_v54 = vpop.permute.xlu0 %5778 }
 0x520   : > { %v5745_v55 = vpop.permute.xlu1 %5744  ;;  %v5891_v11 = vsel %vm614_vm1, %v5779_v54, 0.0 }
 0x521   : > { %v5840_v3 = vsel %vm614_vm1, %v5745_v55, 0.0 }
 0x522   : > { %5841 = vadd.xlane.f32.xlu1 %v5840_v3 }
 0x523   : > { %v5759_v26 = vpop.permute.xlu0 %5758 }
 0x524   : > { %v5777_v44 = vpop.permute.xlu1 %5776  ;;  %v5861_v36 = vsel %vm614_vm1, %v5759_v26, 0.0 }
 0x525   : > { %v5888_v56 = vsel %vm614_vm1, %v5777_v44, 0.0 }
 0x526   : > { %5889 = vadd.xlane.f32.xlu1 %v5888_v56 }
 0x527   : > { %v5791_v6 = vpop.permute.xlu0 %5790 }
 0x528   : > { %v5751_v35 = vpop.permute.xlu1 %5750  ;;  %v5909_v25 = vsel %vm614_vm1, %v5791_v6, 0.0 }
 0x529   : > { %v5849_v31 = vsel %vm614_vm1, %v5751_v35, 0.0 }
 0x52a   : > { %5850 = vadd.xlane.f32.xlu0 %v5849_v31 }
 0x52b   : > { %v5755_v41 = vpop.permute.xlu0 %5754 }
 0x52c   : > { %v5757_v29 = vpop.permute.xlu1 %5756  ;;  %v5855_v51 = vsel %vm614_vm1, %v5755_v41, 0.0 }
 0x52d   : > { %v5858_v2 = vsel %vm614_vm1, %v5757_v29, 0.0 }
 0x52e   : > { %5859 = vadd.xlane.f32.xlu1 %v5858_v2  ;;  %5898 = vadd.xlane.f32.xlu0 %v5897_v43 }
 0x52f   : > { %v5787_v38 = vpop.permute.xlu0 %5786 }
 0x530   : > { %v5789_v24 = vpop.permute.xlu1 %5788  ;;  %v5903_v3 = vsel %vm614_vm1, %v5787_v38, 0.0 }
 0x531   : > { %v5906_v39 = vsel %vm614_vm1, %v5789_v24, 0.0 }
 0x532   : > { %5907 = vadd.xlane.f32.xlu1 %v5906_v39  ;;  %5844 = vadd.xlane.f32.xlu0 %v5843_v33  ;;  %v13962_v33 = vld [vmem:[#allocation45_spill] sm:$0xff] }
 0x533   : > { %v5767_v0 = vpop.permute.xlu0 %5766  ;;  %v1264_v39 = vadd.f32 %v11155_v20, %v13962_v33 }
 0x534   : > { %v5753_v13 = vpop.permute.xlu1 %5752  ;;  %v5873_v56 = vsel %vm614_vm1, %v5767_v0, 0.0 }
 0x535   : > { %v5852_v45 = vsel %vm614_vm1, %v5753_v13, 0.0 }
 0x536   : > { %5853 = vadd.xlane.f32.xlu1 %v5852_v45  ;;  %5892 = vadd.xlane.f32.xlu0 %v5891_v11  ;;  %v13963_v45 = vld [vmem:[#allocation38_spill] sm:$0xff] }
 0x537   : > { %v5799_v22 = vpop.permute.xlu0 %5798  ;;  %v1463_v0 = vsub.f32 %v1264_v39, %v13963_v45 }
 0x538   : > { %v5785_v18 = vpop.permute.xlu1 %5784  ;;  %v5921_v29 = vsel %vm614_vm1, %v5799_v22, 0.0 }
 0x539   : > { %v5900_v49 = vsel %vm614_vm1, %v5785_v18, 0.0  ;;  %v1266_v18 = vadd.f32 %v11155_v20, %v11762_v4 }
 0x53a   : > { %5901 = vadd.xlane.f32.xlu1 %v5900_v49  ;;  %5862 = vadd.xlane.f32.xlu0 %v5861_v36 }
 0x53b   : > { %v5763_v55 = vpop.permute.xlu0 %5762 }
 0x53c   : > { %v5765_v58 = vpop.permute.xlu1 %5764  ;;  %v5867_v24 = vsel %vm614_vm1, %v5763_v55, 0.0 }
 0x53d   : > { %v5870_v5 = vsel %vm614_vm1, %v5765_v58, 0.0  ;;  %v13964_v58 = vld [vmem:[#allocation48_spill] sm:$0xff] }
 0x53e   : > { %5871 = vadd.xlane.f32.xlu1 %v5870_v5  ;;  %5910 = vadd.xlane.f32.xlu0 %v5909_v25  ;;  %v1268_v25 = vadd.f32 %v11155_v20, %v13964_v58  ;;  %v2830_v20 = vrot.slane %v1463_v0, %v11160_v60 }
 0x53f   : > { %v5795_v6 = vpop.permute.xlu0 %5794 }
 0x540   : > { %v5797_v63 = vpop.permute.xlu1 %5796  ;;  %v5915_v13 = vsel %vm614_vm1, %v5795_v6, 0.0 }
 0x541   : > { %v5918_v7 = vsel %vm614_vm1, %v5797_v63, 0.0  ;;  %v2823_v63 = vcombine.high %v1463_v0, %v1463_v0 }
 0x542   : > { %5919 = vadd.xlane.f32.xlu1 %v5918_v7  ;;  %5856 = vadd.xlane.f32.xlu0 %v5855_v51  ;;  %v13965_v51 = vld [vmem:[#allocation39_spill] sm:$0xff] }
 0x543   : > { %v5775_v2 = vpop.permute.xlu0 %5774  ;;  %v1465_v7 = vsub.f32 %v1266_v18, %v13965_v51 }
 0x544   : > { %v5761_v54 = vpop.permute.xlu1 %5760  ;;  %v5885_v4 = vsel %vm614_vm1, %v5775_v2, 0.0 }
 0x545   : > { %v5864_v44 = vsel %vm614_vm1, %v5761_v54, 0.0  ;;  %v13966_v54 = vld [vmem:[#allocation40_spill] sm:$0xff]  ;;  %v2928_v2 = vrot.slane %v1465_v7, %v11160_v60 }
 0x546   : > { %5865 = vadd.xlane.f32.xlu1 %v5864_v44  ;;  %5904 = vadd.xlane.f32.xlu0 %v5903_v3  ;;  %v1467_v3 = vsub.f32 %v1268_v25, %v13966_v54 }
 0x547   : > { %v5807_v36 = vpop.permute.xlu0 %5806  ;;  %v2936_v18 = vcombine.high %v2928_v2, %v2928_v2 }
 0x548   : > { %v5793_v26 = vpop.permute.xlu1 %5792  ;;  %v5933_v44 = vsel %vm614_vm1, %v5807_v36, 0.0 }
 0x549   : > { %v5912_v35 = vsel %vm614_vm1, %v5793_v26, 0.0  ;;  %v2837_v26 = vrot.slane %v2823_v63, %v11160_v60 }
 0x54a   : > { %5913 = vadd.xlane.f32.xlu1 %v5912_v35  ;;  %5874 = vadd.xlane.f32.xlu0 %v5873_v56  ;;  %v2921_v56 = vcombine.high %v1465_v7, %v1465_v7  ;;  %v3019_v35 = vcombine.high %v1467_v3, %v1467_v3 }
 0x54b   : > { %v5771_v55 = vpop.permute.xlu0 %5770 }
 0x54c   : > { %v5773_v31 = vpop.permute.xlu1 %5772  ;;  %v5879_v6 = vsel %vm614_vm1, %v5771_v55, 0.0 }
 0x54d   : > { %v5882_v41 = vsel %vm614_vm1, %v5773_v31, 0.0  ;;  %v2839_v31 = vcombine.high %v2837_v26, %v2837_v26 }
 0x54e   : > { %5883 = vadd.xlane.f32.xlu1 %v5882_v41  ;;  %5922 = vadd.xlane.f32.xlu0 %v5921_v29  ;;  %v2935_v29 = vrot.slane %v2921_v56, %v11160_v60 }
 0x54f   : > { %v5803_v41 = vpop.permute.xlu0 %5802  ;;  %v2867_v39 = vrot.slane %v2839_v31, %v11160_v60 }
 0x550   : > { %v5805_v43 = vpop.permute.xlu1 %5804  ;;  %v5927_v33 = vsel %vm614_vm1, %v5803_v41, 0.0  ;;  %v2951_v55 = vrot.slane %v2935_v29, %v11160_v60 }
 0x551   : > { %v5930_v5 = vsel %vm614_vm1, %v5805_v43, 0.0  ;;  %v2838_v43 = vcombine.high %v2830_v20, %v2830_v20 }
 0x552   : > { %5868 = vadd.xlane.f32.xlu0 %v5867_v24  ;;  %v3033_v24 = vrot.slane %v3019_v35, %v11160_v60 }
 0x553   : > { %v2860_v0 = vrot.slane %v2838_v43, %v11160_v60 }
 0x554   : > { %v5769_v38 = vpop.permute.xlu1 %5768  ;;  %v3035_v36 = vcombine.high %v3033_v24, %v3033_v24 }
 0x555   : > { %v5876_v11 = vsel %vm614_vm1, %v5769_v38, 0.0  ;;  %v2937_v38 = vcombine.high %v2935_v29, %v2935_v29 }
 0x556   : > { %5877 = vadd.xlane.f32.xlu1 %v5876_v11  ;;  %5916 = vadd.xlane.f32.xlu0 %v5915_v13  ;;  %v3026_v13 = vrot.slane %v1467_v3, %v11160_v60  ;;  %v2853_v11 = vrot.slane %v2837_v26, %v11160_v60  ;;  %v3063_v3 = vrot.slane %v3035_v36, %v11160_v60 }
 0x558   : > { %v5801_v49 = vpop.permute.xlu1 %5800  ;;  %v4393_v58 = vcombine.low %v2853_v11, %v2867_v39  ;;  %v9624_v25 = vcombine.high %v2853_v11, %v2867_v39  ;;  %v3042_v39 = vrot.slane %v3026_v13, %v11160_v60 }
 0x559   : > { %v5924_v22 = vsel %vm614_vm1, %v5801_v49, 0.0  ;;  %v2846_v49 = vrot.slane %v2830_v20, %v11160_v60 }
 0x55a   : > { %5925 = vadd.xlane.f32.xlu1 %v5924_v22  ;;  %5931 = vadd.xlane.f32.xlu0 %v5930_v5  ;;  %v2965_v5 = vrot.slane %v2937_v38, %v11160_v60  ;;  %v3034_v22 = vcombine.high %v3026_v13, %v3026_v13  ;;  %v4415_v35 = vrot.slane %v4393_v58, %v11160_v60 }
 0x55b   : > { %v4391_v63 = vcombine.low %v2846_v49, %v2860_v0  ;;  %v9623_v7 = vcombine.high %v2846_v49, %v2860_v0  ;;  %v4422_v20 = vrot.slane %v9624_v25, %v11160_v60 }
 0x55c   : > { %v4491_v26 = vcombine.low %v2951_v55, %v2965_v5  ;;  %v9628_v56 = vcombine.high %v2951_v55, %v2965_v5  ;;  %v3056_v31 = vrot.slane %v3034_v22, %v11160_v60 }
 0x55d   : > { %v4401_v41 = vrot.slane %v4391_v63, %v11160_v60  ;;  %v4408_v29 = vrot.slane %v9623_v7, %v11160_v60  ;;  %v4424_v11 = vcombine.low %v4415_v35, %v4422_v20 }
 0x55e   : > { %5886 = vadd.xlane.f32.xlu1 %v5885_v4  ;;  %5934 = vadd.xlane.f32.xlu0 %v5933_v44  ;;  %v2958_v4 = vrot.slane %v2936_v18, %v11160_v60  ;;  %v2944_v44 = vrot.slane %v2928_v2, %v11160_v60  ;;  %v4513_v0 = vrot.slane %v4491_v26, %v11160_v60 }
 0x55f   : > { %v4520_v18 = vrot.slane %v9628_v56, %v11160_v60  ;;  %v4587_v36 = vcombine.low %v3042_v39, %v3056_v31  ;;  %v9631_v49 = vcombine.high %v3042_v39, %v3056_v31  ;;  %v4423_v25 = vcombine.low %v4401_v41, %v4408_v29 }
 0x560   : > { %v4489_v43 = vcombine.low %v2944_v44, %v2958_v4  ;;  %v4438_v5 = vrot.slane %v4424_v11, %v11160_v60 }
 0x561   : > { %v4522_v22 = vcombine.low %v4513_v0, %v4520_v18  ;;  %v4597_v7 = vrot.slane %v4587_v36, %v11160_v60  ;;  %v4604_v55 = vrot.slane %v9631_v49, %v11160_v60 }
 0x562   : > { %5880 = vadd.xlane.f32.xlu0 %v5879_v6  ;;  %v3049_v6 = vrot.slane %v3033_v24, %v11160_v60  ;;  %v4499_v24 = vrot.slane %v4489_v43, %v11160_v60  ;;  %v13967_v43 = vlaneseq }
 0x563   : > { %v4536_v26 = vrot.slane %v4522_v22, %v11160_v60  ;;  %v4619_v20 = vcombine.low %v4597_v7, %v4604_v55 }
 0x564   : > { %v4589_v38 = vcombine.low %v3049_v6, %v3063_v3  ;;  %v9632_v2 = vcombine.high %v3049_v6, %v3063_v3 }
 0x565   : > { %v4627_v41 = vrot.slane %v4619_v20, %v11160_v60 }
 0x566   : > { %5928 = vadd.xlane.f32.xlu0 %v5927_v33  ;;  %v9627_v33 = vcombine.high %v2944_v44, %v2958_v4  ;;  %v4611_v63 = vrot.slane %v4589_v38, %v11160_v60  ;;  %v4618_v13 = vrot.slane %v9632_v2, %v11160_v60  ;;  %v4431_v4 = vrot.slane %v4423_v25, %v11160_v60  ;;  %v13968_v38 = vld [vmem:[#allocation5_spill] sm:$0xff] }
 0x568   : > { %v4506_v58 = vrot.slane %v9627_v33, %v11160_v60  ;;  %v4439_v44 = vcombine.low %v4431_v4, %v4438_v5  ;;  %v4620_v56 = vcombine.low %v4611_v63, %v4618_v13  ;;  %v12462_v33 = vand.u32 127, %v13967_v43 }
 0x56a   : > { %v4521_v3 = vcombine.low %v4499_v24, %v4506_v58  ;;  %v4634_v31 = vrot.slane %v4620_v56, %v11160_v60  ;;  %v4738_v39 = vadd.s32 4294967288, %v12462_v33  ;;  %v4745_v11 = vadd.s32 4294967280, %v12462_v33 }
 0x56b   : > { %v12471_v0 = vsub.s32 %v12462_v33, %v13968_v38  ;;  %v4752_v18 = vadd.s32 4294967272, %v12462_v33  ;;  %v4759_v36 = vadd.s32 4294967264, %v12462_v33  ;;  %v4766_v24 = vadd.s32 4294967256, %v12462_v33 }
 0x56c   : > { %v4529_v35 = vrot.slane %v4521_v3, %v11160_v60  ;;  %v4635_v29 = vcombine.low %v4627_v41, %v4634_v31  ;;  %v12466_v2 = vsub.s32 %v4738_v39, %v13968_v38  ;;  %v12479_v58 = vsub.s32 %v4745_v11, %v13968_v38 }
 0x56d   : > { %13970 = vst [vmem:[#allocation52_spill] sm:$0xff] %v12471_v0  ;;  %v4737_v25 = vrot.slane %v12329_v32, %v12471_v0  ;;  %v12484_v5 = vsub.s32 %v4752_v18, %v13968_v38  ;;  %v12487_v22 = vsub.s32 %v4759_v36, %v13968_v38  ;;  %v4773_v7 = vadd.s32 4294967248, %v12462_v33 }
 0x56e   : > { %v4537_v6 = vcombine.low %v4529_v35, %v4536_v26  ;;  %13969 = vst [vmem:[#allocation53_spill] sm:$0xff] %v12466_v2  ;;  %v4742_v49 = vrot.slane %v12324_v46, %v12466_v2  ;;  %13971 = vst [vmem:[#allocation55_spill] sm:$0xff] %v12479_v58  ;;  %v12491_v46 = vsub.s32 %v4766_v24, %v13968_v38  ;;  %v4780_v26 = vadd.s32 4294967240, %v12462_v33 }
 0x56f   : > { %13972 = vst [vmem:[#allocation54_spill] sm:$0xff] %v12484_v5  ;;  %13973 = vst [vmem:[#allocation36_spill] sm:$0xff] %v12487_v22  ;;  %v4749_v13 = vrot.slane %v12288_v15, %v12479_v58  ;;  %v4756_v32 = vrot.slane %v12335_v27, %v12484_v5  ;;  %v4850_v4 = vrot.slane %v12344_v1, %v12466_v2  ;;  %v4794_v56 = vadd.s32 4294967224, %v12462_v33 }
 0x570   : > { %v4744_v63 = vsel %vm4743_vm2, %v4742_v49, %v4737_v25  ;;  %13974 = vst [vmem:[#allocation25_spill] sm:$0xff] %v12491_v46  ;;  %v4763_v3 = vrot.slane %v12346_v30, %v12487_v22  ;;  %v4770_v15 = vrot.slane %v12356_v10, %v12491_v46  ;;  %v4846_v27 = vrot.slane %v12315_v23, %v12471_v0 }
 0x571   : > { %v4751_v55 = vsel %vm4750_vm3, %v4749_v13, %v4744_v63  ;;  %v12511_v35 = vsub.s32 %v4773_v7, %v13968_v38  ;;  %v4855_v30 = vrot.slane %v12304_v42, %v12479_v58  ;;  %v12522_v31 = vsub.s32 %v4780_v26, %v13968_v38 }
 0x572   : > { %v4758_v1 = vsel %vm4757_vm4, %v4756_v32, %v4751_v55  ;;  %v4851_v20 = vsel %vm4743_vm2, %v4850_v4, %v4846_v27  ;;  %v12526_v41 = vsub.s32 %v4794_v56, %v13968_v38  ;;  %v4860_v39 = vrot.slane %v12340_v28, %v12484_v5 }
 0x573   : > { %13975 = vst [vmem:[#allocation56_spill] sm:$0xff] %v12511_v35  ;;  %13977 = vst [vmem:[#allocation42_spill] sm:$0xff] %v12522_v31  ;;  %v4777_v42 = vrot.slane %v12337_v9, %v12511_v35  ;;  %v4856_v11 = vsel %vm4750_vm3, %v4855_v30, %v4851_v20  ;;  %v4865_v18 = vrot.slane %v12350_v37, %v12487_v22  ;;  %v4808_v36 = vadd.s32 4294967208, %v12462_v33 }
 0x574   : > { %13978 = vst [vmem:[#allocation43_spill] sm:$0xff] %v12526_v41  ;;  %v4870_v24 = vrot.slane %v12360_v17, %v12491_v46  ;;  %v4784_v25 = vrot.slane %v12348_v53, %v12522_v31  ;;  %v4798_v28 = vrot.slane %v12368_v48, %v12526_v41  ;;  %v4815_v37 = vadd.s32 4294967200, %v12462_v33 }
 0x575   : > { %v4861_v63 = vsel %vm4757_vm4, %v4860_v39, %v4856_v11  ;;  %v4822_v17 = vadd.s32 4294967192, %v12462_v33  ;;  %v12556_v32 = vsub.s32 %v4808_v36, %v13968_v38  ;;  %v4875_v55 = vrot.slane %v12342_v52, %v12511_v35  ;;  %v13982_v39 = vld [vmem:[#allocation15_spill] sm:$0xff] }
 0x576   : > { %v4866_v7 = vsel %vm4764_vm5, %v4865_v18, %v4861_v63  ;;  %v4829_v52 = vadd.s32 4294967184, %v12462_v33  ;;  %v4880_v30 = vrot.slane %v12352_v50, %v12522_v31 }
 0x577   : > { %v4871_v53 = vsel %vm4771_vm6, %v4870_v24, %v4866_v7 }
 0x578   : > { %v4876_v56 = vsel %vm4778_vm7, %v4875_v55, %v4871_v53  ;;  %v12593_v18 = vsub.s32 %v4829_v52, %v13968_v38 }
 0x57a   : > { %13983 = vst [vmem:[#allocation49_spill] sm:$0xff] %v12593_v18 }
 0x57c   : > { %4718 = vperm.xlu0 %9781, %v4439_v44   ;;  %v4787_v44 = vadd.s32 4294967232, %v12462_v33 }
 0x57e   : > { %v12519_v10 = vsub.s32 %v4787_v44, %v13968_v38  ;;  %v12565_v44 = vstv %s9633_s25 }
 0x580   : > { %4724 = vperm.xlu0 %9781, %v4537_v6   ;;  %v4765_v6 = vsel %vm4764_vm5, %v4763_v3, %v4758_v1  ;;  %13976 = vst [vmem:[#allocation41_spill] sm:$0xff] %v12519_v10  ;;  %v4791_v9 = vrot.slane %v12362_v59, %v12519_v10  ;;  %v12563_v3 = vsub.s32 %v4815_v37, %v13968_v38 }
 0x581   : > { %v4772_v23 = vsel %vm4771_vm6, %v4770_v15, %v4765_v6  ;;  %v12570_v15 = vsub.s32 %v4822_v17, %v13968_v38  ;;  %v4885_v27 = vrot.slane %v12366_v19, %v12519_v10  ;;  %v13985_v17 = vld [vmem:[#allocation18_spill] sm:$0xff] }
 0x582   : > { %v4779_v49 = vsel %vm4778_vm7, %v4777_v42, %v4772_v23  ;;  %13980 = vst [vmem:[#allocation47_spill] sm:$0xff] %v12563_v3  ;;  %v4812_v23 = vrot.slane %v12364_v21, %v12556_v32  ;;  %v4836_v42 = vadd.s32 4294967176, %v12462_v33  ;;  %v4819_v19 = vrot.slane %v12378_v8, %v12563_v3 }
 0x583   : > { %v4786_v59 = vsel %vm4785_vm8, %v4784_v25, %v4779_v49  ;;  %13981 = vst [vmem:[#allocation44_spill] sm:$0xff] %v12570_v15  ;;  %v4826_v50 = vrot.slane %v12382_v14, %v12570_v15 }
 0x584   : > { %4730 = vperm.xlu0 %9781, %v4635_v29   ;;  %v4801_v29 = vadd.s32 4294967216, %v12462_v33  ;;  %v4793_v48 = vsel %vm4792_vm9, %v4791_v9, %v4786_v59  ;;  %v12602_v9 = vsub.s32 %v4836_v42, %v13968_v38  ;;  %v4833_v59 = vrot.slane %v12370_v12, %v12593_v18 }
 0x585   : > { %v4800_v4 = vsel %vm4799_vm10, %v4798_v28, %v4793_v48 }
 0x586   : > { %v12549_v13 = vsub.s32 %v4801_v29, %v13968_v38  ;;  %v4881_v29 = vsel %vm4785_vm8, %v4880_v30, %v4876_v56  ;;  %13984 = vst [vmem:[#allocation46_spill] sm:$0xff] %v12602_v9  ;;  %v4840_v12 = vrot.slane %v12376_v16, %v12602_v9 }
 0x588   : > { %13979 = vst [vmem:[#allocation37_spill] sm:$0xff] %v12549_v13  ;;  %v4805_v26 = vrot.slane %v12354_v57, %v12549_v13  ;;  %v4890_v57 = vrot.slane %v12372_v34, %v12526_v41  ;;  %v4886_v34 = vsel %vm4792_vm9, %v4885_v27, %v4881_v29  ;;  %v4895_v14 = vrot.slane %v12358_v61, %v12549_v13  ;;  %v13993_v29 = vld [vmem:[#allocation22_spill] sm:$0xff] }
 0x58a   : > { %v4807_v20 = vsel %vm4806_vm11, %v4805_v26, %v4800_v4  ;;  %v4891_v36 = vsel %vm4799_vm10, %v4890_v57, %v4886_v34 }
 0x58b   : > { %v4814_v21 = vsel %vm4813_vm12, %v4812_v23, %v4807_v20  ;;  %v12611_v48 = vsel %vm4806_vm11, %v4895_v14, %v4891_v36  ;;  %v13987_v23 = vld [vmem:[#allocation7_spill] sm:$0xff] }
 0x58c   : > { %v4821_v25 = vsel %vm4820_vm13, %v4819_v19, %v4814_v21  ;;  %13986 = vst [vmem:[#allocation60_spill] sm:$0xff] %v12611_v48 }
 0x58d   : > { %v4828_v28 = vsel %vm4827_vm14, %v4826_v50, %v4821_v25 }
 0x58e   : > { %v4835_v26 = vsel %vm4834_vm15, %v4833_v59, %v4828_v28  ;;  %v13989_v59 = vld [vmem:[#allocation16_spill] sm:$0xff] }
 0x5a7   : > { %v5848_v1 = vpop.xlane.xlu0 %5847 }
 0x5a8   : > { %v5939_v6 = vadd.f32 %v12565_v44, %v5848_v1 }
 0x5aa   : > { %v5971_v11 = vsub.f32 %v5939_v6, %v13982_v39  ;;  %v12630_v39 = vsel %vm4841_vm0, %v4840_v12, %v4835_v26 }
 0x5ab   : > { %v5896_v33 = vpop.xlane.xlu1 %5895  ;;  %13988 = vst [vmem:[#allocation88_spill] sm:$0xff] %v12630_v39 }
 0x5ac   : > { %v6131_v8 = vcombine.high %v5971_v11, %v5971_v11  ;;  %v6138_v49 = vrot.slane %v5971_v11, %v11160_v60  ;;  %v5955_v24 = vadd.f32 %v12565_v44, %v5896_v33 }
 0x5ae   : > { %v6145_v37 = vrot.slane %v6131_v8, %v11160_v60  ;;  %v6146_v63 = vcombine.high %v6138_v49, %v6138_v49  ;;  %v5987_v7 = vsub.f32 %v5955_v24, %v13985_v17  ;;  %v6154_v38 = vrot.slane %v6138_v49, %v11160_v60 }
 0x5af   : > { %v5842_v53 = vpop.xlane.xlu1 %5841 }
 0x5b0   : > { %v6147_v61 = vcombine.high %v6145_v37, %v6145_v37  ;;  %v6168_v55 = vrot.slane %v6146_v63, %v11160_v60  ;;  %v6915_v4 = vcombine.high %v5987_v7, %v5987_v7  ;;  %v6922_v56 = vrot.slane %v5987_v7, %v11160_v60 }
 0x5b1   : > { %v5937_v27 = vadd.f32 %v12565_v44, %v5842_v53  ;;  %v6161_v57 = vrot.slane %v6145_v37, %v11160_v60 }
 0x5b2   : > { %v6175_v52 = vrot.slane %v6147_v61, %v11160_v60  ;;  %v7699_v1 = vcombine.low %v6154_v38, %v6168_v55  ;;  %v6929_v30 = vrot.slane %v6915_v4, %v11160_v60  ;;  %v6930_v6 = vcombine.high %v6922_v56, %v6922_v56 }
 0x5b3   : > { %v5969_v42 = vsub.f32 %v5937_v27, %v13987_v23  ;;  %v5890_v19 = vpop.xlane.xlu1 %5889  ;;  %v9638_v50 = vcombine.high %v6154_v38, %v6168_v55  ;;  %v6938_v16 = vrot.slane %v6922_v56, %v11160_v60 }
 0x5b4   : > { %v7701_v11 = vcombine.low %v6161_v57, %v6175_v52  ;;  %v6931_v34 = vcombine.high %v6929_v30, %v6929_v30  ;;  %v6952_v21 = vrot.slane %v6930_v6, %v11160_v60  ;;  %v9639_v36 = vcombine.high %v6161_v57, %v6175_v52  ;;  %v13990_v6 = vld [vmem:[#allocation17_spill] sm:$0xff] }
 0x5b5   : > { %v6033_v33 = vcombine.high %v5969_v42, %v5969_v42  ;;  %v12634_v8 = vrot.slane %v7699_v1, %v11160_v60  ;;  %v6040_v49 = vrot.slane %v5969_v42, %v11160_v60  ;;  %v5953_v24 = vadd.f32 %v12565_v44, %v5890_v19 }
 0x5b6   : > { %v6945_v14 = vrot.slane %v6929_v30, %v11160_v60  ;;  %v6959_v25 = vrot.slane %v6931_v34, %v11160_v60  ;;  %v8483_v28 = vcombine.low %v6938_v16, %v6952_v21  ;;  %v9670_v17 = vcombine.high %v6938_v16, %v6952_v21 }
 0x5b7   : > { %v6047_v37 = vrot.slane %v6033_v33, %v11160_v60  ;;  %v5851_v63 = vpop.xlane.xlu0 %5850  ;;  %v6048_v7 = vcombine.high %v6040_v49, %v6040_v49  ;;  %v5985_v53 = vsub.f32 %v5953_v24, %v13989_v59  ;;  %v12644_v38 = vrot.slane %v9638_v50, %v11160_v60 }
 0x5b8   : > { %v5940_v61 = vadd.f32 %v12565_v44, %v5851_v63  ;;  %v12647_v55 = vrot.slane %v7701_v11, %v11160_v60  ;;  %v8485_v4 = vcombine.low %v6945_v14, %v6959_v25  ;;  %v6056_v26 = vrot.slane %v6040_v49, %v11160_v60 }
 0x5b9   : > { %v9671_v56 = vcombine.high %v6945_v14, %v6959_v25  ;;  %v6049_v27 = vcombine.high %v6047_v37, %v6047_v37  ;;  %v6070_v12 = vrot.slane %v6048_v7, %v11160_v60  ;;  %v6817_v52 = vcombine.high %v5985_v53, %v5985_v53 }
 0x5ba   : > { %v12652_v1 = vrot.slane %v9639_v36, %v11160_v60  ;;  %v12655_v30 = vrot.slane %v8483_v28, %v11160_v60  ;;  %v6824_v57 = vrot.slane %v5985_v53, %v11160_v60  ;;  %v5972_v23 = vsub.f32 %v5940_v61, %v13990_v6 }
 0x5bb   : > { %v12660_v42 = vrot.slane %v9670_v17, %v11160_v60  ;;  %v6077_v19 = vrot.slane %v6049_v27, %v11160_v60  ;;  %v7601_v50 = vcombine.low %v6056_v26, %v6070_v12  ;;  %v6831_v16 = vrot.slane %v6817_v52, %v11160_v60  ;;  %v5899_v7 = vpop.xlane.xlu0 %5898 }
 0x5bc   : > { %v6063_v11 = vrot.slane %v6047_v37, %v11160_v60  ;;  %v6832_v34 = vcombine.high %v6824_v57, %v6824_v57  ;;  %v6180_v21 = vcombine.high %v5972_v23, %v5972_v23  ;;  %v6187_v33 = vrot.slane %v5972_v23, %v11160_v60  ;;  %v5860_v37 = vpop.xlane.xlu1 %5859 }
 0x5bd   : > { %v12667_v36 = vrot.slane %v8485_v4, %v11160_v60  ;;  %v12670_v49 = vrot.slane %v9671_v56, %v11160_v60  ;;  %v9634_v24 = vcombine.high %v6056_v26, %v6070_v12  ;;  %v6840_v14 = vrot.slane %v6824_v57, %v11160_v60 }
 0x5be   : > { %v7603_v25 = vcombine.low %v6063_v11, %v6077_v19  ;;  %v6833_v28 = vcombine.high %v6831_v16, %v6831_v16  ;;  %v6854_v63 = vrot.slane %v6832_v34, %v11160_v60  ;;  %v6194_v17 = vrot.slane %v6180_v21, %v11160_v60 }
 0x5bf   : > { %v9635_v59 = vcombine.high %v6063_v11, %v6077_v19  ;;  %v12676_v53 = vrot.slane %v7601_v50, %v11160_v60  ;;  %v6847_v61 = vrot.slane %v6831_v16, %v11160_v60  ;;  %v6195_v4 = vcombine.high %v6187_v33, %v6187_v33  ;;  %v5845_v13 = vpop.xlane.xlu0 %5844 }
 0x5c0   : > { %v6861_v56 = vrot.slane %v6833_v28, %v11160_v60  ;;  %v8385_v26 = vcombine.low %v6840_v14, %v6854_v63  ;;  %v6196_v27 = vcombine.high %v6194_v17, %v6194_v17  ;;  %v6203_v12 = vrot.slane %v6187_v33, %v11160_v60 }
 0x5c1   : > { %v9666_v52 = vcombine.high %v6840_v14, %v6854_v63  ;;  %v6217_v57 = vrot.slane %v6195_v4, %v11160_v60  ;;  %v5943_v6 = vadd.f32 %v12565_v44, %v5860_v37  ;;  %v5956_v23 = vadd.f32 %v12565_v44, %v5899_v7  ;;  %v13991_v14 = vld [vmem:[#allocation9_spill] sm:$0xff] }
 0x5c2   : > { %v12685_v19 = vrot.slane %v9634_v24, %v11160_v60  ;;  %v12688_v50 = vrot.slane %v7603_v25, %v11160_v60  ;;  %v8387_v16 = vcombine.low %v6847_v61, %v6861_v56  ;;  %v9667_v11 = vcombine.high %v6847_v61, %v6861_v56  ;;  %v13992_v24 = vld [vmem:[#allocation33_spill] sm:$0xff] }
 0x5c3   : > { %v12691_v34 = vrot.slane %v9635_v59, %v11160_v60  ;;  %v6224_v21 = vrot.slane %v6196_v27, %v11160_v60  ;;  %v7748_v33 = vcombine.low %v6203_v12, %v6217_v57  ;;  %v5975_v28 = vsub.f32 %v5943_v6, %v13991_v14 }
 0x5c4   : > { %v12696_v63 = vrot.slane %v8385_v26, %v11160_v60  ;;  %v6210_v37 = vrot.slane %v6194_v17, %v11160_v60  ;;  %v5988_v7 = vsub.f32 %v5956_v23, %v13992_v24  ;;  %v7731_v25 = vcombine.low %v12634_v8, %v12644_v38  ;;  %v5908_v23 = vpop.xlane.xlu1 %5907 }
 0x5c5   : > { %v12703_v61 = vrot.slane %v9666_v52, %v11160_v60  ;;  %v12706_v59 = vrot.slane %v8387_v16, %v11160_v60  ;;  %v12709_v4 = vrot.slane %v9667_v11, %v11160_v60  ;;  %v9640_v56 = vcombine.high %v6203_v12, %v6217_v57 }
 0x5c6   : > { %v6327_v27 = vcombine.high %v5975_v28, %v5975_v28  ;;  %v6334_v26 = vrot.slane %v5975_v28, %v11160_v60  ;;  %v6964_v6 = vcombine.high %v5988_v7, %v5988_v7  ;;  %v6971_v17 = vrot.slane %v5988_v7, %v11160_v60 }
 0x5c7   : > { %v7750_v14 = vcombine.low %v6210_v37, %v6224_v21  ;;  %v9641_v24 = vcombine.high %v6210_v37, %v6224_v21  ;;  %v12714_v8 = vrot.slane %v7748_v33, %v11160_v60  ;;  %v7732_v38 = vcombine.low %v12647_v55, %v12652_v1 }
 0x5c8   : > { %v6341_v52 = vrot.slane %v6327_v27, %v11160_v60  ;;  %v6342_v16 = vcombine.high %v6334_v26, %v6334_v26  ;;  %v6978_v12 = vrot.slane %v6964_v6, %v11160_v60  ;;  %v7739_v57 = vrot.slane %v7731_v25, %v11160_v60 }
 0x5c9   : > { %v6350_v11 = vrot.slane %v6334_v26, %v11160_v60  ;;  %v6979_v28 = vcombine.high %v6971_v17, %v6971_v17  ;;  %v7746_v7 = vrot.slane %v7732_v38, %v11160_v60  ;;  %v5959_v21 = vadd.f32 %v12565_v44, %v5908_v23 }
 0x5ca   : > { %v6343_v37 = vcombine.high %v6341_v52, %v6341_v52  ;;  %v6364_v33 = vrot.slane %v6342_v16, %v11160_v60  ;;  %v6980_v20 = vcombine.high %v6978_v12, %v6978_v12  ;;  %v6987_v55 = vrot.slane %v6971_v17, %v11160_v60 }
 0x5cb   : > { %v6357_v1 = vrot.slane %v6341_v52, %v11160_v60  ;;  %v7001_v27 = vrot.slane %v6979_v28, %v11160_v60  ;;  %v7747_v6 = vcombine.low %v7739_v57, %v7746_v7  ;;  %v5991_v25 = vsub.f32 %v5959_v21, %v13993_v29 }
 0x5cc   : > { %v6371_v26 = vrot.slane %v6343_v37, %v11160_v60  ;;  %v7895_v41 = vcombine.low %v6350_v11, %v6364_v33  ;;  %v9646_v38 = vcombine.high %v6350_v11, %v6364_v33  ;;  %v7008_v23 = vrot.slane %v6980_v20, %v11160_v60 }
 0x5cd   : > { %v8532_v10 = vcombine.low %v6987_v55, %v7001_v27  ;;  %v9672_v31 = vcombine.high %v6987_v55, %v7001_v27  ;;  %9176 = vperm.xlu1 %9780, %v7747_v6   ;;  %v7111_v16 = vcombine.high %v5991_v25, %v5991_v25  ;;  %v7118_v17 = vrot.slane %v5991_v25, %v11160_v60 }
 0x5ce   : > { %v12733_v52 = vrot.slane %v9640_v56, %v11160_v60  ;;  %v12736_v57 = vrot.slane %v7750_v14, %v11160_v60  ;;  %v7897_v29 = vcombine.low %v6357_v1, %v6371_v26  ;;  %v6994_v28 = vrot.slane %v6978_v12, %v11160_v60  ;;  %v5854_v14 = vpop.xlane.xlu1 %5853 }
 0x5cf   : > { %v12740_v7 = vrot.slane %v9641_v24, %v11160_v60  ;;  %v9647_v11 = vcombine.high %v6357_v1, %v6371_v26  ;;  %v12743_v20 = vrot.slane %v7895_v41, %v11160_v60  ;;  %v12746_v21 = vrot.slane %v9646_v38, %v11160_v60  ;;  %v5893_v1 = vpop.xlane.xlu0 %5892 }
 0x5d0   : > { %v8534_v37 = vcombine.low %v6994_v28, %v7008_v23  ;;  %v9673_v33 = vcombine.high %v6994_v28, %v7008_v23  ;;  %v7125_v56 = vrot.slane %v7111_v16, %v11160_v60  ;;  %v7126_v55 = vcombine.high %v7118_v17, %v7118_v17  ;;  %v13994_v16 = vld [vmem:[#allocation13_spill] sm:$0xff] }
 0x5d1   : > { %v12750_v27 = vrot.slane %v7897_v29, %v11160_v60  ;;  %v12753_v12 = vrot.slane %v8532_v10, %v11160_v60  ;;  %v12756_v24 = vrot.slane %v9672_v31, %v11160_v60  ;;  %v5938_v41 = vadd.f32 %v12565_v44, %v5845_v13 }
 0x5d2   : > { %v7127_v6 = vcombine.high %v7125_v56, %v7125_v56  ;;  %v7134_v25 = vrot.slane %v7118_v17, %v11160_v60  ;;  %v7148_v26 = vrot.slane %v7126_v55, %v11160_v60  ;;  %v8515_v38 = vcombine.low %v12655_v30, %v12660_v42  ;;  %v13995_v42 = vld [vmem:[#allocation8_spill] sm:$0xff] }
 0x5d3   : > { %v7141_v23 = vrot.slane %v7125_v56, %v11160_v60  ;;  %v5970_v29 = vsub.f32 %v5938_v41, %v13994_v16  ;;  %v8516_v10 = vcombine.low %v12667_v36, %v12670_v49  ;;  %v5941_v31 = vadd.f32 %v12565_v44, %v5854_v14 }
 0x5d4   : > { %v7155_v13 = vrot.slane %v7127_v6, %v11160_v60  ;;  %v8679_v28 = vcombine.low %v7134_v25, %v7148_v26  ;;  %v8523_v35 = vrot.slane %v8515_v38, %v11160_v60  ;;  %v5954_v17 = vadd.f32 %v12565_v44, %v5893_v1 }
 0x5d5   : > { %v6082_v55 = vcombine.high %v5970_v29, %v5970_v29  ;;  %v6089_v46 = vrot.slane %v5970_v29, %v11160_v60  ;;  %v8530_v30 = vrot.slane %v8516_v10, %v11160_v60  ;;  %v5973_v56 = vsub.f32 %v5941_v31, %v13995_v42 }
 0x5d6   : > { %v12775_v41 = vrot.slane %v9647_v11, %v11160_v60  ;;  %v12778_v36 = vrot.slane %v8534_v37, %v11160_v60  ;;  %v12781_v49 = vrot.slane %v9673_v33, %v11160_v60  ;;  %v9678_v14 = vcombine.high %v7134_v25, %v7148_v26  ;;  %v13996_v33 = vld [vmem:[#allocation32_spill] sm:$0xff] }
 0x5d7   : > { %v8681_v6 = vcombine.low %v7141_v23, %v7155_v13  ;;  %v6096_v1 = vrot.slane %v6082_v55, %v11160_v60  ;;  %v6097_v38 = vcombine.high %v6089_v46, %v6089_v46  ;;  %v8531_v16 = vcombine.low %v8523_v35, %v8530_v30 }
 0x5d8   : > { %v9679_v29 = vcombine.high %v7141_v23, %v7155_v13  ;;  %v12785_v10 = vrot.slane %v8679_v28, %v11160_v60  ;;  %v6229_v31 = vcombine.high %v5973_v56, %v5973_v56  ;;  %v6236_v11 = vrot.slane %v5973_v56, %v11160_v60 }
 0x5d9   : > { %v6098_v42 = vcombine.high %v6096_v1, %v6096_v1  ;;  %v6105_v37 = vrot.slane %v6089_v46, %v11160_v60  ;;  %v6119_v22 = vrot.slane %v6097_v38, %v11160_v60  ;;  %9224 = vperm.xlu1 %9780, %v8531_v16   ;;  %v5986_v25 = vsub.f32 %v5954_v17, %v13996_v33 }
 0x5da   : > { %v12792_v26 = vrot.slane %v9678_v14, %v11160_v60  ;;  %v6112_v35 = vrot.slane %v6096_v1, %v11160_v60  ;;  %v6243_v23 = vrot.slane %v6229_v31, %v11160_v60  ;;  %v6244_v13 = vcombine.high %v6236_v11, %v6236_v11 }
 0x5db   : > { %v6126_v28 = vrot.slane %v6098_v42, %v11160_v60  ;;  %v7650_v55 = vcombine.low %v6105_v37, %v6119_v22  ;;  %v6252_v30 = vrot.slane %v6236_v11, %v11160_v60  ;;  %v6866_v56 = vcombine.high %v5986_v25, %v5986_v25 }
 0x5dc   : > { %v9636_v46 = vcombine.high %v6105_v37, %v6119_v22  ;;  %v6245_v5 = vcombine.high %v6243_v23, %v6243_v23  ;;  %v6266_v38 = vrot.slane %v6244_v13, %v11160_v60  ;;  %v6873_v17 = vrot.slane %v5986_v25, %v11160_v60  ;;  %v5902_v13 = vpop.xlane.xlu1 %5901 }
 0x5dd   : > { %v12801_v14 = vrot.slane %v8681_v6, %v11160_v60  ;;  %v7652_v16 = vcombine.low %v6112_v35, %v6126_v28  ;;  %v9637_v1 = vcombine.high %v6112_v35, %v6126_v28  ;;  %v6259_v31 = vrot.slane %v6243_v23, %v11160_v60 }
 0x5de   : > { %v6273_v33 = vrot.slane %v6245_v5, %v11160_v60  ;;  %v7797_v42 = vcombine.low %v6252_v30, %v6266_v38  ;;  %v9642_v58 = vcombine.high %v6252_v30, %v6266_v38  ;;  %v6880_v11 = vrot.slane %v6866_v56, %v11160_v60  ;;  %v5863_v38 = vpop.xlane.xlu0 %5862 }
 0x5df   : > { %v12807_v22 = vrot.slane %v9679_v29, %v11160_v60  ;;  %v12810_v37 = vrot.slane %v7650_v55, %v11160_v60  ;;  %v6881_v25 = vcombine.high %v6873_v17, %v6873_v17  ;;  %v7633_v6 = vcombine.low %v12676_v53, %v12685_v19 }
 0x5e0   : > { %v12815_v35 = vrot.slane %v9636_v46, %v11160_v60  ;;  %v12818_v5 = vrot.slane %v7652_v16, %v11160_v60  ;;  %v7799_v23 = vcombine.low %v6259_v31, %v6273_v33  ;;  %v6889_v28 = vrot.slane %v6873_v17, %v11160_v60  ;;  %v5872_v43 = vpop.xlane.xlu1 %5871 }
 0x5e1   : > { %v9643_v30 = vcombine.high %v6259_v31, %v6273_v33  ;;  %v6882_v29 = vcombine.high %v6880_v11, %v6880_v11  ;;  %v6903_v56 = vrot.slane %v6881_v25, %v11160_v60  ;;  %v7634_v55 = vcombine.low %v12688_v50, %v12691_v34  ;;  %v13997_v50 = vld [vmem:[#allocation20_spill] sm:$0xff] }
 0x5e2   : > { %v12825_v53 = vrot.slane %v9637_v1, %v11160_v60  ;;  %v12828_v19 = vrot.slane %v7797_v42, %v11160_v60  ;;  %v12831_v46 = vrot.slane %v9642_v58, %v11160_v60  ;;  %v5957_v16 = vadd.f32 %v12565_v44, %v5902_v13 }
 0x5e3   : > { %v6910_v17 = vrot.slane %v6882_v29, %v11160_v60  ;;  %v8434_v31 = vcombine.low %v6889_v28, %v6903_v56  ;;  %v7641_v33 = vrot.slane %v7633_v6, %v11160_v60  ;;  %v7648_v25 = vrot.slane %v7634_v55, %v11160_v60 }
 0x5e4   : > { %v5989_v34 = vsub.f32 %v5957_v16, %v13997_v50  ;;  %v5944_v1 = vadd.f32 %v12565_v44, %v5863_v38  ;;  %v8417_v42 = vcombine.low %v12696_v63, %v12703_v61  ;;  %v8418_v58 = vcombine.low %v12706_v59, %v12709_v4  ;;  %v13998_v38 = vld [vmem:[#allocation21_spill] sm:$0xff] }
 0x5e5   : > { %v12844_v0 = vrot.slane %v7799_v23, %v11160_v60  ;;  %v12847_v13 = vrot.slane %v9643_v30, %v11160_v60  ;;  %v6896_v6 = vrot.slane %v6880_v11, %v11160_v60  ;;  %v9668_v29 = vcombine.high %v6889_v28, %v6903_v56  ;;  %v5911_v23 = vpop.xlane.xlu0 %5910 }
 0x5e6   : > { %v7649_v55 = vcombine.low %v7641_v33, %v7648_v25  ;;  %v7013_v2 = vcombine.high %v5989_v34, %v5989_v34  ;;  %v7020_v16 = vrot.slane %v5989_v34, %v11160_v60  ;;  %v5976_v50 = vsub.f32 %v5944_v1, %v13998_v38  ;;  %v13999_v38 = vld [vmem:[#allocation11_spill] sm:$0xff] }
 0x5e7   : > { %v8436_v63 = vcombine.low %v6896_v6, %v6910_v17  ;;  %v9669_v61 = vcombine.high %v6896_v6, %v6910_v17  ;;  %v8425_v59 = vrot.slane %v8417_v42, %v11160_v60  ;;  %v8432_v4 = vrot.slane %v8418_v58, %v11160_v60 }
 0x5e8   : > { %v12855_v30 = vrot.slane %v8434_v31, %v11160_v60  ;;  %9170 = vperm.xlu1 %9780, %v7649_v55   ;;  %v7027_v11 = vrot.slane %v7013_v2, %v11160_v60  ;;  %v7028_v28 = vcombine.high %v7020_v16, %v7020_v16  ;;  %v6376_v56 = vcombine.high %v5976_v50, %v5976_v50 }
 0x5e9   : > { %v7036_v33 = vrot.slane %v7020_v16, %v11160_v60  ;;  %v6383_v25 = vrot.slane %v5976_v50, %v11160_v60  ;;  %v8433_v34 = vcombine.low %v8425_v59, %v8432_v4  ;;  %v5947_v17 = vadd.f32 %v12565_v44, %v5872_v43 }
 0x5ea   : > { %v7029_v1 = vcombine.high %v7027_v11, %v7027_v11  ;;  %v7050_v42 = vrot.slane %v7028_v28, %v11160_v60  ;;  %v6390_v58 = vrot.slane %v6376_v56, %v11160_v60  ;;  %v5960_v31 = vadd.f32 %v12565_v44, %v5911_v23 }
 0x5eb   : > { %v12865_v6 = vrot.slane %v9668_v29, %v11160_v60  ;;  %v7043_v2 = vrot.slane %v7027_v11, %v11160_v60  ;;  %v6391_v55 = vcombine.high %v6383_v25, %v6383_v25  ;;  %v5979_v16 = vsub.f32 %v5947_v17, %v13999_v38 }
 0x5ec   : > { %v7057_v50 = vrot.slane %v7029_v1, %v11160_v60  ;;  %v8581_v59 = vcombine.low %v7036_v33, %v7050_v42  ;;  %v9674_v4 = vcombine.high %v7036_v33, %v7050_v42  ;;  %v6392_v43 = vcombine.high %v6390_v58, %v6390_v58  ;;  %9218 = vperm.xlu1 %9780, %v8433_v34  }
 0x5ed   : > { %v6399_v28 = vrot.slane %v6383_v25, %v11160_v60  ;;  %v6413_v56 = vrot.slane %v6391_v55, %v11160_v60  ;;  %v6523_v39 = vcombine.high %v5979_v16, %v5979_v16  ;;  %v6530_v23 = vrot.slane %v5979_v16, %v11160_v60 }
 0x5ee   : > { %v12874_v29 = vrot.slane %v8436_v63, %v11160_v60  ;;  %v8583_v11 = vcombine.low %v7043_v2, %v7057_v50  ;;  %v9675_v18 = vcombine.high %v7043_v2, %v7057_v50  ;;  %v5992_v17 = vsub.f32 %v5960_v31, %v14000_v47 }
 0x5ef   : > { %v12878_v1 = vrot.slane %v9669_v61, %v11160_v60  ;;  %v6420_v33 = vrot.slane %v6392_v43, %v11160_v60  ;;  %v7944_v34 = vcombine.low %v6399_v28, %v6413_v56  ;;  %v6537_v25 = vrot.slane %v6523_v39, %v11160_v60 }
 0x5f0   : > { %v12883_v42 = vrot.slane %v8581_v59, %v11160_v60  ;;  %v12886_v55 = vrot.slane %v9674_v4, %v11160_v60  ;;  %v6406_v63 = vrot.slane %v6390_v58, %v11160_v60  ;;  %v6538_v38 = vcombine.high %v6530_v23, %v6530_v23 }
 0x5f1   : > { %v12890_v2 = vrot.slane %v8583_v11, %v11160_v60  ;;  %v12893_v47 = vrot.slane %v9675_v18, %v11160_v60  ;;  %v9648_v61 = vcombine.high %v6399_v28, %v6413_v56  ;;  %v6546_v31 = vrot.slane %v6530_v23, %v11160_v60 }
 0x5f2   : > { %v7946_v16 = vcombine.low %v6406_v63, %v6420_v33  ;;  %v6539_v39 = vcombine.high %v6537_v25, %v6537_v25  ;;  %v6560_v50 = vrot.slane %v6538_v38, %v11160_v60  ;;  %v7160_v59 = vcombine.high %v5992_v17, %v5992_v17 }
 0x5f3   : > { %v9649_v43 = vcombine.high %v6406_v63, %v6420_v33  ;;  %v12898_v4 = vrot.slane %v7944_v34, %v11160_v60  ;;  %v7167_v58 = vrot.slane %v5992_v17, %v11160_v60  ;;  %v7780_v11 = vcombine.low %v12714_v8, %v12733_v52  ;;  %v5920_v63 = vpop.xlane.xlu1 %5919  ;;  %v5857_v17 = vpop.xlane.xlu0 %5856 }
 0x5f4   : > { %v6553_v18 = vrot.slane %v6537_v25, %v11160_v60  ;;  %v6567_v28 = vrot.slane %v6539_v39, %v11160_v60  ;;  %v8091_v56 = vcombine.low %v6546_v31, %v6560_v50  ;;  %v7174_v23 = vrot.slane %v7160_v59, %v11160_v60 }
 0x5f5   : > { %v12907_v9 = vrot.slane %v9648_v61, %v11160_v60  ;;  %v9654_v38 = vcombine.high %v6546_v31, %v6560_v50  ;;  %v7175_v33 = vcombine.high %v7167_v58, %v7167_v58  ;;  %v7781_v34 = vcombine.low %v12736_v57, %v12740_v7 }
 0x5f6   : > { %v12912_v3 = vrot.slane %v7946_v16, %v11160_v60  ;;  %v8093_v8 = vcombine.low %v6553_v18, %v6567_v28  ;;  %v7183_v52 = vrot.slane %v7167_v58, %v11160_v60  ;;  %v7788_v25 = vrot.slane %v7780_v11, %v11160_v60 }
 0x5f7   : > { %v9655_v39 = vcombine.high %v6553_v18, %v6567_v28  ;;  %v7176_v59 = vcombine.high %v7174_v23, %v7174_v23  ;;  %v7197_v61 = vrot.slane %v7175_v33, %v11160_v60  ;;  %v7795_v31 = vrot.slane %v7781_v34, %v11160_v60  ;;  %v14001_v33 = vld [vmem:[#allocation27_spill] sm:$0xff] }
 0x5f8   : > { %v12919_v50 = vrot.slane %v9649_v43, %v11160_v60  ;;  %v12922_v57 = vrot.slane %v8091_v56, %v11160_v60  ;;  %v5963_v7 = vadd.f32 %v12565_v44, %v5920_v63  ;;  %v5942_v16 = vadd.f32 %v12565_v44, %v5857_v17  ;;  %v14002_v34 = vld [vmem:[#allocation19_spill] sm:$0xff] }
 0x5f9   : > { %v12927_v58 = vrot.slane %v9654_v38, %v11160_v60  ;;  %v7204_v11 = vrot.slane %v7176_v59, %v11160_v60  ;;  %v8728_v18 = vcombine.low %v7183_v52, %v7197_v61  ;;  %v7796_v28 = vcombine.low %v7788_v25, %v7795_v31 }
 0x5fa   : > { %v5995_v62 = vsub.f32 %v5963_v7, %v14001_v33  ;;  %v5974_v15 = vsub.f32 %v5942_v16, %v14002_v34  ;;  %v7927_v43 = vcombine.low %v12743_v20, %v12746_v21  ;;  %v7928_v56 = vcombine.low %v12750_v27, %v12775_v41 }
 0x5fb   : > { %v12937_v63 = vrot.slane %v8093_v8, %v11160_v60  ;;  %v12940_v38 = vrot.slane %v9655_v39, %v11160_v60  ;;  %v7190_v17 = vrot.slane %v7174_v23, %v11160_v60  ;;  %v9680_v59 = vcombine.high %v7183_v52, %v7197_v61  ;;  %9179 = vperm.xlu1 %9780, %v7796_v28  }
 0x5fc   : > { %v7307_v25 = vcombine.high %v5995_v62, %v5995_v62  ;;  %v7314_v31 = vrot.slane %v5995_v62, %v11160_v60  ;;  %v6278_v7 = vcombine.high %v5974_v15, %v5974_v15  ;;  %v6285_v16 = vrot.slane %v5974_v15, %v11160_v60 }
 0x5fd   : > { %v8730_v20 = vcombine.low %v7190_v17, %v7204_v11  ;;  %v9681_v21 = vcombine.high %v7190_v17, %v7204_v11  ;;  %v7935_v27 = vrot.slane %v7927_v43, %v11160_v60  ;;  %v7942_v41 = vrot.slane %v7928_v56, %v11160_v60  ;;  %v5866_v43 = vpop.xlane.xlu1 %5865 }
 0x5fe   : > { %v12948_v8 = vrot.slane %v8728_v18, %v11160_v60  ;;  %v7321_v39 = vrot.slane %v7307_v25, %v11160_v60  ;;  %v7322_v23 = vcombine.high %v7314_v31, %v7314_v31  ;;  %v6292_v52 = vrot.slane %v6278_v7, %v11160_v60 }
 0x5ff   : > { %v12953_v61 = vrot.slane %v9680_v59, %v11160_v60  ;;  %v7330_v62 = vrot.slane %v7314_v31, %v11160_v60  ;;  %v6293_v15 = vcombine.high %v6285_v16, %v6285_v16  ;;  %v7943_v28 = vcombine.low %v7935_v27, %v7942_v41 }
 0x600   : > { %v7323_v11 = vcombine.high %v7321_v39, %v7321_v39  ;;  %v7344_v33 = vrot.slane %v7322_v23, %v11160_v60  ;;  %v6294_v34 = vcombine.high %v6292_v52, %v6292_v52  ;;  %v8564_v18 = vcombine.low %v12753_v12, %v12756_v24 }
 0x601   : > { %v12960_v56 = vrot.slane %v7321_v39, %v11160_v60  ;;  %v6301_v17 = vrot.slane %v6285_v16, %v11160_v60  ;;  %v6315_v59 = vrot.slane %v6293_v15, %v11160_v60  ;;  %9188 = vperm.xlu1 %9780, %v7943_v28   ;;  %v8565_v25 = vcombine.low %v12778_v36, %v12781_v49 }
 0x602   : > { %v12967_v31 = vrot.slane %v7323_v11, %v11160_v60  ;;  %v8875_v7 = vcombine.low %v7330_v62, %v7344_v33  ;;  %v9686_v27 = vcombine.high %v7330_v62, %v7344_v33  ;;  %v12970_v41 = vrot.slane %v6294_v34, %v11160_v60  ;;  %v5905_v62 = vpop.xlane.xlu0 %5904 }
 0x603   : > { %v7846_v12 = vcombine.low %v6301_v17, %v6315_v59  ;;  %v9644_v24 = vcombine.high %v6301_v17, %v6315_v59  ;;  %v8579_v39 = vrot.slane %v8565_v25, %v11160_v60  ;;  %v5945_v16 = vadd.f32 %v12565_v44, %v5866_v43  ;;  %v14003_v43 = vld [vmem:[#allocation10_spill] sm:$0xff] }
 0x604   : > { %v12975_v23 = vrot.slane %v8730_v20, %v11160_v60  ;;  %v12978_v15 = vrot.slane %v9681_v21, %v11160_v60  ;;  %v6308_v36 = vrot.slane %v6292_v52, %v11160_v60  ;;  %v8572_v49 = vrot.slane %v8564_v18, %v11160_v60 }
 0x605   : > { %v8877_v28 = vcombine.low %v12960_v56, %v12967_v31  ;;  %v9687_v11 = vcombine.high %v12960_v56, %v12967_v31  ;;  %v12987_v33 = vrot.slane %v8875_v7, %v11160_v60  ;;  %v12990_v20 = vrot.slane %v9686_v27, %v11160_v60  ;;  %v5914_v31 = vpop.xlane.xlu1 %5913 }
 0x606   : > { %v7848_v21 = vcombine.low %v6308_v36, %v12970_v41  ;;  %v9645_v34 = vcombine.high %v6308_v36, %v12970_v41  ;;  %v8580_v52 = vcombine.low %v8572_v49, %v8579_v39  ;;  %v5977_v18 = vsub.f32 %v5945_v16, %v14003_v43 }
 0x607   : > { %v12996_v17 = vrot.slane %v7846_v12, %v11160_v60  ;;  %v12999_v59 = vrot.slane %v9644_v24, %v11160_v60  ;;  %v5958_v56 = vadd.f32 %v12565_v44, %v5905_v62  ;;  %v8711_v25 = vcombine.low %v12785_v10, %v12792_v26  ;;  %v14004_v24 = vld [vmem:[#allocation34_spill] sm:$0xff] }
 0x608   : > { %9227 = vperm.xlu0 %9781, %v8580_v52   ;;  %v6425_v7 = vcombine.high %v5977_v18, %v5977_v18  ;;  %v6432_v27 = vrot.slane %v5977_v18, %v11160_v60  ;;  %v8712_v41 = vcombine.low %v12801_v14, %v12807_v22  ;;  %v7682_v12 = vcombine.low %v12810_v37, %v12815_v35 }
 0x609   : > { %v13010_v39 = vrot.slane %v8877_v28, %v11160_v60  ;;  %v5990_v16 = vsub.f32 %v5958_v56, %v14004_v24  ;;  %v8719_v36 = vrot.slane %v8711_v25, %v11160_v60  ;;  %v7683_v10 = vcombine.low %v12818_v5, %v12825_v53  ;;  %v5875_v53 = vpop.xlane.xlu0 %5874 }
 0x60a   : > { %v6439_v26 = vrot.slane %v6425_v7, %v11160_v60  ;;  %v6440_v49 = vcombine.high %v6432_v27, %v6432_v27  ;;  %v8726_v62 = vrot.slane %v8712_v41, %v11160_v60  ;;  %v5961_v14 = vadd.f32 %v12565_v44, %v5914_v31 }
 0x60b   : > { %v7062_v22 = vcombine.high %v5990_v16, %v5990_v16  ;;  %v7069_v37 = vrot.slane %v5990_v16, %v11160_v60  ;;  %v7690_v35 = vrot.slane %v7682_v12, %v11160_v60  ;;  %v7697_v28 = vrot.slane %v7683_v10, %v11160_v60  ;;  %v14005_v16 = vld [vmem:[#allocation24_spill] sm:$0xff] }
 0x60c   : > { %v6441_v52 = vcombine.high %v6439_v26, %v6439_v26  ;;  %v6448_v43 = vrot.slane %v6432_v27, %v11160_v60  ;;  %v6462_v18 = vrot.slane %v6440_v49, %v11160_v60  ;;  %v8727_v5 = vcombine.low %v8719_v36, %v8726_v62 }
 0x60d   : > { %v6455_v56 = vrot.slane %v6439_v26, %v11160_v60  ;;  %v7076_v25 = vrot.slane %v7062_v22, %v11160_v60  ;;  %v7077_v7 = vcombine.high %v7069_v37, %v7069_v37  ;;  %v7698_v31 = vcombine.low %v7690_v35, %v7697_v28 }
 0x60e   : > { %v6469_v41 = vrot.slane %v6441_v52, %v11160_v60  ;;  %v7993_v24 = vcombine.low %v6448_v43, %v6462_v18  ;;  %v7085_v12 = vrot.slane %v7069_v37, %v11160_v60  ;;  %9236 = vperm.xlu1 %9780, %v8727_v5   ;;  %v5993_v10 = vsub.f32 %v5961_v14, %v14005_v16  ;;  %v14006_v5 = vld [vmem:[#allocation26_spill] sm:$0xff] }
 0x60f   : > { %v9650_v48 = vcombine.high %v6448_v43, %v6462_v18  ;;  %v7078_v27 = vcombine.high %v7076_v25, %v7076_v25  ;;  %v7099_v49 = vrot.slane %v7077_v7, %v11160_v60  ;;  %9173 = vperm.xlu0 %9781, %v7698_v31   ;;  %v5948_v36 = vadd.f32 %v12565_v44, %v5875_v53 }
 0x610   : > { %v13032_v26 = vrot.slane %v9687_v11, %v11160_v60  ;;  %v13035_v62 = vrot.slane %v7848_v21, %v11160_v60  ;;  %v7995_v22 = vcombine.low %v6455_v56, %v6469_v41  ;;  %v9651_v35 = vcombine.high %v6455_v56, %v6469_v41 }
 0x611   : > { %v13038_v37 = vrot.slane %v9645_v34, %v11160_v60  ;;  %v7106_v14 = vrot.slane %v7078_v27, %v11160_v60  ;;  %v8630_v28 = vcombine.low %v7085_v12, %v7099_v49  ;;  %v7209_v52 = vcombine.high %v5993_v10, %v5993_v10 }
 0x612   : > { %v13042_v43 = vrot.slane %v7993_v24, %v11160_v60  ;;  %v7092_v18 = vrot.slane %v7076_v25, %v11160_v60  ;;  %v7216_v11 = vrot.slane %v5993_v10, %v11160_v60  ;;  %v5980_v53 = vsub.f32 %v5948_v36, %v14006_v5 }
 0x613   : > { %v13048_v21 = vrot.slane %v9650_v48, %v11160_v60  ;;  %v13051_v56 = vrot.slane %v7995_v22, %v11160_v60  ;;  %v13054_v34 = vrot.slane %v9651_v35, %v11160_v60  ;;  %v9676_v7 = vcombine.high %v7085_v12, %v7099_v49 }
 0x614   : > { %v8632_v31 = vcombine.low %v7092_v18, %v7106_v14  ;;  %v7223_v41 = vrot.slane %v7209_v52, %v11160_v60  ;;  %v7224_v24 = vcombine.high %v7216_v11, %v7216_v11  ;;  %v6572_v16 = vcombine.high %v5980_v53, %v5980_v53 }
 0x615   : > { %v9677_v25 = vcombine.high %v7092_v18, %v7106_v14  ;;  %v13058_v10 = vrot.slane %v8630_v28, %v11160_v60  ;;  %v6579_v27 = vrot.slane %v5980_v53, %v11160_v60  ;;  %v7829_v48 = vcombine.low %v12828_v19, %v12831_v46  ;;  %v5923_v53 = vpop.xlane.xlu0 %5922 }
 0x616   : > { %v7225_v36 = vcombine.high %v7223_v41, %v7223_v41  ;;  %v7232_v22 = vrot.slane %v7216_v11, %v11160_v60  ;;  %v7246_v35 = vrot.slane %v7224_v24, %v11160_v60  ;;  %v6586_v12 = vrot.slane %v6572_v16, %v11160_v60 }
 0x617   : > { %v13067_v49 = vrot.slane %v9676_v7, %v11160_v60  ;;  %v7239_v14 = vrot.slane %v7223_v41, %v11160_v60  ;;  %v6587_v52 = vcombine.high %v6579_v27, %v6579_v27  ;;  %v7830_v28 = vcombine.low %v12844_v0, %v12847_v13 }
 0x618   : > { %v7253_v18 = vrot.slane %v7225_v36, %v11160_v60  ;;  %v8777_v5 = vcombine.low %v7232_v22, %v7246_v35  ;;  %v9682_v19 = vcombine.high %v7232_v22, %v7246_v35  ;;  %v6588_v46 = vcombine.high %v6586_v12, %v6586_v12 }
 0x619   : > { %v13074_v11 = vrot.slane %v6587_v52, %v11160_v60  ;;  %v7837_v24 = vrot.slane %v7829_v48, %v11160_v60  ;;  %v7844_v7 = vrot.slane %v7830_v28, %v11160_v60  ;;  %v8466_v41 = vcombine.low %v12855_v30, %v12865_v6  ;;  %v5884_v28 = vpop.xlane.xlu1 %5883 }
 0x61a   : > { %v13081_v16 = vrot.slane %v8632_v31, %v11160_v60  ;;  %v8779_v0 = vcombine.low %v7239_v14, %v7253_v18  ;;  %v9683_v13 = vcombine.high %v7239_v14, %v7253_v18  ;;  %v13084_v36 = vrot.slane %v6579_v27, %v11160_v60 }
 0x61b   : > { %v13087_v22 = vrot.slane %v9677_v25, %v11160_v60  ;;  %v13090_v35 = vrot.slane %v6586_v12, %v11160_v60  ;;  %v13093_v48 = vrot.slane %v6588_v46, %v11160_v60  ;;  %v7845_v52 = vcombine.low %v7837_v24, %v7844_v7 }
 0x61c   : > { %v13096_v30 = vrot.slane %v8777_v5, %v11160_v60  ;;  %v13099_v6 = vrot.slane %v9682_v19, %v11160_v60  ;;  %v8140_v31 = vcombine.low %v13084_v36, %v13074_v11  ;;  %v8467_v25 = vcombine.low %v12874_v29, %v12878_v1  ;;  %v5869_v1 = vpop.xlane.xlu0 %5868 }
 0x61d   : > { %v13106_v27 = vrot.slane %v8779_v0, %v11160_v60  ;;  %v13109_v12 = vrot.slane %v9683_v13, %v11160_v60  ;;  %v9656_v14 = vcombine.high %v13084_v36, %v13074_v11  ;;  %9182 = vperm.xlu1 %9780, %v7845_v52   ;;  %v8474_v18 = vrot.slane %v8466_v41, %v11160_v60  ;;  %v14007_v13 = vld [vmem:[#allocation14_spill] sm:$0xff] }
 0x61e   : > { %v8481_v5 = vrot.slane %v8467_v25, %v11160_v60  ;;  %v5951_v19 = vadd.f32 %v12565_v44, %v5884_v28  ;;  %v5964_v46 = vadd.f32 %v12565_v44, %v5923_v53  ;;  %v8613_v29 = vcombine.low %v12883_v42, %v12886_v55  ;;  %v14008_v25 = vld [vmem:[#allocation23_spill] sm:$0xff] }
 0x61f   : > { %v8142_v24 = vcombine.low %v13090_v35, %v13093_v48  ;;  %v9657_v7 = vcombine.high %v13090_v35, %v13093_v48  ;;  %v8614_v11 = vcombine.low %v12890_v2, %v12893_v47  ;;  %v7976_v41 = vcombine.low %v12898_v4, %v12907_v9 }
 0x620   : > { %v13128_v0 = vrot.slane %v8140_v31, %v11160_v60  ;;  %v8482_v53 = vcombine.low %v8474_v18, %v8481_v5  ;;  %v5983_v36 = vsub.f32 %v5951_v19, %v14007_v13  ;;  %v5996_v42 = vsub.f32 %v5964_v46, %v13963_v45 }
 0x621   : > { %v8621_v55 = vrot.slane %v8613_v29, %v11160_v60  ;;  %v8628_v52 = vrot.slane %v8614_v11, %v11160_v60  ;;  %v7977_v35 = vcombine.low %v12912_v3, %v12919_v50  ;;  %v5946_v2 = vadd.f32 %v12565_v44, %v5869_v1 }
 0x622   : > { %9221 = vperm.xlu0 %9781, %v8482_v53   ;;  %v6719_v47 = vcombine.high %v5983_v36, %v5983_v36  ;;  %v6726_v9 = vrot.slane %v5983_v36, %v11160_v60  ;;  %v7356_v4 = vcombine.high %v5996_v42, %v5996_v42  ;;  %v7363_v48 = vrot.slane %v5996_v42, %v11160_v60 }
 0x623   : > { %v8629_v28 = vcombine.low %v8621_v55, %v8628_v52  ;;  %v7984_v31 = vrot.slane %v7976_v41, %v11160_v60  ;;  %v7991_v45 = vrot.slane %v7977_v35, %v11160_v60  ;;  %v5978_v18 = vsub.f32 %v5946_v2, %v14008_v25 }
 0x624   : > { %v6733_v5 = vrot.slane %v6719_v47, %v11160_v60  ;;  %v6734_v19 = vcombine.high %v6726_v9, %v6726_v9  ;;  %v6742_v3 = vrot.slane %v6726_v9, %v11160_v60  ;;  %v7370_v50 = vrot.slane %v7356_v4, %v11160_v60 }
 0x625   : > { %v7371_v46 = vcombine.high %v7363_v48, %v7363_v48  ;;  %v7379_v29 = vrot.slane %v7363_v48, %v11160_v60  ;;  %9230 = vperm.xlu1 %9780, %v8629_v28   ;;  %v7992_v1 = vcombine.low %v7984_v31, %v7991_v45  ;;  %v6474_v11 = vcombine.high %v5978_v18, %v5978_v18 }
 0x626   : > { %v6735_v53 = vcombine.high %v6733_v5, %v6733_v5  ;;  %v6749_v41 = vrot.slane %v6733_v5, %v11160_v60  ;;  %v6756_v13 = vrot.slane %v6734_v19, %v11160_v60  ;;  %v7372_v36 = vcombine.high %v7370_v50, %v7370_v50 }
 0x627   : > { %v7386_v42 = vrot.slane %v7370_v50, %v11160_v60  ;;  %v7393_v55 = vrot.slane %v7371_v46, %v11160_v60  ;;  %9191 = vperm.xlu0 %9781, %v7992_v1   ;;  %v6481_v52 = vrot.slane %v5978_v18, %v11160_v60  ;;  %v6488_v35 = vrot.slane %v6474_v11, %v11160_v60  ;;  %v5878_v50 = vpop.xlane.xlu1 %5877 }
 0x628   : > { %v6763_v2 = vrot.slane %v6735_v53, %v11160_v60  ;;  %v8287_v47 = vcombine.low %v6742_v3, %v6756_v13  ;;  %v9662_v9 = vcombine.high %v6742_v3, %v6756_v13  ;;  %v7400_v4 = vrot.slane %v7372_v36, %v11160_v60 }
 0x629   : > { %v8924_v48 = vcombine.low %v7379_v29, %v7393_v55  ;;  %v9688_v28 = vcombine.high %v7379_v29, %v7393_v55  ;;  %v6489_v31 = vcombine.high %v6481_v52, %v6481_v52  ;;  %v6490_v45 = vcombine.high %v6488_v35, %v6488_v35 }
 0x62a   : > { %v13155_v25 = vrot.slane %v9656_v14, %v11160_v60  ;;  %v13158_v5 = vrot.slane %v8142_v24, %v11160_v60  ;;  %v8289_v19 = vcombine.low %v6749_v41, %v6763_v2  ;;  %v9663_v18 = vcombine.high %v6749_v41, %v6763_v2 }
 0x62b   : > { %v13161_v46 = vrot.slane %v9657_v7, %v11160_v60  ;;  %v13164_v3 = vrot.slane %v8287_v47, %v11160_v60  ;;  %v8926_v1 = vcombine.low %v7386_v42, %v7400_v4  ;;  %v8123_v29 = vcombine.low %v12922_v57, %v12927_v58  ;;  %v5917_v57 = vpop.xlane.xlu0 %5916 }
 0x62c   : > { %v13169_v11 = vrot.slane %v9662_v9, %v11160_v60  ;;  %v9689_v14 = vcombine.high %v7386_v42, %v7400_v4  ;;  %v13172_v24 = vrot.slane %v8924_v48, %v11160_v60  ;;  %v13175_v53 = vrot.slane %v9688_v28, %v11160_v60 }
 0x62d   : > { %v13178_v7 = vrot.slane %v8289_v19, %v11160_v60  ;;  %v6497_v41 = vrot.slane %v6481_v52, %v11160_v60  ;;  %v6511_v13 = vrot.slane %v6489_v31, %v11160_v60  ;;  %v13183_v36 = vrot.slane %v6490_v45, %v11160_v60  ;;  %v14009_v19 = vld [vmem:[#allocation12_spill] sm:$0xff] }
 0x62e   : > { %v13186_v58 = vrot.slane %v9663_v18, %v11160_v60  ;;  %v8124_v42 = vcombine.low %v12937_v63, %v12940_v38  ;;  %v8760_v55 = vcombine.low %v12948_v8, %v12953_v61  ;;  %v8761_v2 = vcombine.low %v12975_v23, %v12978_v15  ;;  %v5926_v8 = vpop.xlane.xlu1 %5925 }
 0x62f   : > { %v13195_v52 = vrot.slane %v8926_v1, %v11160_v60  ;;  %v6504_v47 = vrot.slane %v6488_v35, %v11160_v60  ;;  %v8042_v9 = vcombine.low %v6497_v41, %v6511_v13  ;;  %v8131_v4 = vrot.slane %v8123_v29, %v11160_v60 }
 0x630   : > { %v8138_v48 = vrot.slane %v8124_v42, %v11160_v60  ;;  %v8768_v28 = vrot.slane %v8760_v55, %v11160_v60  ;;  %v8775_v63 = vrot.slane %v8761_v2, %v11160_v60  ;;  %v5949_v38 = vadd.f32 %v12565_v44, %v5878_v50 }
 0x631   : > { %v13204_v61 = vrot.slane %v9689_v14, %v11160_v60  ;;  %v9652_v23 = vcombine.high %v6497_v41, %v6511_v13  ;;  %v8044_v15 = vcombine.low %v6504_v47, %v13183_v36  ;;  %v9653_v35 = vcombine.high %v6504_v47, %v13183_v36  ;;  %v5932_v13 = vpop.xlane.xlu0 %5931 }
 0x632   : > { %v8139_v31 = vcombine.low %v8131_v4, %v8138_v48  ;;  %v8776_v45 = vcombine.low %v8768_v28, %v8775_v63  ;;  %v5981_v18 = vsub.f32 %v5949_v38, %v14009_v19  ;;  %v5962_v1 = vadd.f32 %v12565_v44, %v5917_v57 }
 0x633   : > { %v13211_v29 = vrot.slane %v8042_v9, %v11160_v60  ;;  %v7878_v50 = vcombine.low %v12996_v17, %v12999_v59  ;;  %v7879_v14 = vcombine.low %v13035_v62, %v13038_v37  ;;  %v5965_v41 = vadd.f32 %v12565_v44, %v5926_v8  ;;  %v14010_v59 = vld [vmem:[#allocation29_spill] sm:$0xff] }
 0x634   : > { %9200 = vperm.xlu1 %9780, %v8139_v31   ;;  %9239 = vperm.xlu0 %9781, %v8776_v45   ;;  %v6621_v36 = vcombine.high %v5981_v18, %v5981_v18  ;;  %v6628_v42 = vrot.slane %v5981_v18, %v11160_v60  ;;  %v5994_v55 = vsub.f32 %v5962_v1, %v13896_v40 }
 0x635   : > { %v13221_v57 = vrot.slane %v9652_v23, %v11160_v60  ;;  %v7886_v2 = vrot.slane %v7878_v50, %v11160_v60  ;;  %v7893_v17 = vrot.slane %v7879_v14, %v11160_v60  ;;  %v5997_v47 = vsub.f32 %v5965_v41, %v14010_v59 }
 0x636   : > { %v6635_v62 = vrot.slane %v6621_v36, %v11160_v60  ;;  %v6636_v37 = vcombine.high %v6628_v42, %v6628_v42  ;;  %v7258_v9 = vcombine.high %v5994_v55, %v5994_v55  ;;  %v5967_v4 = vadd.f32 %v12565_v44, %v5932_v13 }
 0x637   : > { %v7265_v48 = vrot.slane %v5994_v55, %v11160_v60  ;;  %v7894_v28 = vcombine.low %v7886_v2, %v7893_v17  ;;  %v7405_v63 = vcombine.high %v5997_v47, %v5997_v47  ;;  %v7412_v40 = vrot.slane %v5997_v47, %v11160_v60  ;;  %v14011_v47 = vld [vmem:[#allocation31_spill] sm:$0xff] }
 0x638   : > { %v6637_v38 = vcombine.high %v6635_v62, %v6635_v62  ;;  %v6644_v8 = vrot.slane %v6628_v42, %v11160_v60  ;;  %v6658_v23 = vrot.slane %v6636_v37, %v11160_v60  ;;  %v7272_v31 = vrot.slane %v7258_v9, %v11160_v60 }
 0x639   : > { %v13234_v45 = vrot.slane %v8044_v15, %v11160_v60  ;;  %v6651_v19 = vrot.slane %v6635_v62, %v11160_v60  ;;  %v7273_v18 = vcombine.high %v7265_v48, %v7265_v48  ;;  %9185 = vperm.xlu0 %9781, %v7894_v28   ;;  %v7419_v1 = vrot.slane %v7405_v63, %v11160_v60 }
 0x63a   : > { %v6665_v50 = vrot.slane %v6637_v38, %v11160_v60  ;;  %v8189_v14 = vcombine.low %v6644_v8, %v6658_v23  ;;  %v7274_v41 = vcombine.high %v7272_v31, %v7272_v31  ;;  %v7420_v13 = vcombine.high %v7412_v40, %v7412_v40 }
 0x63b   : > { %v9658_v36 = vcombine.high %v6644_v8, %v6658_v23  ;;  %v7281_v42 = vrot.slane %v7265_v48, %v11160_v60  ;;  %v7295_v55 = vrot.slane %v7273_v18, %v11160_v60  ;;  %v7421_v2 = vcombine.high %v7419_v1, %v7419_v1 }
 0x63c   : > { %v13242_v15 = vrot.slane %v9653_v35, %v11160_v60  ;;  %v8191_v17 = vcombine.low %v6651_v19, %v6665_v50  ;;  %v9659_v59 = vcombine.high %v6651_v19, %v6665_v50  ;;  %v5999_v62 = vsub.f32 %v5967_v4, %v14011_v47 }
 0x63d   : > { %v7288_v37 = vrot.slane %v7272_v31, %v11160_v60  ;;  %v7302_v9 = vrot.slane %v7274_v41, %v11160_v60  ;;  %v8826_v28 = vcombine.low %v7281_v42, %v7295_v55  ;;  %v9684_v63 = vcombine.high %v7281_v42, %v7295_v55  ;;  %v5887_v55 = vpop.xlane.xlu1 %5886 }
 0x63e   : > { %v13248_v38 = vrot.slane %v8189_v14, %v11160_v60  ;;  %v7428_v48 = vrot.slane %v7412_v40, %v11160_v60  ;;  %v7442_v8 = vrot.slane %v7420_v13, %v11160_v60  ;;  %v7449_v35 = vrot.slane %v7421_v2, %v11160_v60 }
 0x63f   : > { %v13254_v23 = vrot.slane %v9658_v36, %v11160_v60  ;;  %v8828_v19 = vcombine.low %v7288_v37, %v7302_v9  ;;  %v9685_v4 = vcombine.high %v7288_v37, %v7302_v9  ;;  %v7435_v31 = vrot.slane %v7419_v1, %v11160_v60 }
 0x640   : > { %v13258_v18 = vrot.slane %v8191_v17, %v11160_v60  ;;  %v13261_v50 = vrot.slane %v9659_v59, %v11160_v60  ;;  %v13264_v14 = vrot.slane %v8826_v28, %v11160_v60  ;;  %v8973_v40 = vcombine.low %v7428_v48, %v7442_v8 }
 0x641   : > { %v13267_v41 = vrot.slane %v9684_v63, %v11160_v60  ;;  %v9690_v13 = vcombine.high %v7428_v48, %v7442_v8  ;;  %v7503_v36 = vcombine.high %v5999_v62, %v5999_v62  ;;  %v7510_v42 = vrot.slane %v5999_v62, %v11160_v60 }
 0x642   : > { %v13271_v1 = vrot.slane %v8828_v19, %v11160_v60  ;;  %v13274_v2 = vrot.slane %v9685_v4, %v11160_v60  ;;  %v8975_v17 = vcombine.low %v7435_v31, %v7449_v35  ;;  %v9691_v59 = vcombine.high %v7435_v31, %v7449_v35  ;;  %v5935_v35 = vpop.xlane.xlu0 %5934 }
 0x643   : > { %v13277_v47 = vrot.slane %v8973_v40, %v11160_v60  ;;  %v7517_v37 = vrot.slane %v7503_v36, %v11160_v60  ;;  %v7518_v9 = vcombine.high %v7510_v42, %v7510_v42  ;;  %v8025_v28 = vcombine.low %v13042_v43, %v13048_v21 }
 0x644   : > { %v8026_v62 = vcombine.low %v13051_v56, %v13054_v34  ;;  %v8662_v63 = vcombine.low %v13058_v10, %v13067_v49  ;;  %v8663_v48 = vcombine.low %v13081_v16, %v13087_v22  ;;  %v5952_v8 = vadd.f32 %v12565_v44, %v5887_v55  ;;  %v14012_v34 = vld [vmem:[#allocation30_spill] sm:$0xff] }
 0x645   : > { %v7519_v19 = vcombine.high %v7517_v37, %v7517_v37  ;;  %v7526_v4 = vrot.slane %v7510_v42, %v11160_v60  ;;  %v7540_v31 = vrot.slane %v7518_v9, %v11160_v60  ;;  %v8033_v40 = vrot.slane %v8025_v28, %v11160_v60 }
 0x646   : > { %v8040_v43 = vrot.slane %v8026_v62, %v11160_v60  ;;  %v8670_v21 = vrot.slane %v8662_v63, %v11160_v60  ;;  %v8677_v56 = vrot.slane %v8663_v48, %v11160_v60  ;;  %v5984_v10 = vsub.f32 %v5952_v8, %v14012_v34 }
 0x647   : > { %v7533_v49 = vrot.slane %v7517_v37, %v11160_v60  ;;  %v7547_v16 = vrot.slane %v7519_v19, %v11160_v60  ;;  %v9071_v22 = vcombine.low %v7526_v4, %v7540_v31  ;;  %v5968_v36 = vadd.f32 %v12565_v44, %v5935_v35 }
 0x648   : > { %v8041_v42 = vcombine.low %v8033_v40, %v8040_v43  ;;  %v8678_v55 = vcombine.low %v8670_v21, %v8677_v56  ;;  %v6768_v9 = vcombine.high %v5984_v10, %v5984_v10  ;;  %v6775_v28 = vrot.slane %v5984_v10, %v11160_v60 }
 0x649   : > { %v13301_v62 = vrot.slane %v9690_v13, %v11160_v60  ;;  %v13304_v63 = vrot.slane %v8975_v17, %v11160_v60  ;;  %v13307_v48 = vrot.slane %v9691_v59, %v11160_v60  ;;  %v9694_v37 = vcombine.high %v7526_v4, %v7540_v31 }
 0x64a   : > { %v9073_v8 = vcombine.low %v7533_v49, %v7547_v16  ;;  %9194 = vperm.xlu1 %9780, %v8041_v42   ;;  %9233 = vperm.xlu0 %9781, %v8678_v55   ;;  %v6782_v35 = vrot.slane %v6768_v9, %v11160_v60  ;;  %v6783_v19 = vcombine.high %v6775_v28, %v6775_v28 }
 0x64b   : > { %v9695_v40 = vcombine.high %v7533_v49, %v7547_v16  ;;  %v13311_v43 = vrot.slane %v9071_v22, %v11160_v60  ;;  %v6000_v13 = vsub.f32 %v5968_v36, %v13966_v54  ;;  %v8809_v17 = vcombine.low %v13096_v30, %v13099_v6  ;;  %v5881_v22 = vpop.xlane.xlu0 %5880 }
 0x64c   : > { %v6784_v21 = vcombine.high %v6782_v35, %v6782_v35  ;;  %v6791_v59 = vrot.slane %v6775_v28, %v11160_v60  ;;  %v6805_v4 = vrot.slane %v6783_v19, %v11160_v60  ;;  %v8810_v31 = vcombine.low %v13106_v27, %v13109_v12 }
 0x64d   : > { %v6798_v56 = vrot.slane %v6782_v35, %v11160_v60  ;;  %v7552_v34 = vcombine.high %v6000_v13, %v6000_v13  ;;  %v7559_v10 = vrot.slane %v6000_v13, %v11160_v60  ;;  %v8817_v49 = vrot.slane %v8809_v17, %v11160_v60 }
 0x64e   : > { %v6812_v54 = vrot.slane %v6784_v21, %v11160_v60  ;;  %v8336_v16 = vcombine.low %v6791_v59, %v6805_v4  ;;  %v8824_v30 = vrot.slane %v8810_v31, %v11160_v60  ;;  %v8907_v6 = vcombine.low %v12987_v33, %v12990_v20 }
 0x64f   : > { %v9664_v36 = vcombine.high %v6791_v59, %v6805_v4  ;;  %v7566_v42 = vrot.slane %v7552_v34, %v11160_v60  ;;  %v7567_v27 = vcombine.high %v7559_v10, %v7559_v10  ;;  %v8908_v12 = vcombine.low %v13010_v39, %v13032_v26 }
 0x650   : > { %v13331_v55 = vrot.slane %v9694_v37, %v11160_v60  ;;  %v13334_v9 = vrot.slane %v9073_v8, %v11160_v60  ;;  %v13337_v28 = vrot.slane %v9695_v40, %v11160_v60  ;;  %v8338_v35 = vcombine.low %v6798_v56, %v6812_v54 }
 0x651   : > { %v9665_v19 = vcombine.high %v6798_v56, %v6812_v54  ;;  %v7568_v33 = vcombine.high %v7566_v42, %v7566_v42  ;;  %v13340_v20 = vrot.slane %v7567_v27, %v11160_v60  ;;  %v8825_v13 = vcombine.low %v8817_v49, %v8824_v30 }
 0x652   : > { %v13343_v17 = vrot.slane %v8336_v16, %v11160_v60  ;;  %v13346_v39 = vrot.slane %v7559_v10, %v11160_v60  ;;  %v8915_v26 = vrot.slane %v8907_v6, %v11160_v60  ;;  %v8922_v37 = vrot.slane %v8908_v12, %v11160_v60  ;;  %v5929_v10 = vpop.xlane.xlu0 %5928 }
 0x653   : > { %v13351_v8 = vrot.slane %v9664_v36, %v11160_v60  ;;  %v13354_v40 = vrot.slane %v7566_v42, %v11160_v60  ;;  %v13357_v21 = vrot.slane %v7568_v33, %v11160_v60  ;;  %9242 = vperm.xlu1 %9780, %v8825_v13   ;;  %v5950_v59 = vadd.f32 %v12565_v44, %v5881_v22 }
 0x654   : > { %v8923_v4 = vcombine.low %v8915_v26, %v8922_v37  ;;  %v8172_v31 = vcombine.low %v13128_v0, %v13155_v25  ;;  %v8173_v56 = vcombine.low %v13158_v5, %v13161_v46  ;;  %v8956_v34 = vcombine.low %v13172_v24, %v13175_v53  ;;  %v14013_v0 = vld [vmem:[#allocation28_spill] sm:$0xff] }
 0x655   : > { %v13367_v49 = vrot.slane %v8338_v35, %v11160_v60  ;;  %v13370_v54 = vrot.slane %v9665_v19, %v11160_v60  ;;  %v9120_v16 = vcombine.low %v13346_v39, %v13340_v20  ;;  %v9122_v30 = vcombine.low %v13354_v40, %v13357_v21 }
 0x656   : > { %9248 = vperm.xlu0 %9781, %v8923_v4   ;;  %v5982_v25 = vsub.f32 %v5950_v59, %v14013_v0  ;;  %v8180_v5 = vrot.slane %v8172_v31, %v11160_v60  ;;  %v8187_v46 = vrot.slane %v8173_v56, %v11160_v60  ;;  %v8957_v24 = vcombine.low %v13195_v52, %v13204_v61  ;;  %v4719_v59 = vpop.permute.xlu0 %4718 }
 0x657   : > { %v9696_v53 = vcombine.high %v13346_v39, %v13340_v20  ;;  %v9697_v6 = vcombine.high %v13354_v40, %v13357_v21  ;;  %v8964_v22 = vrot.slane %v8956_v34, %v11160_v60  ;;  %v5966_v36 = vadd.f32 %v12565_v44, %v5929_v10  ;;  %v14023_v40 = vld [vmem:[#allocation88_spill] sm:$0xff] }
 0x658   : > { %v6670_v42 = vcombine.high %v5982_v25, %v5982_v25  ;;  %v6677_v27 = vrot.slane %v5982_v25, %v11160_v60  ;;  %v8188_v12 = vcombine.low %v8180_v5, %v8187_v46  ;;  %v8971_v35 = vrot.slane %v8957_v24, %v11160_v60 }
 0x659   : > { %v13390_v19 = vrot.slane %v9122_v30, %v11160_v60  ;;  %v5998_v52 = vsub.f32 %v5966_v36, %v13965_v51  ;;  %v8319_v61 = vcombine.low %v13164_v3, %v13169_v11  ;;  %v8320_v33 = vcombine.low %v13178_v7, %v13186_v58 }
 0x65a   : > { %v6684_v13 = vrot.slane %v6670_v42, %v11160_v60  ;;  %v6685_v44 = vcombine.high %v6677_v27, %v6677_v27  ;;  %9203 = vperm.xlu1 %9780, %v8188_v12   ;;  %v8972_v26 = vcombine.low %v8964_v22, %v8971_v35  ;;  %v8074_v37 = vcombine.low %v13211_v29, %v13221_v57  ;;  %v4725_v12 = vpop.permute.xlu0 %4724 }
 0x65b   : > { %v7454_v4 = vcombine.high %v5998_v52, %v5998_v52  ;;  %v7461_v31 = vrot.slane %v5998_v52, %v11160_v60  ;;  %v8327_v51 = vrot.slane %v8319_v61, %v11160_v60  ;;  %v8334_v56 = vrot.slane %v8320_v33, %v11160_v60 }
 0x65c   : > { %v6686_v3 = vcombine.high %v6684_v13, %v6684_v13  ;;  %v6693_v11 = vrot.slane %v6677_v27, %v11160_v60  ;;  %v6707_v7 = vrot.slane %v6685_v44, %v11160_v60  ;;  %9251 = vperm.xlu0 %9781, %v8972_v26   ;;  %v8075_v58 = vcombine.low %v13234_v45, %v13242_v15 }
 0x65d   : > { %v6700_v34 = vrot.slane %v6684_v13, %v11160_v60  ;;  %v7468_v29 = vrot.slane %v7454_v4, %v11160_v60  ;;  %v7469_v57 = vcombine.high %v7461_v31, %v7461_v31  ;;  %v8335_v10 = vcombine.low %v8327_v51, %v8334_v56 }
 0x65e   : > { %v6714_v30 = vrot.slane %v6686_v3, %v11160_v60  ;;  %v8238_v0 = vcombine.low %v6693_v11, %v6707_v7  ;;  %v9660_v25 = vcombine.high %v6693_v11, %v6707_v7  ;;  %v7477_v5 = vrot.slane %v7461_v31, %v11160_v60 }
 0x65f   : > { %v7470_v46 = vcombine.high %v7468_v29, %v7468_v29  ;;  %v7491_v24 = vrot.slane %v7469_v57, %v11160_v60  ;;  %9212 = vperm.xlu1 %9780, %v8335_v10   ;;  %v8082_v22 = vrot.slane %v8074_v37, %v11160_v60  ;;  %v8089_v45 = vrot.slane %v8075_v58, %v11160_v60 }
 0x660   : > { %v8240_v15 = vcombine.low %v6700_v34, %v6714_v30  ;;  %v9661_v36 = vcombine.high %v6700_v34, %v6714_v30  ;;  %v8248_v42 = vrot.slane %v8238_v0, %v11160_v60  ;;  %v7484_v27 = vrot.slane %v7468_v29, %v11160_v60 }
 0x661   : > { %v7498_v35 = vrot.slane %v7470_v46, %v11160_v60  ;;  %v9022_v52 = vcombine.low %v7477_v5, %v7491_v24  ;;  %v9692_v61 = vcombine.high %v7477_v5, %v7491_v24  ;;  %v8090_v33 = vcombine.low %v8082_v22, %v8089_v45  ;;  %v14017_v5 = vld [vmem:[#allocation47_spill] sm:$0xff]  ;;  %v14019_v45 = vld [vmem:[#allocation46_spill] sm:$0xff] }
 0x662   : > { %v8255_v13 = vrot.slane %v9660_v25, %v11160_v60  ;;  %v8262_v44 = vrot.slane %v8240_v15, %v11160_v60  ;;  %v8221_v26 = vcombine.low %v13248_v38, %v13254_v23  ;;  %v8222_v37 = vcombine.low %v13258_v18, %v13261_v50  ;;  %v14016_v25 = vld [vmem:[#allocation50_spill] sm:$0xff] }
 0x663   : > { %v8269_v4 = vrot.slane %v9661_v36, %v11160_v60  ;;  %v9024_v31 = vcombine.low %v7484_v27, %v7498_v35  ;;  %v9693_v51 = vcombine.high %v7484_v27, %v7498_v35  ;;  %v9032_v56 = vrot.slane %v9022_v52, %v11160_v60  ;;  %9197 = vperm.xlu0 %9781, %v8090_v33   ;;  %v14020_v35 = vld [vmem:[#allocation51_spill] sm:$0xff]  ;;  %v14021_v52 = vld [vmem:[#allocation49_spill] sm:$0xff] }
 0x664   : > { %v8229_v3 = vrot.slane %v8221_v26, %v11160_v60  ;;  %v8236_v11 = vrot.slane %v8222_v37, %v11160_v60  ;;  %v8858_v7 = vcombine.low %v13264_v14, %v13267_v41  ;;  %v8859_v38 = vcombine.low %v13271_v1, %v13274_v2  ;;  %v4731_v41 = vpop.permute.xlu0 %4730  ;;  %v14014_v2 = vld [vmem:[#allocation60_spill] sm:$0xff] }
 0x665   : > { %v9039_v23 = vrot.slane %v9692_v61, %v11160_v60  ;;  %v9046_v18 = vrot.slane %v9024_v31, %v11160_v60  ;;  %v4900_v50 = vrot.slane %v4719_v59, %v12556_v32  ;;  %v9103_v58 = vcombine.low %v13311_v43, %v13331_v55  ;;  %v14015_v59 = vld [vmem:[#allocation44_spill] sm:$0xff] }
 0x666   : > { %v8237_v34 = vcombine.low %v8229_v3, %v8236_v11  ;;  %v8866_v29 = vrot.slane %v8858_v7, %v11160_v60  ;;  %v8873_v57 = vrot.slane %v8859_v38, %v11160_v60  ;;  %v9104_v14 = vcombine.low %v13334_v9, %v13337_v28 }
 0x667   : > { %v9053_v1 = vrot.slane %v9693_v51, %v11160_v60  ;;  %v4901_v10 = vsel %vm4813_vm12, %v4900_v50, %v14014_v2  ;;  %v9111_v30 = vrot.slane %v9103_v58, %v11160_v60  ;;  %v4910_v0 = vrot.slane %v4725_v12, %v14015_v59  ;;  %v9177_v58 = vpop.permute.xlu1 %9176 }
 0x668   : > { %9206 = vperm.xlu1 %9780, %v8237_v34   ;;  %v8874_v43 = vcombine.low %v8866_v29, %v8873_v57  ;;  %v9118_v55 = vrot.slane %v9104_v14, %v11160_v60  ;;  %v14018_v46 = vrot.slane %v14016_v25, %v14017_v5  ;;  %v9006_v9 = vcombine.low %v13304_v63, %v13307_v48 }
 0x669   : > { %v9005_v22 = vcombine.low %v13277_v47, %v13301_v62  ;;  %v4920_v15 = vrot.slane %v4731_v41, %v14019_v45  ;;  %v8270_v36 = vcombine.low %v8248_v42, %v8255_v13  ;;  %v9151_v27 = vrot.slane %v9697_v6, %v11160_v60 }
 0x66a   : > { %v4906_v24 = vsel %vm4820_vm13, %v14018_v46, %v4901_v10  ;;  %9245 = vperm.xlu0 %9781, %v8874_v43   ;;  %v9119_v12 = vcombine.low %v9111_v30, %v9118_v55  ;;  %v14022_v61 = vrot.slane %v14020_v35, %v14021_v52  ;;  %v8271_v48 = vcombine.low %v8262_v44, %v8269_v4 }
 0x66b   : > { %v4911_v28 = vsel %vm4827_vm14, %v4910_v0, %v4906_v24  ;;  %v9020_v33 = vrot.slane %v9006_v9, %v11160_v60  ;;  %v8278_v62 = vrot.slane %v8270_v36, %v11160_v60  ;;  %v8369_v42 = vcombine.low %v13367_v49, %v13370_v54  ;;  %v9225_v34 = vpop.permute.xlu1 %9224  ;;  %v14028_v36 = vld [vmem:[#allocation52_spill] sm:$0xff] }
 0x66c   : > { %v4916_v63 = vsel %vm4834_vm15, %v14022_v61, %v4911_v28  ;;  %v8285_v6 = vrot.slane %v8271_v48, %v11160_v60  ;;  %v8368_v13 = vcombine.low %v13343_v17, %v13351_v8  ;;  %v9054_v26 = vcombine.low %v9032_v56, %v9039_v23  ;;  %v14027_v28 = vld [vmem:[#allocation53_spill] sm:$0xff]  ;;  %v14029_v48 = vld [vmem:[#allocation55_spill] sm:$0xff] }
 0x66d   : > { %v4921_v47 = vsel %vm4841_vm0, %v4920_v15, %v4916_v63  ;;  %v9130_v44 = vrot.slane %v9120_v16, %v11160_v60  ;;  %v9013_v37 = vrot.slane %v9005_v22, %v11160_v60  ;;  %v9055_v4 = vcombine.low %v9046_v18, %v9053_v1 }
 0x66e   : > { %v4922_v21 = vcombine.low %v14023_v40, %v4921_v47  ;;  %v9137_v49 = vrot.slane %v9696_v53, %v11160_v60  ;;  %9260 = vperm.xlu0 %9781, %v9119_v12   ;;  %v8286_v31 = vcombine.low %v8278_v62, %v8285_v6  ;;  %v8383_v17 = vrot.slane %v8369_v42, %v11160_v60 }
 0x66f   : > { %v9021_v8 = vcombine.low %v9013_v37, %v9020_v33  ;;  %v14024_v16 = vlaneseq  ;;  %v9069_v56 = vrot.slane %v9055_v4, %v11160_v60  ;;  %v8376_v39 = vrot.slane %v8368_v13, %v11160_v60  ;;  %v9171_v29 = vpop.permute.xlu1 %9170  ;;  %v14031_v13 = vld [vmem:[#allocation36_spill] sm:$0xff] }
 0x670   : > { %v4929_v54 = vrot.slane %v4922_v21, %v11160_v60  ;;  %9209 = vperm.xlu1 %9780, %v8286_v31   ;;  %v9062_v53 = vrot.slane %v9054_v26, %v11160_v60  ;;  %v9153_v3 = vcombine.low %v13390_v19, %v9151_v27  ;;  %v9152_v38 = vcombine.low %v9130_v44, %v9137_v49  ;;  %v14030_v21 = vld [vmem:[#allocation54_spill] sm:$0xff] }
 0x671   : > { %vm13489_vm1 = vcmp.lt.s32.totalorder %v14024_v16, 256  ;;  %v8384_v11 = vcombine.low %v8376_v39, %v8383_v17  ;;  %v9268_v27 = vrot.slane %v9171_v29, %v14028_v36  ;;  %v9277_v33 = vrot.slane %v9177_v58, %v14029_v48 }
 0x672   : > { %v4936_v20 = vrot.slane %v4929_v54, %v11160_v60  ;;  %9254 = vperm.xlu0 %9781, %v9021_v8   ;;  %v9070_v7 = vcombine.low %v9062_v53, %v9069_v56  ;;  %v9167_v23 = vrot.slane %v9153_v3, %v11160_v60  ;;  %v9160_v18 = vrot.slane %v9152_v38, %v11160_v60  ;;  %v14032_v54 = vld [vmem:[#allocation25_spill] sm:$0xff]  ;;  %v14033_v53 = vld [vmem:[#allocation56_spill] sm:$0xff] }
 0x673   : > { %v9219_v57 = vpop.permute.xlu1 %9218  ;;  %v9356_v62 = vrot.slane %v9225_v34, %v14029_v48  ;;  %v14035_v34 = vld [vmem:[#allocation41_spill] sm:$0xff] }
 0x674   : > { %4942 = vst.msk [vmem:[%s291_s28] sm:$0x3] %vm13489_vm1, %v4936_v20  ;;  %9215 = vperm.xlu1 %9780, %v8384_v11   ;;  %v9168_v50 = vcombine.low %v9160_v18, %v9167_v23  ;;  %v9347_v61 = vrot.slane %v9219_v57, %v14028_v36 }
 0x676   : > { %9257 = vperm.xlu0 %9781, %v9070_v7  }
 0x67a   : > { %9263 = vperm.xlu0 %9781, %v9168_v50   ;;  %v9180_v14 = vpop.permute.xlu1 %9179  ;;  %v14034_v50 = vld [vmem:[#allocation42_spill] sm:$0xff] }
 0x67b   : > { %v9282_v6 = vrot.slane %v9180_v14, %v14030_v21 }
 0x680   : > { %v9189_v1 = vpop.permute.xlu1 %9188 }
 0x681   : > { %v9297_v3 = vrot.slane %v9189_v1, %v14033_v53  ;;  %v14036_v1 = vld [vmem:[#allocation43_spill] sm:$0xff] }
 0x687   : > { %v9228_v19 = vpop.permute.xlu0 %9227 }
 0x688   : > { %v9361_v4 = vrot.slane %v9228_v19, %v14030_v21 }
 0x68d   : > { %v9237_v10 = vpop.permute.xlu1 %9236 }
 0x68e   : > { %v9174_v41 = vpop.permute.xlu0 %9173  ;;  %v9376_v23 = vrot.slane %v9237_v10, %v14033_v53 }
 0x68f   : > { %v9272_v22 = vrot.slane %v9174_v41, %v14027_v28 }
 0x691   : > { %v9273_v63 = vsel %vm4743_vm2, %v9272_v22, %v9268_v27 }
 0x692   : > { %v9278_v42 = vsel %vm4750_vm3, %v9277_v33, %v9273_v63 }
 0x693   : > { %v9283_v49 = vsel %vm4757_vm4, %v9282_v6, %v9278_v42 }
 0x69c   : > { %v9183_v0 = vpop.permute.xlu1 %9182 }
 0x69d   : > { %v9287_v26 = vrot.slane %v9183_v0, %v14031_v13 }
 0x69f   : > { %v9288_v56 = vsel %vm4764_vm5, %v9287_v26, %v9283_v49 }
 0x6a1   : > { %v9222_v2 = vpop.permute.xlu0 %9221 }
 0x6a2   : > { %v9351_v12 = vrot.slane %v9222_v2, %v14027_v28  ;;  %v14037_v28 = vld [vmem:[#allocation37_spill] sm:$0xff] }
 0x6a4   : > { %v9231_v55 = vpop.permute.xlu1 %9230  ;;  %v9352_v47 = vsel %vm4743_vm2, %v9351_v12, %v9347_v61 }
 0x6a5   : > { %v9357_v44 = vsel %vm4750_vm3, %v9356_v62, %v9352_v47  ;;  %v9366_v17 = vrot.slane %v9231_v55, %v14031_v13 }
 0x6a6   : > { %v9192_v30 = vpop.permute.xlu0 %9191  ;;  %v9362_v8 = vsel %vm4757_vm4, %v9361_v4, %v9357_v44 }
 0x6a7   : > { %v9367_v11 = vsel %vm4764_vm5, %v9366_v17, %v9362_v8  ;;  %v9302_v58 = vrot.slane %v9192_v30, %v14034_v50 }
 0x6b3   : > { %v9240_v43 = vpop.permute.xlu0 %9239  ;;  %v9201_v46 = vpop.permute.xlu1 %9200 }
 0x6b4   : > { %v9381_v14 = vrot.slane %v9240_v43, %v14034_v50  ;;  %v9317_v22 = vrot.slane %v9201_v46, %v14037_v28 }
 0x6b8   : > { %v9186_v25 = vpop.permute.xlu0 %9185 }
 0x6b9   : > { %v9292_v31 = vrot.slane %v9186_v25, %v14032_v54 }
 0x6bb   : > { %v9293_v39 = vsel %vm4771_vm6, %v9292_v31, %v9288_v56 }
 0x6bc   : > { %v9298_v18 = vsel %vm4778_vm7, %v9297_v3, %v9293_v39 }
 0x6bd   : > { %v9303_v41 = vsel %vm4785_vm8, %v9302_v58, %v9298_v18 }
 0x6c9   : > { %v9234_v24 = vpop.permute.xlu0 %9233  ;;  %v9195_v9 = vpop.permute.xlu1 %9194 }
 0x6ca   : > { %v9371_v16 = vrot.slane %v9234_v24, %v14032_v54  ;;  %v9307_v29 = vrot.slane %v9195_v9, %v14035_v34 }
 0x6cc   : > { %v9372_v38 = vsel %vm4771_vm6, %v9371_v16, %v9367_v11  ;;  %v9308_v30 = vsel %vm4792_vm9, %v9307_v29, %v9303_v41 }
 0x6cd   : > { %v9377_v57 = vsel %vm4778_vm7, %v9376_v23, %v9372_v38 }
 0x6ce   : > { %v9382_v10 = vsel %vm4785_vm8, %v9381_v14, %v9377_v57 }
 0x6d2   : > { %v9243_v35 = vpop.permute.xlu1 %9242 }
 0x6d3   : > { %v9386_v0 = vrot.slane %v9243_v35, %v14035_v34 }
 0x6d5   : > { %v9249_v15 = vpop.permute.xlu0 %9248  ;;  %v9387_v43 = vsel %vm4792_vm9, %v9386_v0, %v9382_v10 }
 0x6d6   : > { %v9396_v12 = vrot.slane %v9249_v15, %v14037_v28 }
 0x6d9   : > { %v9204_v37 = vpop.permute.xlu1 %9203 }
 0x6da   : > { %v9322_v63 = vrot.slane %v9204_v37, %v12556_v32 }
 0x6db   : > { %v9252_v40 = vpop.permute.xlu0 %9251 }
 0x6dc   : > { %v9401_v46 = vrot.slane %v9252_v40, %v12556_v32 }
 0x6de   : > { %v9213_v7 = vpop.permute.xlu1 %9212 }
 0x6df   : > { %v9337_v40 = vrot.slane %v9213_v7, %v14021_v52 }
 0x6e2   : > { %v9198_v20 = vpop.permute.xlu0 %9197 }
 0x6e3   : > { %v9312_v2 = vrot.slane %v9198_v20, %v14036_v1 }
 0x6e5   : > { %v9313_v9 = vsel %vm4799_vm10, %v9312_v2, %v9308_v30 }
 0x6e6   : > { %v9318_v35 = vsel %vm4806_vm11, %v9317_v22, %v9313_v9 }
 0x6e7   : > { %v9207_v55 = vpop.permute.xlu1 %9206  ;;  %v9323_v62 = vsel %vm4813_vm12, %v9322_v63, %v9318_v35 }
 0x6e8   : > { %v9327_v48 = vrot.slane %v9207_v55, %v14017_v5 }
 0x6e9   : > { %v9246_v19 = vpop.permute.xlu0 %9245 }
 0x6ea   : > { %v9391_v25 = vrot.slane %v9246_v19, %v14036_v1  ;;  %v9328_v26 = vsel %vm4820_vm13, %v9327_v48, %v9323_v62 }
 0x6ec   : > { %v9392_v27 = vsel %vm4799_vm10, %v9391_v25, %v9387_v43 }
 0x6ed   : > { %v9261_v24 = vpop.permute.xlu0 %9260  ;;  %v9397_v33 = vsel %vm4806_vm11, %v9396_v12, %v9392_v27 }
 0x6ee   : > { %v9402_v15 = vsel %vm4813_vm12, %v9401_v46, %v9397_v33  ;;  %v9416_v4 = vrot.slane %v9261_v24, %v14021_v52 }
 0x6ef   : > { %v9210_v36 = vpop.permute.xlu1 %9209 }
 0x6f0   : > { %v9332_v42 = vrot.slane %v9210_v36, %v14015_v59 }
 0x6f1   : > { %v9255_v61 = vpop.permute.xlu0 %9254 }
 0x6f2   : > { %v9406_v47 = vrot.slane %v9255_v61, %v14017_v5  ;;  %v9333_v37 = vsel %vm4827_vm14, %v9332_v42, %v9328_v26 }
 0x6f3   : > { %v9216_v21 = vpop.permute.xlu1 %9215 }
 0x6f4   : > { %v9407_v44 = vsel %vm4820_vm13, %v9406_v47, %v9402_v15  ;;  %v9342_v5 = vrot.slane %v9216_v21, %v14019_v45 }
 0x6f5   : > { %v9258_v6 = vpop.permute.xlu0 %9257 }
 0x6f6   : > { %v9411_v13 = vrot.slane %v9258_v6, %v14015_v59  ;;  %v9338_v59 = vsel %vm4834_vm15, %v9337_v40, %v9333_v37 }
 0x6f7   : > { %v9343_v17 = vsel %vm4841_vm0, %v9342_v5, %v9338_v59 }
 0x6f8   : > { %v9412_v32 = vsel %vm4827_vm14, %v9411_v13, %v9407_v44 }
 0x6f9   : > { %v9264_v49 = vpop.permute.xlu0 %9263  ;;  %v9417_v31 = vsel %vm4834_vm15, %v9416_v4, %v9412_v32 }
 0x6fa   : > { %v9421_v54 = vrot.slane %v9264_v49, %v14019_v45 }
 0x6fc   : > { %v9422_v8 = vsel %vm4841_vm0, %v9421_v54, %v9417_v31 }
 0x6fd   : > { %v9423_v16 = vcombine.low %v9343_v17, %v9422_v8 }
 0x6ff   : > { %v9430_v56 = vrot.slane %v9423_v16, %v11160_v60 }
 0x701   : > { %v9437_v52 = vrot.slane %v9430_v56, %v11160_v60 }
 0x703   : > { %9439 = vst.msk [vmem:[%s296_s7] sm:$0x3] %vm13489_vm1, %v9437_v52 }
 0x704 PF: > { %s18_s21 = sadd.s32 1, %s9938_s21  }
 0x705   : > { %p15_p2 = scmp.ge.s32.totalorder %s18_s21, 4  }
 0x707   :  { %17 = sbr.rel (!%p15_p2) target bundleno = 1 (0x1), region = 90 }
 0x70e   :  { %9475 = vsyncpa [#allocation3], 1 }
 0x70f   :  { %9477 = vsyncpa [#allocation3 + $0x1], 1 }

</bundles_post_ra>
